<compile_context>
chip_gen: v5e
topology: v5e:2x2
jax: 0.10.0
libtpu: 0.0.40
codegen_flags: <defaults>
</compile_context>

<pallas_src>
import jax
import jax.numpy as jnp
from jax.experimental import pallas as pl
from jax.experimental.pallas import tpu as pltpu


def _round_up(n, m):
    return ((n + m - 1) // m) * m


def _make_cin_kernel(num_layers, split_half, num_fields, tb, embed_dim):
    """One grid step == one batch tile of TB elements.

    Kernel-side layouts (lane axis last; TB*E lanes == lane dense):
      x_ref    : (1, F0, TB*E)   bf16   x_ref[0][f, b*E + e] == x[b, f, e]
      w_i      : (C_i, F0*Hin_i) bf16   Conv1d(kernel=1) weight
      b_i      : (C_i, 1)        f32    Conv1d bias
      fcw_i    : (C'_i, 1)       f32    slice of final FC weight for layer i
      fcb      : (1, 1)          f32    final FC bias
      seg      : (TB*E, TB)      f32    segment-sum matrix, seg[b*E+e, b] = 1
      out_ref  : (1, 1, TB)      f32    y for the TB batch elements of this tile
    """
    lanes = tb * embed_dim

    def kernel(*refs):
        x_ref = refs[0]
        conv_refs = refs[1:1 + 2 * num_layers]
        fcw_refs = refs[1 + 2 * num_layers:1 + 3 * num_layers]
        fcb_ref = refs[1 + 3 * num_layers]
        seg_ref = refs[2 + 3 * num_layers]
        out_ref = refs[3 + 3 * num_layers]

        x0 = x_ref[0]                      # (F0, TB*E) bf16
        h = x0                             # (Hin, TB*E) bf16
        # FC-weighted running accumulator kept in lane space (1, TB*E):
        # lane_acc[0, b*E+e] = sum_layers sum_c fc_w_i[c] * relu_out_i[c, b*E+e]
        lane_acc = jnp.zeros((1, lanes), jnp.float32)

        for i in range(num_layers):
            w = conv_refs[2 * i][...]          # (C_i, F0*Hin_i) bf16
            b = conv_refs[2 * i + 1][...]      # (C_i, 1) f32
            hin = h.shape[0]

            # Outer product over the two field axes; (batch, embed) shared on
            # the lane axis.  Materialized in bf16 (halves its VMEM traffic,
            # which is the binding store slot on v5e).
            z = (x0[:, None, :] * h[None, :, :]).reshape(num_fields * hin, lanes)

            # Conv1d(kernel=1) == channel matmul on the MXU: bf16 in, f32 acc.
            out = jnp.dot(w, z, preferred_element_type=jnp.float32) + b
            out = jnp.maximum(out, 0.0)        # (C_i, TB*E) f32

            if split_half and i != num_layers - 1:
                half = out.shape[0] // 2
                xpart = out[:half]                      # -> xs (first half)
                h = out[half:].astype(jnp.bfloat16)     # feeds next layer
            else:
                xpart = out
                h = out.astype(jnp.bfloat16)

            # Fold the final FC weights in per layer, still in lane space:
            # VPU mul + cheap sublane (XLU) reduce over C'_i rows.
            lane_acc = lane_acc + jnp.sum(xpart * fcw_refs[i][...],
                                          axis=0, keepdims=True)

        # Single embed-dim pooling for all TB batch elements, on the MXU:
        # (1, TB*E) @ (TB*E, TB) -> (1, TB)  (f32, one small matmul per step).
        pooled = jnp.dot(lane_acc, seg_ref[...],
                         preferred_element_type=jnp.float32)
        y = pooled + fcb_ref[...]              # (1, TB)
        out_ref[...] = y.reshape(1, 1, tb)

    return kernel


def cin_forward(x, conv_params, fc_w, fc_b, *, split_half=True, tb=128):
    """Pallas CIN forward. x: (B, F0, E) f32 -> (B, 1) f32.

    tb: batch-tile size.  Keep tb*E*4B per intermediate well under the scoped
    VMEM limit (cap tb on v7x, which has 64 MiB VMEM shared by 2 TensorCores);
    an even number of grid steps keeps both v7x TensorCores busy.
    """
    B, F0, E = x.shape
    num_layers = len(conv_params)

    # Batch tile: fold TB batch elements into the lane axis (TB*E lanes).
    tb = max(8, min(tb, _round_up(B, 8)))
    b_pad = _round_up(B, tb)
    grid_steps = b_pad // tb
    lanes = tb * E

    # Wrapper-side layout plumbing (cheap XLA reshapes/transposes, outside the
    # kernel):  x (B, F0, E) -> (G, F0, TB*E) with [g, f, b*E+e] = x[g*TB+b, f, e].
    x_pad = jnp.pad(x, ((0, b_pad - B), (0, 0), (0, 0)))
    x_t = (x_pad.reshape(grid_steps, tb, F0, E)
                .transpose(0, 2, 1, 3)
                .reshape(grid_steps, F0, lanes)
                .astype(jnp.bfloat16))

    # Constant segment-sum matrix for embed-dim pooling on the MXU.
    seg = jnp.repeat(jnp.eye(tb, dtype=jnp.float32), E, axis=0)   # (TB*E, TB)

    # Split the final FC weight per CIN layer (each layer contributes C'_i rows
    # of the concatenated pooled features).
    fc_parts, off = [], 0
    for i, (w, _) in enumerate(conv_params):
        c = w.shape[0]
        c_out = c // 2 if (split_half and i != num_layers - 1) else c
        fc_parts.append(fc_w[off:off + c_out])          # (C'_i, 1)
        off += c_out
    assert off == fc_w.shape[0]

    # Inputs with constant block indices (weights, fc, seg) are copied into
    # VMEM once and stay resident: Pallas skips re-DMA when the block index
    # does not change between grid steps.
    in_specs = [pl.BlockSpec((1, F0, lanes), lambda g: (g, 0, 0))]
    args = [x_t]
    for w, bias in conv_params:
        in_specs.append(pl.BlockSpec(w.shape, lambda g: (0, 0)))
        in_specs.append(pl.BlockSpec(bias.shape, lambda g: (0, 0)))
        args.extend([w.astype(jnp.bfloat16), bias])
    for fcw in fc_parts:
        in_specs.append(pl.BlockSpec(fcw.shape, lambda g: (0, 0)))
        args.append(fcw)
    in_specs.append(pl.BlockSpec(fc_b.shape, lambda g: (0, 0)))
    args.append(fc_b)
    in_specs.append(pl.BlockSpec(seg.shape, lambda g: (0, 0)))
    args.append(seg)

    kernel = _make_cin_kernel(num_layers, split_half, F0, tb, E)
    out = pl.pallas_call(
        kernel,
        out_shape=jax.ShapeDtypeStruct((grid_steps, 1, tb), jnp.float32),
        grid=(grid_steps,),
        in_specs=in_specs,
        out_specs=pl.BlockSpec((1, 1, tb), lambda g: (g, 0, 0)),
        compiler_params=pltpu.CompilerParams(
            dimension_semantics=("parallel",)),
    )(*args)
    return out.reshape(b_pad, 1)[:B]


def init_params(key, input_dim, cross_layer_sizes, split_half=True):
    """Deterministic synthetic parameters matching the torch module's shapes."""
    num_layers = len(cross_layer_sizes)
    prev_dim, fc_input_dim = input_dim, 0
    conv_params = []
    for i in range(num_layers):
        c = cross_layer_sizes[i]
        key, kw, kb = jax.random.split(key, 3)
        fan_in = input_dim * prev_dim
        w = jax.random.normal(kw, (c, fan_in), jnp.float32) * (1.0 / fan_in) ** 0.5
        b = jax.random.normal(kb, (c, 1), jnp.float32) * 0.01
        conv_params.append((w, b))
        if split_half and i != num_layers - 1:
            c //= 2
        prev_dim = c
        fc_input_dim += prev_dim
    key, kw, kb = jax.random.split(key, 3)
    fc_w = jax.random.normal(kw, (fc_input_dim, 1), jnp.float32) * (1.0 / fc_input_dim) ** 0.5
    fc_b = jax.random.normal(kb, (1, 1), jnp.float32) * 0.01
    return conv_params, fc_w, fc_b


def cin_reference(x, conv_params, fc_w, fc_b, *, split_half=True):
    """Pure-JAX f32 reference mirroring the PyTorch forward exactly."""
    B, F0, E = x.shape
    num_layers = len(conv_params)
    x0 = x[:, :, None, :]
    h = x
    xs = []
    for i, (w, b) in enumerate(conv_params):
        z = (x0 * h[:, None, :, :]).reshape(B, -1, E)
        out = jax.nn.relu(jnp.einsum('ck,bke->bce', w, z) + b[None, :, :])
        if split_half and i != num_layers - 1:
            half = out.shape[1] // 2
            xpart, h = out[:, :half], out[:, half:]
        else:
            xpart = h = out
        xs.append(xpart)
    pooled = jnp.sum(jnp.concatenate(xs, axis=1), axis=2)   # (B, fc_dim)
    return pooled @ fc_w + fc_b[0]


if __name__ == "__main__":
    # Small shapes; B chosen to exercise batch tiling (2 grid steps) and the
    # non-divisible-batch padding path.
    B, F0, E = 200, 8, 16
    cross_layer_sizes = (16, 16, 8)
    split_half = True

    key = jax.random.PRNGKey(0)
    key, kx = jax.random.split(key)
    x = jax.random.normal(kx, (B, F0, E), jnp.float32)
    conv_params, fc_w, fc_b = init_params(key, F0, cross_layer_sizes, split_half)

    y = cin_forward(x, conv_params, fc_w, fc_b, split_half=split_half, tb=128)
    y = jax.block_until_ready(y)

    y_ref = cin_reference(x, conv_params, fc_w, fc_b, split_half=split_half)
    assert y.shape == (B, 1)
    # Kernel feeds bf16 to the MXU (f32 accumulation), so allow bf16-level
    # deviation from the pure-f32 reference; a structural bug would be ~100x
    # larger than this bound.
    err = float(jnp.max(jnp.abs(y - y_ref)))
    scale = float(jnp.max(jnp.abs(y_ref)))
    assert err <= 3e-2 * max(scale, 1.0), (err, scale)
    print("KERNEL_OK")
</pallas_src>

<mosaic_0001>
module attributes {stable_mosaic.version = 11 : i64} {
  func.func @kernel(%arg0: i32, %arg1: memref<1x8x2048xbf16, #tpu.memory_space<vmem>>, %arg2: memref<16x64xbf16, #tpu.memory_space<vmem>>, %arg3: memref<16x1xf32, #tpu.memory_space<vmem>>, %arg4: memref<16x64xbf16, #tpu.memory_space<vmem>>, %arg5: memref<16x1xf32, #tpu.memory_space<vmem>>, %arg6: memref<8x64xbf16, #tpu.memory_space<vmem>>, %arg7: memref<8x1xf32, #tpu.memory_space<vmem>>, %arg8: memref<8x1xf32, #tpu.memory_space<vmem>>, %arg9: memref<8x1xf32, #tpu.memory_space<vmem>>, %arg10: memref<8x1xf32, #tpu.memory_space<vmem>>, %arg11: memref<1x1xf32, #tpu.memory_space<vmem>>, %arg12: memref<2048x128xf32, #tpu.memory_space<vmem>>, %arg13: memref<1x1x128xf32, #tpu.memory_space<vmem>>) attributes {dimension_semantics = [#tpu.dimension_semantics<parallel>], iteration_bounds = array<i64: 2>, scalar_prefetch = 0 : i64, scratch_operands = 0 : i64, tpu.core_type = #tpu.core_type<tc>, window_params = [{transform_indices = @transform_0, window_bounds = array<i64: 1, 8, 2048>}, {pipeline_mode = #tpu.pipeline_mode<synchronous>, transform_indices = @transform_1, window_bounds = array<i64: 16, 64>}, {pipeline_mode = #tpu.pipeline_mode<synchronous>, transform_indices = @transform_2, window_bounds = array<i64: 16, 1>}, {pipeline_mode = #tpu.pipeline_mode<synchronous>, transform_indices = @transform_3, window_bounds = array<i64: 16, 64>}, {pipeline_mode = #tpu.pipeline_mode<synchronous>, transform_indices = @transform_4, window_bounds = array<i64: 16, 1>}, {pipeline_mode = #tpu.pipeline_mode<synchronous>, transform_indices = @transform_5, window_bounds = array<i64: 8, 64>}, {pipeline_mode = #tpu.pipeline_mode<synchronous>, transform_indices = @transform_6, window_bounds = array<i64: 8, 1>}, {pipeline_mode = #tpu.pipeline_mode<synchronous>, transform_indices = @transform_7, window_bounds = array<i64: 8, 1>}, {pipeline_mode = #tpu.pipeline_mode<synchronous>, transform_indices = @transform_8, window_bounds = array<i64: 8, 1>}, {pipeline_mode = #tpu.pipeline_mode<synchronous>, transform_indices = @transform_9, window_bounds = array<i64: 8, 1>}, {pipeline_mode = #tpu.pipeline_mode<synchronous>, transform_indices = @transform_10, window_bounds = array<i64: 1, 1>}, {pipeline_mode = #tpu.pipeline_mode<synchronous>, transform_indices = @transform_11, window_bounds = array<i64: 2048, 128>}, {transform_indices = @transform_12, window_bounds = array<i64: 1, 1, 128>}]} {
    %c0 = arith.constant 0 : index
    %c0_0 = arith.constant 0 : index
    %c0_1 = arith.constant 0 : index
    %0 = vector.load %arg1[%c0, %c0_0, %c0_1] : memref<1x8x2048xbf16, #tpu.memory_space<vmem>>, vector<1x8x2048xbf16>
    %1 = vector.shape_cast %0 : vector<1x8x2048xbf16> to vector<8x2048xbf16>
    %cst = arith.constant 0.000000e+00 : f32
    %2 = vector.broadcast %cst : f32 to vector<1x2048xf32>
    %c0_2 = arith.constant 0 : index
    %c0_3 = arith.constant 0 : index
    %3 = vector.load %arg2[%c0_2, %c0_3] : memref<16x64xbf16, #tpu.memory_space<vmem>>, vector<16x64xbf16>
    %c0_4 = arith.constant 0 : index
    %c0_5 = arith.constant 0 : index
    %4 = vector.load %arg3[%c0_4, %c0_5] : memref<16x1xf32, #tpu.memory_space<vmem>>, vector<16x1xf32>
    %5 = vector.shape_cast %1 : vector<8x2048xbf16> to vector<8x1x2048xbf16>
    %6 = vector.shape_cast %1 : vector<8x2048xbf16> to vector<1x8x2048xbf16>
    %7 = vector.broadcast %5 : vector<8x1x2048xbf16> to vector<8x8x2048xbf16>
    %8 = vector.broadcast %6 : vector<1x8x2048xbf16> to vector<8x8x2048xbf16>
    %9 = arith.mulf %7, %8 : vector<8x8x2048xbf16>
    %10 = vector.shape_cast %9 : vector<8x8x2048xbf16> to vector<64x2048xbf16>
    %cst_6 = arith.constant dense<0.000000e+00> : vector<16x2048xf32>
    %11 = tpu.matmul %3, %10, %cst_6 {dimension_numbers = #tpu.dot_dimension_numbers<[1], [0], [0], [1], [0, 0, 1, 1], [], []>} : vector<16x64xbf16>, vector<64x2048xbf16>, vector<16x2048xf32> -> vector<16x2048xf32>
    %12 = vector.broadcast %4 : vector<16x1xf32> to vector<16x2048xf32>
    %13 = arith.addf %11, %12 : vector<16x2048xf32>
    %cst_7 = arith.constant 0.000000e+00 : f32
    %14 = vector.broadcast %cst_7 : f32 to vector<16x2048xf32>
    %15 = arith.maximumf %13, %14 : vector<16x2048xf32>
    %16 = vector.extract_strided_slice %15 {offsets = [0, 0], sizes = [8, 2048], strides = [1, 1]} : vector<16x2048xf32> to vector<8x2048xf32>
    %17 = vector.extract_strided_slice %15 {offsets = [8, 0], sizes = [8, 2048], strides = [1, 1]} : vector<16x2048xf32> to vector<8x2048xf32>
    %18 = arith.truncf %17 : vector<8x2048xf32> to vector<8x2048xbf16>
    %c0_8 = arith.constant 0 : index
    %c0_9 = arith.constant 0 : index
    %19 = vector.load %arg8[%c0_8, %c0_9] : memref<8x1xf32, #tpu.memory_space<vmem>>, vector<8x1xf32>
    %20 = vector.broadcast %19 : vector<8x1xf32> to vector<8x2048xf32>
    %21 = arith.mulf %16, %20 : vector<8x2048xf32>
    %cst_10 = arith.constant dense<0.000000e+00> : vector<2048xf32>
    %22 = vector.multi_reduction <add>, %21, %cst_10 [0] : vector<8x2048xf32> to vector<2048xf32>
    %23 = vector.shape_cast %22 : vector<2048xf32> to vector<1x2048xf32>
    %24 = arith.addf %2, %23 : vector<1x2048xf32>
    %c0_11 = arith.constant 0 : index
    %c0_12 = arith.constant 0 : index
    %25 = vector.load %arg4[%c0_11, %c0_12] : memref<16x64xbf16, #tpu.memory_space<vmem>>, vector<16x64xbf16>
    %c0_13 = arith.constant 0 : index
    %c0_14 = arith.constant 0 : index
    %26 = vector.load %arg5[%c0_13, %c0_14] : memref<16x1xf32, #tpu.memory_space<vmem>>, vector<16x1xf32>
    %27 = vector.shape_cast %1 : vector<8x2048xbf16> to vector<8x1x2048xbf16>
    %28 = vector.shape_cast %18 : vector<8x2048xbf16> to vector<1x8x2048xbf16>
    %29 = vector.broadcast %27 : vector<8x1x2048xbf16> to vector<8x8x2048xbf16>
    %30 = vector.broadcast %28 : vector<1x8x2048xbf16> to vector<8x8x2048xbf16>
    %31 = arith.mulf %29, %30 : vector<8x8x2048xbf16>
    %32 = vector.shape_cast %31 : vector<8x8x2048xbf16> to vector<64x2048xbf16>
    %cst_15 = arith.constant dense<0.000000e+00> : vector<16x2048xf32>
    %33 = tpu.matmul %25, %32, %cst_15 {dimension_numbers = #tpu.dot_dimension_numbers<[1], [0], [0], [1], [0, 0, 1, 1], [], []>} : vector<16x64xbf16>, vector<64x2048xbf16>, vector<16x2048xf32> -> vector<16x2048xf32>
    %34 = vector.broadcast %26 : vector<16x1xf32> to vector<16x2048xf32>
    %35 = arith.addf %33, %34 : vector<16x2048xf32>
    %cst_16 = arith.constant 0.000000e+00 : f32
    %36 = vector.broadcast %cst_16 : f32 to vector<16x2048xf32>
    %37 = arith.maximumf %35, %36 : vector<16x2048xf32>
    %38 = vector.extract_strided_slice %37 {offsets = [0, 0], sizes = [8, 2048], strides = [1, 1]} : vector<16x2048xf32> to vector<8x2048xf32>
    %39 = vector.extract_strided_slice %37 {offsets = [8, 0], sizes = [8, 2048], strides = [1, 1]} : vector<16x2048xf32> to vector<8x2048xf32>
    %40 = arith.truncf %39 : vector<8x2048xf32> to vector<8x2048xbf16>
    %c0_17 = arith.constant 0 : index
    %c0_18 = arith.constant 0 : index
    %41 = vector.load %arg9[%c0_17, %c0_18] : memref<8x1xf32, #tpu.memory_space<vmem>>, vector<8x1xf32>
    %42 = vector.broadcast %41 : vector<8x1xf32> to vector<8x2048xf32>
    %43 = arith.mulf %38, %42 : vector<8x2048xf32>
    %cst_19 = arith.constant dense<0.000000e+00> : vector<2048xf32>
    %44 = vector.multi_reduction <add>, %43, %cst_19 [0] : vector<8x2048xf32> to vector<2048xf32>
    %45 = vector.shape_cast %44 : vector<2048xf32> to vector<1x2048xf32>
    %46 = arith.addf %24, %45 : vector<1x2048xf32>
    %c0_20 = arith.constant 0 : index
    %c0_21 = arith.constant 0 : index
    %47 = vector.load %arg6[%c0_20, %c0_21] : memref<8x64xbf16, #tpu.memory_space<vmem>>, vector<8x64xbf16>
    %c0_22 = arith.constant 0 : index
    %c0_23 = arith.constant 0 : index
    %48 = vector.load %arg7[%c0_22, %c0_23] : memref<8x1xf32, #tpu.memory_space<vmem>>, vector<8x1xf32>
    %49 = vector.shape_cast %1 : vector<8x2048xbf16> to vector<8x1x2048xbf16>
    %50 = vector.shape_cast %40 : vector<8x2048xbf16> to vector<1x8x2048xbf16>
    %51 = vector.broadcast %49 : vector<8x1x2048xbf16> to vector<8x8x2048xbf16>
    %52 = vector.broadcast %50 : vector<1x8x2048xbf16> to vector<8x8x2048xbf16>
    %53 = arith.mulf %51, %52 : vector<8x8x2048xbf16>
    %54 = vector.shape_cast %53 : vector<8x8x2048xbf16> to vector<64x2048xbf16>
    %cst_24 = arith.constant dense<0.000000e+00> : vector<8x2048xf32>
    %55 = tpu.matmul %47, %54, %cst_24 {dimension_numbers = #tpu.dot_dimension_numbers<[1], [0], [0], [1], [0, 0, 1, 1], [], []>} : vector<8x64xbf16>, vector<64x2048xbf16>, vector<8x2048xf32> -> vector<8x2048xf32>
    %56 = vector.broadcast %48 : vector<8x1xf32> to vector<8x2048xf32>
    %57 = arith.addf %55, %56 : vector<8x2048xf32>
    %cst_25 = arith.constant 0.000000e+00 : f32
    %58 = vector.broadcast %cst_25 : f32 to vector<8x2048xf32>
    %59 = arith.maximumf %57, %58 : vector<8x2048xf32>
    %c0_26 = arith.constant 0 : index
    %c0_27 = arith.constant 0 : index
    %60 = vector.load %arg10[%c0_26, %c0_27] : memref<8x1xf32, #tpu.memory_space<vmem>>, vector<8x1xf32>
    %61 = vector.broadcast %60 : vector<8x1xf32> to vector<8x2048xf32>
    %62 = arith.mulf %59, %61 : vector<8x2048xf32>
    %cst_28 = arith.constant dense<0.000000e+00> : vector<2048xf32>
    %63 = vector.multi_reduction <add>, %62, %cst_28 [0] : vector<8x2048xf32> to vector<2048xf32>
    %64 = vector.shape_cast %63 : vector<2048xf32> to vector<1x2048xf32>
    %65 = arith.addf %46, %64 : vector<1x2048xf32>
    %c0_29 = arith.constant 0 : index
    %c0_30 = arith.constant 0 : index
    %66 = vector.load %arg12[%c0_29, %c0_30] : memref<2048x128xf32, #tpu.memory_space<vmem>>, vector<2048x128xf32>
    %cst_31 = arith.constant dense<0.000000e+00> : vector<1x128xf32>
    %67 = tpu.matmul %65, %66, %cst_31 {dimension_numbers = #tpu.dot_dimension_numbers<[1], [0], [0], [1], [0, 0, 1, 1], [], []>} : vector<1x2048xf32>, vector<2048x128xf32>, vector<1x128xf32> -> vector<1x128xf32>
    %c0_32 = arith.constant 0 : index
    %c0_33 = arith.constant 0 : index
    %68 = vector.load %arg11[%c0_32, %c0_33] : memref<1x1xf32, #tpu.memory_space<vmem>>, vector<1x1xf32>
    %69 = vector.broadcast %68 : vector<1x1xf32> to vector<1x128xf32>
    %70 = arith.addf %67, %69 : vector<1x128xf32>
    %71 = vector.shape_cast %70 : vector<1x128xf32> to vector<1x1x128xf32>
    %c0_34 = arith.constant 0 : index
    %c0_35 = arith.constant 0 : index
    %c0_36 = arith.constant 0 : index
    %72 = vector.load %arg13[%c0_34, %c0_35, %c0_36] : memref<1x1x128xf32, #tpu.memory_space<vmem>>, vector<1x1x128xf32>
    tpu.vector_store %arg13[%c0_34, %c0_35, %c0_36], %71 {strides = array<i32>} : memref<1x1x128xf32, #tpu.memory_space<vmem>>, vector<1x1x128xf32>,
    return
  }
  func.func @transform_0(%arg0: i32) -> (i32, i32, i32) {
    %c0_i32 = arith.constant 0 : i32
    %c0_i32_0 = arith.constant 0 : i32
    %c0_i32_1 = arith.constant 0 : i32
    return %arg0, %c0_i32, %c0_i32_0 : i32, i32, i32
  }
  func.func @transform_1(%arg0: i32) -> (i32, i32) {
    %c0_i32 = arith.constant 0 : i32
    %c0_i32_0 = arith.constant 0 : i32
    %c0_i32_1 = arith.constant 0 : i32
    return %c0_i32, %c0_i32_0 : i32, i32
  }
  func.func @transform_2(%arg0: i32) -> (i32, i32) {
    %c0_i32 = arith.constant 0 : i32
    %c0_i32_0 = arith.constant 0 : i32
    %c0_i32_1 = arith.constant 0 : i32
    return %c0_i32, %c0_i32_0 : i32, i32
  }
  func.func @transform_3(%arg0: i32) -> (i32, i32) {
    %c0_i32 = arith.constant 0 : i32
    %c0_i32_0 = arith.constant 0 : i32
    %c0_i32_1 = arith.constant 0 : i32
    return %c0_i32, %c0_i32_0 : i32, i32
  }
  func.func @transform_4(%arg0: i32) -> (i32, i32) {
    %c0_i32 = arith.constant 0 : i32
    %c0_i32_0 = arith.constant 0 : i32
    %c0_i32_1 = arith.constant 0 : i32
    return %c0_i32, %c0_i32_0 : i32, i32
  }
  func.func @transform_5(%arg0: i32) -> (i32, i32) {
    %c0_i32 = arith.constant 0 : i32
    %c0_i32_0 = arith.constant 0 : i32
    %c0_i32_1 = arith.constant 0 : i32
    return %c0_i32, %c0_i32_0 : i32, i32
  }
  func.func @transform_6(%arg0: i32) -> (i32, i32) {
    %c0_i32 = arith.constant 0 : i32
    %c0_i32_0 = arith.constant 0 : i32
    %c0_i32_1 = arith.constant 0 : i32
    return %c0_i32, %c0_i32_0 : i32, i32
  }
  func.func @transform_7(%arg0: i32) -> (i32, i32) {
    %c0_i32 = arith.constant 0 : i32
    %c0_i32_0 = arith.constant 0 : i32
    %c0_i32_1 = arith.constant 0 : i32
    return %c0_i32, %c0_i32_0 : i32, i32
  }
  func.func @transform_8(%arg0: i32) -> (i32, i32) {
    %c0_i32 = arith.constant 0 : i32
    %c0_i32_0 = arith.constant 0 : i32
    %c0_i32_1 = arith.constant 0 : i32
    return %c0_i32, %c0_i32_0 : i32, i32
  }
  func.func @transform_9(%arg0: i32) -> (i32, i32) {
    %c0_i32 = arith.constant 0 : i32
    %c0_i32_0 = arith.constant 0 : i32
    %c0_i32_1 = arith.constant 0 : i32
    return %c0_i32, %c0_i32_0 : i32, i32
  }
  func.func @transform_10(%arg0: i32) -> (i32, i32) {
    %c0_i32 = arith.constant 0 : i32
    %c0_i32_0 = arith.constant 0 : i32
    %c0_i32_1 = arith.constant 0 : i32
    return %c0_i32, %c0_i32_0 : i32, i32
  }
  func.func @transform_11(%arg0: i32) -> (i32, i32) {
    %c0_i32 = arith.constant 0 : i32
    %c0_i32_0 = arith.constant 0 : i32
    %c0_i32_1 = arith.constant 0 : i32
    return %c0_i32, %c0_i32_0 : i32, i32
  }
  func.func @transform_12(%arg0: i32) -> (i32, i32, i32) {
    %c0_i32 = arith.constant 0 : i32
    %c0_i32_0 = arith.constant 0 : i32
    %c0_i32_1 = arith.constant 0 : i32
    return %arg0, %c0_i32, %c0_i32_0 : i32, i32, i32
  }
}

</mosaic_0001>

<bundles_post_ra>
// kernel: tpu_custom_call.1
= control target key start
LH: loop header
LB: loop body
LE: loop exit
PB: predicated region body
PF: predicated region fallthrough
CT: control target
= control target key end

     0   :  { %s7365_s0 = inlined_call_operand.hbm [shape: bf16[2,8,2048], index: 0, kind: input, shape index: {}]   ;;  %s7366_s1 = inlined_call_operand.vmem [shape: bf16[16,64], index: 1, kind: input, shape index: {}]   ;;  %s7367_s2 = inlined_call_operand.vmem [shape: f32[16,1], index: 2, kind: input, shape index: {}]   ;;  %s7368_s3 = inlined_call_operand.vmem [shape: bf16[16,64], index: 3, kind: input, shape index: {}]   ;;  %s7369_s4 = inlined_call_operand.vmem [shape: f32[16,1], index: 4, kind: input, shape index: {}]   ;;  %s7370_s5 = inlined_call_operand.vmem [shape: bf16[8,64], index: 5, kind: input, shape index: {}]   ;;  %s7371_s6 = inlined_call_operand.vmem [shape: f32[8,1], index: 6, kind: input, shape index: {}]   ;;  %s7372_s7 = inlined_call_operand.vmem [shape: f32[8,1], index: 7, kind: input, shape index: {}]   ;;  %s7373_s8 = inlined_call_operand.vmem [shape: f32[8,1], index: 8, kind: input, shape index: {}]   ;;  %s7374_s9 = inlined_call_operand.vmem [shape: f32[8,1], index: 9, kind: input, shape index: {}]   ;;  %s7375_s10 = inlined_call_operand.<no memory space> [shape: f32[1,1], index: 10, kind: input, shape index: {}]   ;;  %s7376_s11 = inlined_call_operand.hbm [shape: f32[2048,128], index: 11, kind: input, shape index: {}]   ;;  %s7377_s12 = inlined_call_operand.hbm [shape: f32[2,1,128], index: 12, kind: output, shape index: {}]  }
   0x1   :  { %7587 = sst [smem:[#allocation132_spill]] %s7376_s11  ;;  %v17_v0 = vstv %s7375_s10 }
   0x2   :  { %18 = vst [vmem:[#allocation2] sm:$0x1] %v17_v0 }
   0x3   :  { %19 = vsyncpa [#allocation4], 0 }
   0x4   :  { %21 = vsyncpa [#allocation4 + $0x1], 0 }
   0x5   :  { %22 = vsyncpa [#allocation7], 0 }
   0x6   :  { %23 = vsyncpa [#allocation5], 0 }
   0x7   :  { %25 = vsyncpa [#allocation5 + $0x1], 0  ;;  %s5205_s23 = smov 0   ;;  %s5207_s24 = smov 0  }
   0x8   :  { %s5209_s25 = smov 0   ;;  %s5211_s26 = smov 0  }
   0x9 LB: > { %7588 = sst [smem:[#allocation12_spill]] %s5127_s25  ;;  %s5229_s29 = sadd.s32 4294967295, %s5131_s26   ;;  %s5131_s26 = sphi %s5211_s26, %s7939_s26   ;;  %s5127_s25 = sphi %s5209_s25, %s7944_s25   ;;  %s5123_s24 = sphi %s5207_s24, %s7943_s24   ;;  %s5119_s23 = sphi %s5205_s23, %s7942_s23  }
   0xa   : > { %s7589_s11 = sld [smem:[#allocation132_spill]]  ;;  %p4854_p0 = scmp.ge.s32.totalorder %s5131_s26, 1 }
   0xb   : > { %p52_p1 = scmp.eq.s32.totalorder %s5229_s29, 0  ;;  %p319_p2 = scmp.lt.s32.totalorder %s5131_s26, 3 }
   0xc   : > { %s5133_s13 = smov [#allocation6]   ;;  %s5134_s15 = smov 128  }
   0xd   : > { %p5234_p3 = pnand %p4854_p0, %p319_p2  ;;  %s362_s14 = sshll.u32 %s5133_s13, 4  ;;  %s363_s14 = int_to_ptr.vmem [resolvable:$true] %s362_s14 }
   0xe   : > { %s5135_s16 = smov 8   ;;  %s4853_s17 = sadd.s32 4294967294, %s5131_s26  }
   0xf   : > { %p4940_p4 = pneg %p5234_p3  ;;  %s5245_s18 = sadd.s32 1, %s5131_s26  }
  0x10   : > { %s360_s28 = sshll.u32 %s7589_s11, 4  ;;  %7591 = sst [smem:[#allocation13_spill]] %s5245_s18  ;;  %s361_s28 = int_to_ptr.hbm [resolvable:$true] %s360_s28 }
  0x11   : > { %p4941_p6 = pnand %p4940_p4, %p52_p1  ;;  %s38_s19 = sadd.s32 1, %s5127_s25 }
  0x12   : > { %s35_s20 = ssub.s32 %s5131_s26, %s5245_s18  ;;  %p45_p7 = scmp.ne.s32.totalorder %s5127_s25, %s5123_s24 }
  0x13   : > { %4943 = dma.hbm_to_vmem [thread:$0]  (!%p4941_p6), %s361_s28, 32768, %s363_s14, [#allocation7], %s5134_s15, %s5134_s15, %s5135_s16  }
  0x14   : > { %p36_p8 = scmp.eq.s32.totalorder %s35_s20, 0  ;;  %p46_p9 = scmp.eq.s32.totalorder %s5131_s26, 0 }
  0x15   : > { %p51_p10 = scmp.ne.s32.totalorder %s5123_s24, %s5119_s23  ;;  %p306_p11 = scmp.eq.s32.totalorder %s5229_s29, 1 }
  0x16   : > { %s5257_s21 = scalar_select %p36_p8, %s5127_s25, %s38_s19  }
  0x17   : > { %p5261_p12 = por %p52_p1, %p51_p10  ;;  %p5265_p13 = por %p306_p11, %p45_p7 }
  0x18   : > { %7592 = sst [smem:[#allocation14_spill]] %s5257_s21  ;;  %p312_p0 = scmp.eq.s32.totalorder %s4853_s17, 1 }
  0x19   : > { %p47_p2 = por %p46_p9, %p45_p7  ;;  %s376_s27 = sand.u32 1, %s5127_s25  }
  0x1a   : > { %p5270_p4 = por %p312_p0, %p51_p10  ;;  %p4953_p6 = scmp.lt.s32.totalorder %s5131_s26, 2 }
  0x1b   : > { %s4857_s13 = sshll.u32 %s376_s27, 6  ;;  %s4929_s14 = sshll.u32 %s5131_s26, 6 }
  0x1c   : > { %s7595_s28 = scalar_select %p5270_p4, 1, 0 }
  0x1d   : > { %s385_s19 = scalar_lea.hbm %s7365_s0, %s4929_s14  ;;  %s380_s11 = scalar_lea.vmem [#allocation3], %s4857_s13 }
  0x1e   : > { %7596 = sst [smem:[#allocation15_spill]] %s7595_s28  ;;  %s387_s20 = sshll.u32 %s385_s19, 4  ;;  %s388_s20 = int_to_ptr.hbm [resolvable:$true] %s387_s20 }
  0x1f   : > { %s389_s21 = sshll.u32 %s380_s11, 4  ;;  %p5279_p8 = pnand %p4953_p6, %p47_p2  ;;  %s390_s21 = int_to_ptr.vmem [resolvable:$true] %s389_s21 }
  0x20   : > { %s377_s25 = scalar_lea.sflag [#allocation4], %s376_s27  ;;  %s5031_s18 = sshra.s32 %s388_s20, 4  ;;  %s5032_s18 = int_to_ptr.hbm [resolvable:$true] %s5031_s18 }
  0x21   : > { %s5033_s28 = scalar_lea.hbm %s5032_s18, 64  ;;  %p5035_p9 = pneg %p5279_p8 }
  0x22   : > { %p5034_p7 = scmp.ne.s32.totalorder %s5032_s18, %s5033_s28  ;;  %s5038_s11 = scalar_lea.hbm %s7365_s0, 128 }
  0x23   : > { %p5039_p0 = scmp.lt.s32.totalorder %s5032_s18, %s7365_s0  ;;  %p5040_p2 = scmp.lt.s32.totalorder %s5038_s11, %s5033_s28 }
  0x24   : > { %p5036_p10 = pnand %p5035_p9, %p5034_p7 }
  0x25   : > { %p5041_p6 = por %p5040_p2, %p5039_p0 }
  0x26   : > { %p5037_p11 = pneg %p5036_p10 }
  0x28   : > { %p5042_p5 = pnand %p5041_p6, %p5037_p11 }
  0x2a   : > { %5045 = shalt.err (!%p5042_p5)
}
  0x2b   : > { %4947 = dma.hbm_to_vmem [thread:$0]  (!%p5279_p8), %s388_s20, 1024, %s390_s21, %s377_s25  }
  0x2c   : > { %398 = sbr.rel (%p5234_p3) target bundleno = 998 (0x3e6), region = 68 }
  0x31   : > { %s5296_s27 = sand.u32 1, %s5123_s24  }
  0x32   : > { %s4861_s19 = sshll.u32 %s5296_s27, 6  ;;  %s401_s14 = scalar_lea.sflag [#allocation4], %s5296_s27 }
  0x33   : > { %s5300_s15 = scalar_lea.vmem [#allocation3], %s4861_s19 }
  0x34   : > { %5106 = dma.done.wait (%p5261_p12), %s401_s14, 1024  }
  0x35   : > { %5108 = vsyncadd (%p5261_p12), %s401_s14, 4294966272 }
  0x36   : > { %5110 = dma.done.wait (%p52_p1), [#allocation7], 32768  }
  0x37   : > { %5112 = vsyncadd (%p52_p1), [#allocation7], 4294934528  ;;  %vm524_vm0 = vcmask 1041409   ;;  %vm526_vm1 = vcmask 1043459   ;;  %vm530_vm2 = vcmask 1045509   ;;  %vm532_vm3 = vcmask 1046528  }
  0x38   : > { %vm572_vm4 = vcmask 1044483   ;;  %vm576_vm5 = vcmask 1046529   ;;  %vm578_vm6 = vcmask 1046531   ;;  %vm489_vm7 = vcmask 1042434   ;;  %v5311_v1 = vld [vmem:[%s5300_s15] sm:$0xff]  ;;  %v452_v2 = vld [vmem:[%s5300_s15 + $0x8] sm:$0xff] }
  0x39   : > { %v5315_v3 = vld [vmem:[%s5300_s15 + $0x10] sm:$0xff]  ;;  %vm485_vm8 = vcmask 1040384   ;;  %vm495_vm9 = vcmask 1044484   ;;  %vm499_vm10 = vcmask 1046534   ;;  %vm551_vm11 = vcmask 1043458   ;;  %v5318_v4 = vld [vmem:[%s5300_s15 + $0x18] sm:$0xff] }
  0x3a   : > { %v455_v5 = vld [vmem:[%s5300_s15 + $0x20] sm:$0xff]  ;;  %v456_v6 = vld [vmem:[%s5300_s15 + $0x28] sm:$0xff]  ;;  %v5323_v7 = vrot.slane %v5311_v1, 3  ;;  %v5325_v8 = vrot.slane %v452_v2, 6  ;;  %v5327_v9 = vrot.slane %v452_v2, 1  ;;  %v457_v10 = vld [vmem:[%s5300_s15 + $0x30] sm:$0xff]  ;;  %v5385_v35 = vunpack.c.l.bf16 %v5311_v1 }
  0x3b   : > { %v458_v11 = vld [vmem:[%s5300_s15 + $0x38] sm:$0xff]  ;;  %v5332_v12 = vrot.slane %v5315_v3, 4  ;;  %v5335_v13 = vrot.slane %v5315_v3, 7  ;;  %v5338_v14 = vrot.slane %v5318_v4, 2  ;;  %v5341_v15 = vrot.slane %v5318_v4, 5  ;;  %s449_s30 = scalar_lea.vmem [#allocation8], %s5296_s27 }
  0x3c   : > { %vm555_vm12 = vcmask 1045504   ;;  %vm528_vm13 = vcmask 1042433   ;;  %v5343_v16 = vrot.slane %v455_v5, 3  ;;  %v5345_v17 = vrot.slane %v456_v6, 6  ;;  %s4775_s18 = sshll.u32 %s449_s30, 4  ;;  %s4765_s22 = scalar_lea.sflag [#allocation5], %s5296_s27  ;;  %s4776_s18 = int_to_ptr.vmem [resolvable:$true] %s4775_s18 }
  0x3d   : > { %v5347_v18 = vrot.slane %v456_v6, 1  ;;  %v5349_v19 = vrot.slane %v457_v10, 4  ;;  %v5351_v20 = vrot.slane %v457_v10, 7  ;;  %v5353_v21 = vrot.slane %v458_v11, 2  ;;  %s5081_s11 = scalar_lea.hbm %s7377_s12, 2 }
  0x3e   : > { %v5355_v22 = vrot.slane %v458_v11, 5  ;;  %v570_v23 = vsel %vm526_vm1, %v5311_v1, %v5323_v7  ;;  %v571_v24 = vsel %vm530_vm2, %v5325_v8, %v5327_v9  ;;  %v574_v25 = vsel %vm532_vm3, %v5335_v13, %v5332_v12 }
  0x3f   : > { %v575_v26 = vsel %vm524_vm0, %v5338_v14, %v5341_v15  ;;  %v582_v27 = vsel %vm526_vm1, %v455_v5, %v5343_v16  ;;  %v573_v28 = vsel %vm572_vm4, %v570_v23, %v571_v24  ;;  %v583_v30 = vsel %vm530_vm2, %v5345_v17, %v5347_v18 }
  0x40   : > { %v577_v29 = vsel %vm576_vm5, %v575_v26, %v574_v25  ;;  %v585_v31 = vsel %vm532_vm3, %v5351_v20, %v5349_v19  ;;  %v584_v33 = vsel %vm572_vm4, %v582_v27, %v583_v30  ;;  %v586_v34 = vsel %vm524_vm0, %v5353_v21, %v5355_v22 }
  0x41   : > { %v579_v32 = vsel %vm578_vm6, %v573_v28, %v577_v29  ;;  %v587_v37 = vsel %vm576_vm5, %v586_v34, %v585_v31  ;;  %v5389_v38 = vunpack.c.h.bf16 %v5311_v1  ;;  %v5391_v39 = vunpack.c.l.bf16 %v452_v2 }
  0x42   : > { %v581_v36 = vrot.slane %v579_v32, 3  ;;  %v5394_v40 = vsel %vm578_vm6, %v584_v33, %v587_v37  ;;  %v5396_v41 = vunpack.c.h.bf16 %v452_v2  ;;  %v549_v42 = vsel %vm489_vm7, %v5311_v1, %v5323_v7 }
  0x43   : > { %v550_v43 = vsel %vm495_vm9, %v5325_v8, %v5327_v9  ;;  %v553_v47 = vsel %vm499_vm10, %v5332_v12, %v5335_v13  ;;  %v554_v48 = vsel %vm485_vm8, %v5338_v14, %v5341_v15  ;;  %vm557_vm14 = vcmask 1045506  }
  0x44   : > { %v605_v44 = vunpack.i.h.s16 %v581_v36  ;;  %v5404_v45 = vpack.i.b16 %v581_v36, %v581_v36  ;;  %v552_v46 = vsel %vm551_vm11, %v549_v42, %v550_v43  ;;  %v525_v49 = vsel %vm524_vm0, %v5311_v1, %v5323_v7 }
  0x45   : > { %v527_v50 = vsel %vm526_vm1, %v5325_v8, %v5327_v9  ;;  %v531_v51 = vsel %vm530_vm2, %v5332_v12, %v5335_v13  ;;  %v556_v57 = vsel %vm555_vm12, %v554_v48, %v553_v47  ;;  %v533_v59 = vsel %vm532_vm3, %v5341_v15, %v5338_v14 }
  0x46   : > { %v5422_v52 = vpack.i.b16 %v605_v44, %v605_v44  ;;  %v719_v53 = vperm.slane %v5404_v45, 0  ;;  %v720_v54 = vperm.slane %v5404_v45, 1  ;;  %v721_v55 = vperm.slane %v5404_v45, 2 }
  0x47   : > { %v722_v56 = vperm.slane %v5404_v45, 3  ;;  %v529_v58 = vsel %vm528_vm13, %v525_v49, %v527_v50  ;;  %vm534_vm15 = vcmask 1046533   ;;  %vm7392_vm4 = vcmask 1044481  }
  0x48   : > { %v735_v60 = vperm.slane %v5422_v52, 0  ;;  %v736_v61 = vperm.slane %v5422_v52, 1  ;;  %v1136_v62 = vpack.i.b16 %v719_v53, %v719_v53  ;;  %v1140_v63 = vpack.i.b16 %v720_v54, %v720_v54 }
  0x49   : > { %v737_v0 = vperm.slane %v5422_v52, 2  ;;  %v738_v2 = vperm.slane %v5422_v52, 3  ;;  %v1144_v5 = vpack.i.b16 %v721_v55, %v721_v55  ;;  %v1148_v6 = vpack.i.b16 %v722_v56, %v722_v56 }
  0x4a   : > { %v1138_v10 = vperm.slane %v1136_v62, 0  ;;  %v1142_v11 = vperm.slane %v1140_v63, 0  ;;  %v1200_v23 = vpack.i.b16 %v735_v60, %v735_v60  ;;  %v1204_v24 = vpack.i.b16 %v736_v61, %v736_v61 }
  0x4b   : > { %v1146_v25 = vperm.slane %v1144_v5, 0  ;;  %v1150_v26 = vperm.slane %v1148_v6, 0  ;;  %v1208_v27 = vpack.i.b16 %v737_v0, %v737_v0  ;;  %v1212_v28 = vpack.i.b16 %v738_v2, %v738_v2 }
  0x4c   : > { %v1202_v29 = vperm.slane %v1200_v23, 0  ;;  %v1206_v30 = vperm.slane %v1204_v24, 0  ;;  %v5437_v31 = vunpack.c.l.bf16 %v1138_v10  ;;  %v5439_v32 = vunpack.c.l.bf16 %v1142_v11 }
  0x4d   : > { %v1210_v33 = vperm.slane %v1208_v27, 0  ;;  %v1214_v34 = vperm.slane %v1212_v28, 0  ;;  %v5441_v36 = vunpack.c.l.bf16 %v1146_v25  ;;  %v5443_v37 = vunpack.c.l.bf16 %v1150_v26 }
  0x4e   : > { %v5445_v42 = vunpack.c.l.bf16 %v1202_v29  ;;  %v5447_v43 = vunpack.c.l.bf16 %v1206_v30  ;;  %v1503_v44 = vmul.f32 %v5385_v35, %v5437_v31  ;;  %v1504_v47 = vmul.f32 %v5389_v38, %v5439_v32 }
  0x4f   : > { %7598 = vst [vmem:[#allocation16_spill] sm:$0xff] %v5441_v36  ;;  %v5453_v48 = vunpack.c.l.bf16 %v1210_v33  ;;  %v5455_v49 = vunpack.c.l.bf16 %v1214_v34  ;;  %v1505_v50 = vmul.f32 %v5391_v39, %v5441_v36  ;;  %v1506_v53 = vmul.f32 %v5396_v41, %v5443_v37 }
  0x50   : > { %7599 = vst [vmem:[#allocation17_spill] sm:$0xff] %v5443_v37  ;;  %v1519_v54 = vmul.f32 %v5385_v35, %v5445_v42  ;;  %v1520_v55 = vmul.f32 %v5389_v38, %v5447_v43  ;;  %v1583_v56 = vpack.c.bf16 %v1504_v47, %v1503_v44  ;;  %v558_v60 = vsel %vm557_vm14, %v552_v46, %v556_v57 }
  0x51   : > { %7600 = vst [vmem:[#allocation18_spill] sm:$0xff] %v5453_v48  ;;  %v1521_v61 = vmul.f32 %v5391_v39, %v5453_v48  ;;  %v1522_v62 = vmul.f32 %v5396_v41, %v5455_v49  ;;  %v1584_v63 = vpack.c.bf16 %v1506_v53, %v1505_v50  ;;  %v560_v0 = vrot.slane %v558_v60, 2 }
  0x52   : > { %7601 = vst [vmem:[#allocation19_spill] sm:$0xff] %v5455_v49  ;;  %v1591_v2 = vpack.c.bf16 %v1520_v55, %v1519_v54  ;;  %v1774_v5 = vunpack.c.l.b16 %v1583_v56  ;;  %v1775_v6 = vunpack.c.h.b16 %v1583_v56  ;;  %v535_v10 = vsel %vm534_vm15, %v531_v51, %v533_v59 }
  0x53   : > { %v1592_v11 = vpack.c.bf16 %v1522_v62, %v1521_v61  ;;  %v1776_v23 = vunpack.c.l.b16 %v1584_v63  ;;  %v1777_v24 = vunpack.c.h.b16 %v1584_v63  ;;  %v601_v25 = vunpack.i.h.s16 %v560_v0 }
  0x54   : > { %v1790_v26 = vunpack.c.l.b16 %v1591_v2  ;;  %v1791_v27 = vunpack.c.h.b16 %v1591_v2  ;;  %v5471_v46 = vpack.i.b16 %v560_v0, %v560_v0  ;;  %v537_v57 = vsel %vm7392_vm4, %v529_v58, %v535_v10 }
  0x55   : > { %v1792_v28 = vunpack.c.l.b16 %v1592_v11  ;;  %v1793_v29 = vunpack.c.h.b16 %v1592_v11  ;;  %v5474_v30 = vpack.i.b16 %v601_v25, %v601_v25  ;;  %v539_v33 = vrot.slane %v537_v57, 1 }
  0x56   : > { %v1854_v34 = vpack.c.b16 %v1790_v26, %v1774_v5  ;;  %v1855_v44 = vpack.c.b16 %v1791_v27, %v1775_v6  ;;  %v687_v47 = vperm.slane %v5471_v46, 0  ;;  %v688_v51 = vperm.slane %v5471_v46, 1 }
  0x57   : > { %v1856_v59 = vpack.c.b16 %v1792_v28, %v1776_v23  ;;  %v1857_v50 = vpack.c.b16 %v1793_v29, %v1777_v24  ;;  %v703_v53 = vperm.slane %v5474_v30, 0  ;;  %v704_v54 = vperm.slane %v5474_v30, 1 }
  0x58   : > { %1942 = vmatpush.bf16.msra.mxu0 %v1854_v34  ;;  %1956 = vmatpush.bf16.msra.mxu1 %v1855_v44  ;;  %v1008_v58 = vpack.i.b16 %v687_v47, %v687_v47  ;;  %v1012_v55 = vpack.i.b16 %v688_v51, %v688_v51  ;;  %v689_v56 = vperm.slane %v5471_v46, 2  ;;  %v690_v60 = vperm.slane %v5471_v46, 3 }
  0x59   : > { %1970 = vmatpush.bf16.msra.mxu2 %v1856_v59  ;;  %1984 = vmatpush.bf16.msra.mxu3 %v1857_v50  ;;  %v1072_v61 = vpack.i.b16 %v703_v53, %v703_v53  ;;  %v1076_v62 = vpack.i.b16 %v704_v54, %v704_v54  ;;  %v705_v63 = vperm.slane %v5474_v30, 2  ;;  %v706_v0 = vperm.slane %v5474_v30, 3 }
  0x5a   : > { %v1010_v2 = vperm.slane %v1008_v58, 0  ;;  %v1014_v5 = vperm.slane %v1012_v55, 0  ;;  %v1016_v6 = vpack.i.b16 %v689_v56, %v689_v56  ;;  %v1020_v10 = vpack.i.b16 %v690_v60, %v690_v60 }
  0x5b   : > { %v1074_v11 = vperm.slane %v1072_v61, 0  ;;  %v1078_v23 = vperm.slane %v1076_v62, 0  ;;  %v1080_v24 = vpack.i.b16 %v705_v63, %v705_v63  ;;  %v1084_v25 = vpack.i.b16 %v706_v0, %v706_v0 }
  0x5c   : > { %v5484_v26 = vunpack.c.l.bf16 %v1010_v2  ;;  %v5486_v27 = vunpack.c.l.bf16 %v1014_v5  ;;  %v1018_v57 = vperm.slane %v1016_v6, 0  ;;  %v1022_v28 = vperm.slane %v1020_v10, 0 }
  0x5d   : > { %v5488_v29 = vunpack.c.l.bf16 %v1074_v11  ;;  %v5490_v34 = vunpack.c.l.bf16 %v1078_v23  ;;  %v1082_v44 = vperm.slane %v1080_v24, 0  ;;  %v1086_v47 = vperm.slane %v1084_v25, 0 }
  0x5e   : > { %v1471_v51 = vmul.f32 %v5385_v35, %v5484_v26  ;;  %v1472_v59 = vmul.f32 %v5389_v38, %v5486_v27  ;;  %v5496_v50 = vunpack.c.l.bf16 %v1018_v57  ;;  %v5498_v53 = vunpack.c.l.bf16 %v1022_v28 }
  0x5f   : > { %v1487_v54 = vmul.f32 %v5385_v35, %v5488_v29  ;;  %v1488_v58 = vmul.f32 %v5389_v38, %v5490_v34  ;;  %v5504_v55 = vunpack.c.l.bf16 %v1082_v44  ;;  %v5506_v56 = vunpack.c.l.bf16 %v1086_v47 }
  0x60   : > { %7602 = vst [vmem:[#allocation20_spill] sm:$0xff] %v5496_v50  ;;  %v1567_v60 = vpack.c.bf16 %v1472_v59, %v1471_v51  ;;  %v1473_v61 = vmul.f32 %v5391_v39, %v5496_v50  ;;  %v1474_v62 = vmul.f32 %v5396_v41, %v5498_v53  ;;  %v597_v63 = vunpack.i.h.s16 %v539_v33 }
  0x61   : > { %7603 = vst [vmem:[#allocation21_spill] sm:$0xff] %v5498_v53  ;;  %v1575_v0 = vpack.c.bf16 %v1488_v58, %v1487_v54  ;;  %v1489_v2 = vmul.f32 %v5391_v39, %v5504_v55  ;;  %v1490_v5 = vmul.f32 %v5396_v41, %v5506_v56  ;;  %v5516_v6 = vpack.i.b16 %v539_v33, %v539_v33 }
  0x62   : > { %7604 = vst [vmem:[#allocation22_spill] sm:$0xff] %v5504_v55  ;;  %v1742_v10 = vunpack.c.l.b16 %v1567_v60  ;;  %v1743_v11 = vunpack.c.h.b16 %v1567_v60  ;;  %v1568_v23 = vpack.c.bf16 %v1474_v62, %v1473_v61  ;;  %v5518_v24 = vpack.i.b16 %v597_v63, %v597_v63 }
  0x63   : > { %7605 = vst [vmem:[#allocation23_spill] sm:$0xff] %v5506_v56  ;;  %v1758_v25 = vunpack.c.l.b16 %v1575_v0  ;;  %v1759_v57 = vunpack.c.h.b16 %v1575_v0  ;;  %v1576_v28 = vpack.c.bf16 %v1490_v5, %v1489_v2  ;;  %v655_v44 = vperm.slane %v5516_v6, 0 }
  0x64   : > { %v1744_v47 = vunpack.c.l.b16 %v1568_v23  ;;  %v1745_v51 = vunpack.c.h.b16 %v1568_v23  ;;  %v656_v59 = vperm.slane %v5516_v6, 1  ;;  %v671_v54 = vperm.slane %v5518_v24, 0 }
  0x65   : > { %v1838_v58 = vpack.c.b16 %v1758_v25, %v1742_v10  ;;  %v1839_v56 = vpack.c.b16 %v1759_v57, %v1743_v11  ;;  %v1760_v33 = vunpack.c.l.b16 %v1576_v28  ;;  %v1761_v55 = vunpack.c.h.b16 %v1576_v28 }
  0x66   : > { %v672_v60 = vperm.slane %v5518_v24, 1  ;;  %v880_v61 = vpack.i.b16 %v655_v44, %v655_v44  ;;  %v884_v62 = vpack.i.b16 %v656_v59, %v656_v59  ;;  %v944_v63 = vpack.i.b16 %v671_v54, %v671_v54 }
  0x67   : > { %1943 = vmatpush.bf16.msra.mxu0 %v1838_v58  ;;  %1957 = vmatpush.bf16.msra.mxu1 %v1839_v56  ;;  %v1840_v0 = vpack.c.b16 %v1760_v33, %v1744_v47  ;;  %v1841_v2 = vpack.c.b16 %v1761_v55, %v1745_v51  ;;  %v657_v5 = vperm.slane %v5516_v6, 2  ;;  %v658_v23 = vperm.slane %v5516_v6, 3 }
  0x68   : > { %v882_v53 = vperm.slane %v880_v61, 0  ;;  %v886_v50 = vperm.slane %v884_v62, 0  ;;  %v946_v49 = vperm.slane %v944_v63, 0  ;;  %v948_v10 = vpack.i.b16 %v672_v60, %v672_v60 }
  0x69   : > { %1971 = vmatpush.bf16.msra.mxu2 %v1840_v0  ;;  %1985 = vmatpush.bf16.msra.mxu3 %v1841_v2  ;;  %v673_v11 = vperm.slane %v5518_v24, 2  ;;  %v674_v25 = vperm.slane %v5518_v24, 3  ;;  %v888_v57 = vpack.i.b16 %v657_v5, %v657_v5  ;;  %v892_v28 = vpack.i.b16 %v658_v23, %v658_v23 }
  0x6a   : > { %v950_v44 = vperm.slane %v948_v10, 0  ;;  %v5528_v56 = vunpack.c.l.bf16 %v882_v53  ;;  %v5530_v55 = vunpack.c.l.bf16 %v886_v50  ;;  %v5532_v47 = vunpack.c.l.bf16 %v946_v49 }
  0x6b   : > { %v890_v51 = vperm.slane %v888_v57, 0  ;;  %v894_v59 = vperm.slane %v892_v28, 0  ;;  %v952_v54 = vpack.i.b16 %v673_v11, %v673_v11  ;;  %v956_v58 = vpack.i.b16 %v674_v25, %v674_v25 }
  0x6c   : > { %7606 = vst [vmem:[#allocation24_spill] sm:$0xff] %v5532_v47  ;;  %v5534_v33 = vunpack.c.l.bf16 %v950_v44  ;;  %v1439_v60 = vmul.f32 %v5385_v35, %v5528_v56  ;;  %v1440_v61 = vmul.f32 %v5389_v38, %v5530_v55  ;;  %v1455_v53 = vmul.f32 %v5385_v35, %v5532_v47 }
  0x6d   : > { %v954_v62 = vperm.slane %v952_v54, 0  ;;  %v958_v50 = vperm.slane %v956_v58, 0  ;;  %v5542_v63 = vunpack.c.l.bf16 %v890_v51  ;;  %v5544_v49 = vunpack.c.l.bf16 %v894_v59 }
  0x6e   : > { %7607 = vst [vmem:[#allocation25_spill] sm:$0xff] %v5534_v33  ;;  %v1456_v0 = vmul.f32 %v5389_v38, %v5534_v33  ;;  %v1551_v2 = vpack.c.bf16 %v1440_v61, %v1439_v60  ;;  %v488_v5 = vsel %vm485_vm8, %v5311_v1, %v5323_v7  ;;  %v492_v23 = vsel %vm489_vm7, %v5325_v8, %v5327_v9 }
  0x6f   : > { %7608 = vst [vmem:[#allocation26_spill] sm:$0xff] %v5542_v63  ;;  %v5554_v10 = vunpack.c.l.bf16 %v954_v62  ;;  %v5556_v11 = vunpack.c.l.bf16 %v958_v50  ;;  %v1441_v25 = vmul.f32 %v5391_v39, %v5542_v63  ;;  %v1442_v57 = vmul.f32 %v5396_v41, %v5544_v49 }
  0x70   : > { %7609 = vst [vmem:[#allocation27_spill] sm:$0xff] %v5544_v49  ;;  %v1559_v28 = vpack.c.bf16 %v1456_v0, %v1455_v53  ;;  %v1710_v44 = vunpack.c.l.b16 %v1551_v2  ;;  %v1711_v51 = vunpack.c.h.b16 %v1551_v2  ;;  %vm493_vm5 = vcmask 1041408  }
  0x71   : > { %7610 = vst [vmem:[#allocation28_spill] sm:$0xff] %v5554_v10  ;;  %v1457_v1 = vmul.f32 %v5391_v39, %v5554_v10  ;;  %v1458_v7 = vmul.f32 %v5396_v41, %v5556_v11  ;;  %v1552_v8 = vpack.c.bf16 %v1442_v57, %v1441_v25  ;;  %v494_v9 = vsel %vm493_vm5, %v488_v5, %v492_v23 }
  0x72   : > { %7611 = vst [vmem:[#allocation29_spill] sm:$0xff] %v5556_v11  ;;  %v1726_v59 = vunpack.c.l.b16 %v1559_v28  ;;  %v1727_v54 = vunpack.c.h.b16 %v1559_v28  ;;  %v498_v58 = vsel %vm495_vm9, %v5332_v12, %v5335_v13  ;;  %v502_v60 = vsel %vm499_vm10, %v5338_v14, %v5341_v15 }
  0x73   : > { %v1560_v61 = vpack.c.bf16 %v1458_v7, %v1457_v1  ;;  %v1712_v53 = vunpack.c.l.b16 %v1552_v8  ;;  %v1713_v62 = vunpack.c.h.b16 %v1552_v8  ;;  %vm503_vm6 = vcmask 1045508  }
  0x74   : > { %v1822_v50 = vpack.c.b16 %v1726_v59, %v1710_v44  ;;  %v1823_v0 = vpack.c.b16 %v1727_v54, %v1711_v51  ;;  %v504_v2 = vsel %vm503_vm6, %v498_v58, %v502_v60  ;;  %vm7405_vm4 = vcmask 1043456  }
  0x75   : > { %v5575_v5 = vrot.slane %v5394_v40, 3  ;;  %v1728_v23 = vunpack.c.l.b16 %v1560_v61  ;;  %v1729_v25 = vunpack.c.h.b16 %v1560_v61  ;;  %v506_v12 = vsel %vm7405_vm4, %v494_v9, %v504_v2 }
  0x76   : > { %1944 = vmatpush.bf16.msra.mxu0 %v1822_v50  ;;  %1958 = vmatpush.bf16.msra.mxu1 %v1823_v0  ;;  %v593_v13 = vunpack.i.h.s16 %v506_v12  ;;  %v5578_v14 = vpack.i.b16 %v506_v12, %v506_v12  ;;  %v723_v15 = vperm.slane %v5404_v45, 4  ;;  %v724_v57 = vperm.slane %v5404_v45, 5 }
  0x77   : > { %v1824_v28 = vpack.c.b16 %v1728_v23, %v1712_v53  ;;  %v1825_v44 = vpack.c.b16 %v1729_v25, %v1713_v62  ;;  %v739_v51 = vperm.slane %v5422_v52, 4  ;;  %v740_v40 = vperm.slane %v5422_v52, 5 }
  0x78   : > { %v5584_v1 = vpack.i.b16 %v593_v13, %v593_v13  ;;  %v623_v7 = vperm.slane %v5578_v14, 0  ;;  %v624_v8 = vperm.slane %v5578_v14, 1  ;;  %v625_v9 = vperm.slane %v5578_v14, 2 }
  0x79   : > { %1972 = vmatpush.bf16.msra.mxu2 %v1824_v28  ;;  %1986 = vmatpush.bf16.msra.mxu3 %v1825_v44  ;;  %v626_v59 = vperm.slane %v5578_v14, 3  ;;  %v1152_v54 = vpack.i.b16 %v723_v15, %v723_v15  ;;  %v1156_v58 = vpack.i.b16 %v724_v57, %v724_v57  ;;  %v1216_v60 = vpack.i.b16 %v739_v51, %v739_v51 }
  0x7a   : > { %v639_v61 = vperm.slane %v5584_v1, 0  ;;  %v640_v53 = vperm.slane %v5584_v1, 1  ;;  %v752_v62 = vpack.i.b16 %v623_v7, %v623_v7  ;;  %v756_v50 = vpack.i.b16 %v624_v8, %v624_v8 }
  0x7b   : > { %v641_v0 = vperm.slane %v5584_v1, 2  ;;  %v642_v2 = vperm.slane %v5584_v1, 3  ;;  %v760_v23 = vpack.i.b16 %v625_v9, %v625_v9  ;;  %v764_v25 = vpack.i.b16 %v626_v59, %v626_v59 }
  0x7c   : > { %v754_v12 = vperm.slane %v752_v62, 0  ;;  %v758_v13 = vperm.slane %v756_v50, 0  ;;  %v816_v28 = vpack.i.b16 %v639_v61, %v639_v61  ;;  %v820_v44 = vpack.i.b16 %v640_v53, %v640_v53 }
  0x7d   : > { %v762_v11 = vperm.slane %v760_v23, 0  ;;  %v766_v15 = vperm.slane %v764_v25, 0  ;;  %v824_v57 = vpack.i.b16 %v641_v0, %v641_v0  ;;  %v828_v51 = vpack.i.b16 %v642_v2, %v642_v2 }
  0x7e   : > { %v818_v10 = vperm.slane %v816_v28, 0  ;;  %v822_v49 = vperm.slane %v820_v44, 0  ;;  %v5594_v63 = vunpack.c.l.bf16 %v754_v12  ;;  %v5596_v7 = vunpack.c.l.bf16 %v758_v13 }
  0x7f   : > { %v826_v8 = vperm.slane %v824_v57, 0  ;;  %v830_v33 = vperm.slane %v828_v51, 0  ;;  %v5598_v47 = vunpack.c.l.bf16 %v762_v11  ;;  %v5600_v9 = vunpack.c.l.bf16 %v766_v15 }
  0x80   : > { %7612 = vst [vmem:[#allocation30_spill] sm:$0xff] %v5594_v63  ;;  %v5602_v59 = vunpack.c.l.bf16 %v818_v10  ;;  %v5604_v61 = vunpack.c.l.bf16 %v822_v49  ;;  %v1407_v53 = vmul.f32 %v5385_v35, %v5594_v63  ;;  %v1408_v62 = vmul.f32 %v5389_v38, %v5596_v7 }
  0x81   : > { %7613 = vst [vmem:[#allocation31_spill] sm:$0xff] %v5596_v7  ;;  %v5610_v50 = vunpack.c.l.bf16 %v826_v8  ;;  %v5612_v0 = vunpack.c.l.bf16 %v830_v33  ;;  %v1409_v11 = vmul.f32 %v5391_v39, %v5598_v47  ;;  %v1410_v2 = vmul.f32 %v5396_v41, %v5600_v9 }
  0x82   : > { %7614 = vst [vmem:[#allocation32_spill] sm:$0xff] %v5598_v47  ;;  %v1423_v49 = vmul.f32 %v5385_v35, %v5602_v59  ;;  %v1424_v10 = vmul.f32 %v5389_v38, %v5604_v61  ;;  %v1535_v23 = vpack.c.bf16 %v1408_v62, %v1407_v53  ;;  %vm1934_vm4 = vcmask 523264  }
  0x83   : > { %7615 = vst [vmem:[#allocation33_spill] sm:$0xff] %v5600_v9  ;;  %v1154_v25 = vperm.slane %v1152_v54, 0  ;;  %v1425_v12 = vmul.f32 %v5391_v39, %v5610_v50  ;;  %v1426_v33 = vmul.f32 %v5396_v41, %v5612_v0  ;;  %v1536_v13 = vpack.c.bf16 %v1410_v2, %v1409_v11 }
  0x84   : > { %7616 = vst [vmem:[#allocation34_spill] sm:$0xff] %v5602_v59  ;;  %v1158_v28 = vperm.slane %v1156_v58, 0  ;;  %v1543_v44 = vpack.c.bf16 %v1424_v10, %v1423_v49  ;;  %v1678_v15 = vunpack.c.l.b16 %v1535_v23  ;;  %v1679_v57 = vunpack.c.h.b16 %v1535_v23  ;;  %v5641_v10 = vld [vmem:[%s7366_s1] sm:$0xff] }
  0x85   : > { %7617 = vst [vmem:[#allocation35_spill] sm:$0xff] %v5604_v61  ;;  %v1218_v51 = vperm.slane %v1216_v60, 0  ;;  %v1544_v8 = vpack.c.bf16 %v1426_v33, %v1425_v12  ;;  %v1680_v35 = vunpack.c.l.b16 %v1536_v13  ;;  %v1681_v9 = vunpack.c.h.b16 %v1536_v13 }
  0x86   : > { %7618 = vst [vmem:[#allocation36_spill] sm:$0xff] %v5610_v50  ;;  %v1220_v47 = vpack.i.b16 %v740_v40, %v740_v40  ;;  %v1694_v38 = vunpack.c.l.b16 %v1543_v44  ;;  %v1695_v53 = vunpack.c.h.b16 %v1543_v44  ;;  %v5626_v62 = vunpack.c.l.bf16 %v1154_v25 }
  0x87   : > { %7619 = vst [vmem:[#allocation37_spill] sm:$0xff] %v5612_v0  ;;  %v5628_v54 = vunpack.c.l.bf16 %v1158_v28  ;;  %v1696_v39 = vunpack.c.l.b16 %v1544_v8  ;;  %v1697_v50 = vunpack.c.h.b16 %v1544_v8  ;;  %v5630_v41 = vunpack.c.l.bf16 %v1218_v51 }
  0x88   : > { %7620 = vst [vmem:[#allocation38_spill] sm:$0xff] %v5626_v62  ;;  %v1222_v61 = vperm.slane %v1220_v47, 0  ;;  %v1806_v58 = vpack.c.b16 %v1694_v38, %v1678_v15  ;;  %v1807_v11 = vpack.c.b16 %v1695_v53, %v1679_v57  ;;  %v5633_v2 = vunpack.c.l.bf16 %v5315_v3 }
  0x89   : > { %7621 = vst [vmem:[#allocation39_spill] sm:$0xff] %v5628_v54  ;;  %v5636_v60 = vunpack.c.h.bf16 %v5315_v3  ;;  %v1808_v40 = vpack.c.b16 %v1696_v39, %v1680_v35  ;;  %v1809_v49 = vpack.c.b16 %v1697_v50, %v1681_v9  ;;  %v725_v47 = vperm.slane %v5404_v45, 6 }
  0x8a   : > { %7622 = vst [vmem:[#allocation40_spill] sm:$0xff] %v5630_v41  ;;  %v5643_v23 = vunpack.c.l.bf16 %v1222_v61  ;;  %1945 = vmatpush.bf16.msra.mxu0 %v1806_v58  ;;  %1959 = vmatpush.bf16.msra.mxu1 %v1807_v11  ;;  %v1507_v25 = vmul.f32 %v5633_v2, %v5626_v62  ;;  %v1523_v9 = vmul.f32 %v5633_v2, %v5630_v41  ;;  %v726_v50 = vperm.slane %v5404_v45, 7 }
  0x8b   : > { %v1508_v3 = vmul.f32 %v5636_v60, %v5628_v54  ;;  %1973 = vmatpush.bf16.msra.mxu2 %v1808_v40  ;;  %1987 = vmatpush.bf16.msra.mxu3 %v1809_v49  ;;  %v741_v12 = vperm.slane %v5422_v52, 6  ;;  %v742_v33 = vperm.slane %v5422_v52, 7  ;;  %v1160_v13 = vpack.i.b16 %v725_v47, %v725_v47 }
  0x8c   : > { %7623 = vst [vmem:[#allocation41_spill] sm:$0xff] %v5643_v23  ;;  %v1524_v61 = vmul.f32 %v5636_v60, %v5643_v23  ;;  %v1164_v44 = vpack.i.b16 %v726_v50, %v726_v50  ;;  %v5658_v15 = vunpack.c.l.bf16 %v5318_v4  ;;  %v5661_v57 = vunpack.c.h.bf16 %v5318_v4 }
  0x8d   : > { %v1585_v28 = vpack.c.bf16 %v1508_v3, %v1507_v25  ;;  %4875 = vmatmul.msk.bf16.vlgmr.msra.gmra.mxu0 %vm1934_vm4, %v5641_v10  ;;  %4876 = vmatmul.msk.bf16.vlgmr.msra.gmra.mxu1 %vm1934_vm4, %v5641_v10  ;;  %v1162_v51 = vperm.slane %v1160_v13, 0  ;;  %v1224_v8 = vpack.i.b16 %v741_v12, %v741_v12  ;;  %v1228_v35 = vpack.i.b16 %v742_v33, %v742_v33 }
  0x8e   : > { %v1593_v45 = vpack.c.bf16 %v1524_v61, %v1523_v9  ;;  %4877 = vmatmul.msk.bf16.vlgmr.msra.gmra.mxu2 %vm1934_vm4, %v5641_v10  ;;  %4878 = vmatmul.msk.bf16.vlgmr.msra.gmra.mxu3 %vm1934_vm4, %v5641_v10  ;;  %v1166_v4 = vperm.slane %v1164_v44, 0  ;;  %v691_v53 = vperm.slane %v5471_v46, 4  ;;  %v692_v25 = vperm.slane %v5471_v46, 5 }
  0x8f   : > { %v1778_v52 = vunpack.c.l.b16 %v1585_v28  ;;  %v1779_v38 = vunpack.c.h.b16 %v1585_v28  ;;  %v1226_v11 = vperm.slane %v1224_v8, 0  ;;  %v1230_v40 = vperm.slane %v1228_v35, 0 }
  0x90   : > { %v1794_v39 = vunpack.c.l.b16 %v1593_v45  ;;  %v1795_v58 = vunpack.c.h.b16 %v1593_v45  ;;  %v5672_v49 = vunpack.c.l.bf16 %v1162_v51  ;;  %v5674_v47 = vunpack.c.l.bf16 %v1166_v4 }
  0x91   : > { %v707_v3 = vperm.slane %v5474_v30, 4  ;;  %v5678_v61 = vunpack.c.l.bf16 %v1226_v11  ;;  %v5680_v12 = vunpack.c.l.bf16 %v1230_v40  ;;  %v708_v28 = vperm.slane %v5474_v30, 5 }
  0x92   : > { %7624 = vst [vmem:[#allocation42_spill] sm:$0xff] %v5672_v49  ;;  %v1858_v9 = vpack.c.b16 %v1794_v39, %v1778_v52  ;;  %v1859_v50 = vpack.c.b16 %v1795_v58, %v1779_v38  ;;  %v1509_v33 = vmul.f32 %v5658_v15, %v5672_v49  ;;  %v1510_v13 = vmul.f32 %v5661_v57, %v5674_v47 }
  0x93   : > { %7625 = vst [vmem:[#allocation43_spill] sm:$0xff] %v5674_v47  ;;  %v1024_v44 = vpack.i.b16 %v691_v53, %v691_v53  ;;  %v1525_v45 = vmul.f32 %v5658_v15, %v5678_v61  ;;  %v1526_v51 = vmul.f32 %v5661_v57, %v5680_v12  ;;  %v1028_v8 = vpack.i.b16 %v692_v25, %v692_v25 }
  0x94   : > { %7626 = vst [vmem:[#allocation44_spill] sm:$0xff] %v5678_v61  ;;  %1998 = vmatpush.bf16.msrb.mxu0 %v1858_v9  ;;  %2012 = vmatpush.bf16.msrb.mxu1 %v1859_v50  ;;  %v693_v35 = vperm.slane %v5471_v46, 6  ;;  %v1586_v52 = vpack.c.bf16 %v1510_v13, %v1509_v33  ;;  %v1088_v4 = vpack.i.b16 %v707_v3, %v707_v3  ;;  %v694_v40 = vperm.slane %v5471_v46, 7 }
  0x95   : > { %7627 = vst [vmem:[#allocation45_spill] sm:$0xff] %v5680_v12  ;;  %v1026_v38 = vperm.slane %v1024_v44, 0  ;;  %v1092_v39 = vpack.i.b16 %v708_v28, %v708_v28  ;;  %v1594_v58 = vpack.c.bf16 %v1526_v51, %v1525_v45  ;;  %v1030_v11 = vperm.slane %v1028_v8, 0 }
  0x96   : > { %v709_v53 = vperm.slane %v5474_v30, 6  ;;  %v1780_v9 = vunpack.c.l.b16 %v1586_v52  ;;  %v1781_v50 = vunpack.c.h.b16 %v1586_v52  ;;  %v1090_v47 = vperm.slane %v1088_v4, 0 }
  0x97   : > { %v1094_v61 = vperm.slane %v1092_v39, 0  ;;  %v1796_v49 = vunpack.c.l.b16 %v1594_v58  ;;  %v1797_v0 = vunpack.c.h.b16 %v1594_v58  ;;  %v5694_v12 = vunpack.c.l.bf16 %v1026_v38 }
  0x98   : > { %v5696_v25 = vunpack.c.l.bf16 %v1030_v11  ;;  %v5698_v33 = vunpack.c.l.bf16 %v1090_v47  ;;  %v710_v13 = vperm.slane %v5474_v30, 7  ;;  %v1032_v28 = vpack.i.b16 %v693_v35, %v693_v35  ;;  %v462_v30 = vld [vmem:[%s7367_s2 + $0x8] sm:$0xff] }
  0x99   : > { %7628 = vst [vmem:[#allocation46_spill] sm:$0xff] %v5694_v12  ;;  %v5700_v3 = vunpack.c.l.bf16 %v1094_v61  ;;  %v1860_v46 = vpack.c.b16 %v1796_v49, %v1780_v9  ;;  %v1861_v44 = vpack.c.b16 %v1797_v0, %v1781_v50  ;;  %v1475_v45 = vmul.f32 %v5633_v2, %v5694_v12 }
  0x9a   : > { %7629 = vst [vmem:[#allocation47_spill] sm:$0xff] %v5696_v25  ;;  %v1476_v51 = vmul.f32 %v5636_v60, %v5696_v25  ;;  %v1491_v8 = vmul.f32 %v5633_v2, %v5698_v33  ;;  %v1034_v52 = vperm.slane %v1032_v28, 0  ;;  %v1036_v61 = vpack.i.b16 %v694_v40, %v694_v40 }
  0x9b   : > { %7630 = vst [vmem:[#allocation48_spill] sm:$0xff] %v5698_v33  ;;  %v1492_v47 = vmul.f32 %v5636_v60, %v5700_v3  ;;  %2026 = vmatpush.bf16.msrb.mxu2 %v1860_v46  ;;  %2040 = vmatpush.bf16.msrb.mxu3 %v1861_v44  ;;  %v1096_v49 = vpack.i.b16 %v709_v53, %v709_v53  ;;  %v5136_v58 = vmov 0   ;;  %v659_v11 = vperm.slane %v5516_v6, 4 }
  0x9c   : > { %7631 = vst [vmem:[#allocation49_spill] sm:$0xff] %v5700_v3  ;;  %v1569_v0 = vpack.c.bf16 %v1476_v51, %v1475_v45  ;;  %v1100_v35 = vpack.i.b16 %v710_v13, %v710_v13  ;;  %v1038_v4 = vperm.slane %v1036_v61, 0  ;;  %v5714_v39 = vunpack.c.l.bf16 %v1034_v52  ;;  %4992 = vset.pattern.permute.xlu0 %v5136_v58  ;;  %4993 = vset.pattern.permute.xlu1 %v5136_v58 }
  0x9d   : > { %v1577_v38 = vpack.c.bf16 %v1492_v47, %v1491_v8  ;;  %v1098_v50 = vperm.slane %v1096_v49, 0  ;;  %1606 = vperm.xlu0 %4992, %v462_v30   ;;  %4994 = vset.pattern.permute.xlu2 %v5136_v58  ;;  %v660_v8 = vperm.slane %v5516_v6, 5  ;;  %v675_v47 = vperm.slane %v5518_v24, 4 }
  0x9e   : > { %7632 = vst [vmem:[#allocation50_spill] sm:$0xff] %v5714_v39  ;;  %v1746_v9 = vunpack.c.l.b16 %v1569_v0  ;;  %v1747_v40 = vunpack.c.h.b16 %v1569_v0  ;;  %v1102_v28 = vperm.slane %v1100_v35, 0  ;;  %v5717_v45 = vunpack.c.l.bf16 %v1038_v4 }
  0x9f   : > { %v1762_v46 = vunpack.c.l.b16 %v1577_v38  ;;  %v1763_v44 = vunpack.c.h.b16 %v1577_v38  ;;  %v1477_v53 = vmul.f32 %v5658_v15, %v5714_v39  ;;  %v5721_v13 = vunpack.c.l.bf16 %v1098_v50 }
  0xa0   : > { %7633 = vst [vmem:[#allocation51_spill] sm:$0xff] %v5717_v45  ;;  %v5723_v51 = vunpack.c.l.bf16 %v1102_v28  ;;  %v1478_v30 = vmul.f32 %v5661_v57, %v5717_v45  ;;  %v676_v0 = vperm.slane %v5518_v24, 5  ;;  %v896_v38 = vpack.i.b16 %v659_v11, %v659_v11 }
  0xa1   : > { %7634 = vst [vmem:[#allocation52_spill] sm:$0xff] %v5721_v13  ;;  %v1842_v52 = vpack.c.b16 %v1762_v46, %v1746_v9  ;;  %v1843_v61 = vpack.c.b16 %v1763_v44, %v1747_v40  ;;  %v1493_v49 = vmul.f32 %v5658_v15, %v5721_v13  ;;  %v900_v4 = vpack.i.b16 %v660_v8, %v660_v8 }
  0xa2   : > { %7635 = vst [vmem:[#allocation53_spill] sm:$0xff] %v5723_v51  ;;  %v1494_v35 = vmul.f32 %v5661_v57, %v5723_v51  ;;  %v1570_v58 = vpack.c.bf16 %v1478_v30, %v1477_v53  ;;  %v960_v50 = vpack.i.b16 %v675_v47, %v675_v47  ;;  %v964_v28 = vpack.i.b16 %v676_v0, %v676_v0 }
  0xa3   : > { %1999 = vmatpush.bf16.msrb.mxu0 %v1842_v52  ;;  %2013 = vmatpush.bf16.msrb.mxu1 %v1843_v61  ;;  %v661_v9 = vperm.slane %v5516_v6, 6  ;;  %v898_v46 = vperm.slane %v896_v38, 0  ;;  %v902_v44 = vperm.slane %v900_v4, 0  ;;  %v662_v45 = vperm.slane %v5516_v6, 7 }
  0xa4   : > { %v1578_v40 = vpack.c.bf16 %v1494_v35, %v1493_v49  ;;  %v1748_v39 = vunpack.c.l.b16 %v1570_v58  ;;  %v1749_v3 = vunpack.c.h.b16 %v1570_v58  ;;  %v962_v13 = vperm.slane %v960_v50, 0 }
  0xa5   : > { %v966_v33 = vperm.slane %v964_v28, 0  ;;  %v5736_v11 = vunpack.c.l.bf16 %v898_v46  ;;  %v5738_v8 = vunpack.c.l.bf16 %v902_v44  ;;  %v677_v52 = vperm.slane %v5518_v24, 6 }
  0xa6   : > { %v1764_v25 = vunpack.c.l.b16 %v1578_v40  ;;  %v1765_v51 = vunpack.c.h.b16 %v1578_v40  ;;  %v5740_v53 = vunpack.c.l.bf16 %v962_v13  ;;  %v678_v61 = vperm.slane %v5518_v24, 7  ;;  %v2339_v24 = vld [vmem:[%s7369_s4 + $0x8] sm:$0xff] }
  0xa7   : > { %7636 = vst [vmem:[#allocation54_spill] sm:$0xff] %v5736_v11  ;;  %v5742_v47 = vunpack.c.l.bf16 %v966_v33  ;;  %v1443_v0 = vmul.f32 %v5633_v2, %v5736_v11  ;;  %v1444_v49 = vmul.f32 %v5636_v60, %v5738_v8  ;;  %v904_v33 = vpack.i.b16 %v661_v9, %v661_v9  ;;  %2555 = vperm.xlu0 %4992, %v2339_v24  }
  0xa8   : > { %7637 = vst [vmem:[#allocation55_spill] sm:$0xff] %v5738_v8  ;;  %v1844_v30 = vpack.c.b16 %v1764_v25, %v1748_v39  ;;  %v1845_v6 = vpack.c.b16 %v1765_v51, %v1749_v3  ;;  %v1459_v35 = vmul.f32 %v5633_v2, %v5740_v53  ;;  %v908_v38 = vpack.i.b16 %v662_v45, %v662_v45  ;;  %v461_v25 = vld [vmem:[%s7367_s2] sm:$0xff] }
  0xa9   : > { %7638 = vst [vmem:[#allocation56_spill] sm:$0xff] %v5740_v53  ;;  %v1460_v13 = vmul.f32 %v5636_v60, %v5742_v47  ;;  %v1553_v3 = vpack.c.bf16 %v1444_v49, %v1443_v0  ;;  %v968_v39 = vpack.i.b16 %v677_v52, %v677_v52  ;;  %v972_v51 = vpack.i.b16 %v678_v61, %v678_v61 }
  0xaa   : > { %7639 = vst [vmem:[#allocation57_spill] sm:$0xff] %v5742_v47  ;;  %2027 = vmatpush.bf16.msrb.mxu2 %v1844_v30  ;;  %2041 = vmatpush.bf16.msrb.mxu3 %v1845_v6  ;;  %v627_v4 = vperm.slane %v5578_v14, 4  ;;  %v906_v50 = vperm.slane %v904_v33, 0  ;;  %v910_v28 = vperm.slane %v908_v38, 0  ;;  %v628_v45 = vperm.slane %v5578_v14, 5 }
  0xab   : > { %v1561_v58 = vpack.c.bf16 %v1460_v13, %v1459_v35  ;;  %1601 = vperm.xlu1 %4993, %v461_v25   ;;  %v1714_v9 = vunpack.c.l.b16 %v1553_v3  ;;  %v1715_v40 = vunpack.c.h.b16 %v1553_v3  ;;  %v970_v46 = vperm.slane %v968_v39, 0 }
  0xac   : > { %v974_v44 = vperm.slane %v972_v51, 0  ;;  %v5762_v30 = vunpack.c.l.bf16 %v906_v50  ;;  %v5764_v6 = vunpack.c.l.bf16 %v910_v28  ;;  %v643_v0 = vperm.slane %v5584_v1, 4 }
  0xad   : > { %v1730_v47 = vunpack.c.l.b16 %v1561_v58  ;;  %v1731_v53 = vunpack.c.h.b16 %v1561_v58  ;;  %v5766_v52 = vunpack.c.l.bf16 %v970_v46  ;;  %v644_v49 = vperm.slane %v5584_v1, 5 }
  0xae   : > { %7640 = vst [vmem:[#allocation58_spill] sm:$0xff] %v5762_v30  ;;  %v5768_v61 = vunpack.c.l.bf16 %v974_v44  ;;  %v1445_v33 = vmul.f32 %v5658_v15, %v5762_v30  ;;  %v1446_v38 = vmul.f32 %v5661_v57, %v5764_v6  ;;  %v768_v3 = vpack.i.b16 %v627_v4, %v627_v4 }
  0xaf   : > { %7641 = vst [vmem:[#allocation59_spill] sm:$0xff] %v5764_v6  ;;  %v1826_v35 = vpack.c.b16 %v1730_v47, %v1714_v9  ;;  %v1827_v13 = vpack.c.b16 %v1731_v53, %v1715_v40  ;;  %v1461_v24 = vmul.f32 %v5658_v15, %v5766_v52  ;;  %v772_v39 = vpack.i.b16 %v628_v45, %v628_v45 }
  0xb0   : > { %7642 = vst [vmem:[#allocation60_spill] sm:$0xff] %v5766_v52  ;;  %v1462_v25 = vmul.f32 %v5661_v57, %v5768_v61  ;;  %v1554_v51 = vpack.c.bf16 %v1446_v38, %v1445_v33  ;;  %v832_v58 = vpack.i.b16 %v643_v0, %v643_v0  ;;  %v836_v47 = vpack.i.b16 %v644_v49, %v644_v49 }
  0xb1   : > { %7643 = vst [vmem:[#allocation61_spill] sm:$0xff] %v5768_v61  ;;  %2000 = vmatpush.bf16.msrb.mxu0 %v1826_v35  ;;  %2014 = vmatpush.bf16.msrb.mxu1 %v1827_v13  ;;  %v629_v53 = vperm.slane %v5578_v14, 6  ;;  %v770_v28 = vperm.slane %v768_v3, 0  ;;  %v774_v9 = vperm.slane %v772_v39, 0  ;;  %v630_v40 = vperm.slane %v5578_v14, 7 }
  0xb2   : > { %v1562_v50 = vpack.c.bf16 %v1462_v25, %v1461_v24  ;;  %v1716_v46 = vunpack.c.l.b16 %v1554_v51  ;;  %v1717_v44 = vunpack.c.h.b16 %v1554_v51  ;;  %v834_v52 = vperm.slane %v832_v58, 0 }
  0xb3   : > { %v838_v6 = vperm.slane %v836_v47, 0  ;;  %v5782_v4 = vunpack.c.l.bf16 %v770_v28  ;;  %v5784_v45 = vunpack.c.l.bf16 %v774_v9  ;;  %v645_v49 = vperm.slane %v5584_v1, 6 }
  0xb4   : > { %v1732_v30 = vunpack.c.l.b16 %v1562_v50  ;;  %v1733_v61 = vunpack.c.h.b16 %v1562_v50  ;;  %v5786_v35 = vunpack.c.l.bf16 %v834_v52  ;;  %v646_v13 = vperm.slane %v5584_v1, 7 }
  0xb5   : > { %7644 = vst [vmem:[#allocation62_spill] sm:$0xff] %v5784_v45  ;;  %v5788_v0 = vunpack.c.l.bf16 %v838_v6  ;;  %v1411_v38 = vmul.f32 %v5633_v2, %v5782_v4  ;;  %v1412_v24 = vmul.f32 %v5636_v60, %v5784_v45  ;;  %v776_v6 = vpack.i.b16 %v629_v53, %v629_v53 }
  0xb6   : > { %7645 = vst [vmem:[#allocation63_spill] sm:$0xff] %v5786_v35  ;;  %v1828_v33 = vpack.c.b16 %v1732_v30, %v1716_v46  ;;  %v1829_v14 = vpack.c.b16 %v1733_v61, %v1717_v44  ;;  %v1427_v25 = vmul.f32 %v5633_v2, %v5786_v35  ;;  %v780_v3 = vpack.i.b16 %v630_v40, %v630_v40 }
  0xb7   : > { %7646 = vst [vmem:[#allocation64_spill] sm:$0xff] %v5788_v0  ;;  %v1428_v52 = vmul.f32 %v5636_v60, %v5788_v0  ;;  %v1537_v39 = vpack.c.bf16 %v1412_v24, %v1411_v38  ;;  %v840_v1 = vpack.i.b16 %v645_v49, %v645_v49  ;;  %v844_v30 = vpack.i.b16 %v646_v13, %v646_v13 }
  0xb8   : > { %2028 = vmatpush.bf16.msrb.mxu2 %v1828_v33  ;;  %2042 = vmatpush.bf16.msrb.mxu3 %v1829_v14  ;;  %v606_v61 = vunpack.i.h.s16 %v5575_v5  ;;  %v778_v58 = vperm.slane %v776_v6, 0  ;;  %v782_v47 = vperm.slane %v780_v3, 0  ;;  %v5803_v50 = vpack.i.b16 %v5575_v5, %v5575_v5 }
  0xb9   : > { %v1545_v51 = vpack.c.bf16 %v1428_v52, %v1427_v25  ;;  %v1682_v2 = vunpack.c.l.b16 %v1537_v39  ;;  %v1683_v28 = vunpack.c.h.b16 %v1537_v39  ;;  %v842_v9 = vperm.slane %v840_v1, 0 }
  0xba   : > { %v846_v60 = vperm.slane %v844_v30, 0  ;;  %v5805_v46 = vunpack.c.l.bf16 %v778_v58  ;;  %v5807_v44 = vunpack.c.l.bf16 %v782_v47  ;;  %v5813_v33 = vpack.i.b16 %v606_v61, %v606_v61 }
  0xbb   : > { %v1698_v53 = vunpack.c.l.b16 %v1545_v51  ;;  %v1699_v40 = vunpack.c.h.b16 %v1545_v51  ;;  %v5809_v49 = vunpack.c.l.bf16 %v842_v9  ;;  %v727_v5 = vperm.slane %v5803_v50, 0  ;;  %v5828_v51 = vld [vmem:[%s5300_s15 + $0x20] sm:$0xff] }
  0xbc   : > { %7647 = vst [vmem:[#allocation65_spill] sm:$0xff] %v5805_v46  ;;  %v5811_v13 = vunpack.c.l.bf16 %v846_v60  ;;  %v1413_v24 = vmul.f32 %v5658_v15, %v5805_v46  ;;  %v1414_v25 = vmul.f32 %v5661_v57, %v5807_v44  ;;  %v728_v3 = vperm.slane %v5803_v50, 1 }
  0xbd   : > { %7648 = vst [vmem:[#allocation66_spill] sm:$0xff] %v5807_v44  ;;  %v1810_v14 = vpack.c.b16 %v1698_v53, %v1682_v2  ;;  %v1811_v38 = vpack.c.b16 %v1699_v40, %v1683_v28  ;;  %v1429_v52 = vmul.f32 %v5658_v15, %v5809_v49  ;;  %v743_v39 = vperm.slane %v5813_v33, 0 }
  0xbe   : > { %7649 = vst [vmem:[#allocation67_spill] sm:$0xff] %v5809_v49  ;;  %v1430_v6 = vmul.f32 %v5661_v57, %v5811_v13  ;;  %v1538_v1 = vpack.c.bf16 %v1414_v25, %v1413_v24  ;;  %v744_v30 = vperm.slane %v5813_v33, 1  ;;  %v1168_v61 = vpack.i.b16 %v727_v5, %v727_v5 }
  0xbf   : > { %7650 = vst [vmem:[#allocation68_spill] sm:$0xff] %v5811_v13  ;;  %2001 = vmatpush.bf16.msrb.mxu0 %v1810_v14  ;;  %2015 = vmatpush.bf16.msrb.mxu1 %v1811_v38  ;;  %v5831_v58 = vunpack.c.l.bf16 %v5828_v51  ;;  %v1172_v15 = vpack.i.b16 %v728_v3, %v728_v3  ;;  %v1232_v2 = vpack.i.b16 %v743_v39, %v743_v39  ;;  %v5834_v57 = vunpack.c.h.bf16 %v5828_v51 }
  0xc0   : > { %v1546_v47 = vpack.c.bf16 %v1430_v6, %v1429_v52  ;;  %v1684_v28 = vunpack.c.l.b16 %v1538_v1  ;;  %v1685_v9 = vunpack.c.h.b16 %v1538_v1  ;;  %v1170_v60 = vperm.slane %v1168_v61, 0 }
  0xc1   : > { %v1236_v53 = vpack.i.b16 %v744_v30, %v744_v30  ;;  %v1174_v5 = vperm.slane %v1172_v15, 0  ;;  %v1234_v38 = vperm.slane %v1232_v2, 0  ;;  %v729_v52 = vperm.slane %v5803_v50, 2 }
  0xc2   : > { %v1700_v40 = vunpack.c.l.b16 %v1546_v47  ;;  %v1701_v14 = vunpack.c.h.b16 %v1546_v47  ;;  %4879 = vmatmul.msk.bf16.vlgmr.msrb.gmra.mxu0 %vm1934_vm4, %v5641_v10  ;;  %4880 = vmatmul.msk.bf16.vlgmr.msrb.gmra.mxu1 %vm1934_vm4, %v5641_v10  ;;  %v5840_v25 = vunpack.c.l.bf16 %v1170_v60  ;;  %v730_v6 = vperm.slane %v5803_v50, 3 }
  0xc3   : > { %v1238_v24 = vperm.slane %v1236_v53, 0  ;;  %v5844_v1 = vunpack.c.l.bf16 %v1174_v5  ;;  %v5846_v30 = vunpack.c.l.bf16 %v1234_v38  ;;  %v745_v15 = vperm.slane %v5813_v33, 2  ;;  %v4996_v53 = vld [vmem:[%s5300_s15 + $0x28] sm:$0xff] }
  0xc4   : > { %7651 = vst [vmem:[#allocation69_spill] sm:$0xff] %v5840_v25  ;;  %v1812_v3 = vpack.c.b16 %v1700_v40, %v1684_v28  ;;  %v1813_v39 = vpack.c.b16 %v1701_v14, %v1685_v9  ;;  %v1511_v47 = vmul.f32 %v5831_v58, %v5840_v25  ;;  %v746_v2 = vperm.slane %v5813_v33, 3 }
  0xc5   : > { %7652 = vst [vmem:[#allocation70_spill] sm:$0xff] %v5844_v1  ;;  %v5848_v61 = vunpack.c.l.bf16 %v1238_v24  ;;  %v1512_v60 = vmul.f32 %v5834_v57, %v5844_v1  ;;  %v1527_v28 = vmul.f32 %v5831_v58, %v5846_v30  ;;  %v1176_v9 = vpack.i.b16 %v729_v52, %v729_v52  ;;  %v3150_v52 = vld [vmem:[%s7373_s8] sm:$0xff] }
  0xc6   : > { %7653 = vst [vmem:[#allocation71_spill] sm:$0xff] %v5846_v30  ;;  %2029 = vmatpush.bf16.msrb.mxu2 %v1812_v3  ;;  %2043 = vmatpush.bf16.msrb.mxu3 %v1813_v39  ;;  %v5859_v40 = vunpack.c.l.bf16 %v4996_v53  ;;  %v1180_v5 = vpack.i.b16 %v730_v6, %v730_v6  ;;  %v1240_v38 = vpack.i.b16 %v745_v15, %v745_v15  ;;  %v5863_v3 = vunpack.c.h.bf16 %v4996_v53 }
  0xc7   : > { %7654 = vst [vmem:[#allocation72_spill] sm:$0xff] %v5848_v61  ;;  %v1528_v14 = vmul.f32 %v5834_v57, %v5848_v61  ;;  %v1244_v24 = vpack.i.b16 %v746_v2, %v746_v2  ;;  %v1587_v13 = vpack.c.bf16 %v1512_v60, %v1511_v47  ;;  %v1178_v49 = vperm.slane %v1176_v9, 0  ;;  %3153 = vperm.xlu0 %4992, %v3150_v52  }
  0xc8   : > { %v561_v39 = vsel %vm489_vm7, %v5828_v51, %v5343_v16  ;;  %v1182_v15 = vperm.slane %v1180_v5, 0  ;;  %v1242_v47 = vperm.slane %v1240_v38, 0  ;;  %v562_v44 = vsel %vm495_vm9, %v5345_v17, %v5347_v18 }
  0xc9   : > { %4881 = vmatmul.msk.bf16.vlgmr.msrb.gmra.mxu2 %vm1934_vm4, %v5641_v10  ;;  %4882 = vmatmul.msk.bf16.vlgmr.msrb.gmra.mxu3 %vm1934_vm4, %v5641_v10  ;;  %v1595_v6 = vpack.c.bf16 %v1528_v14, %v1527_v28  ;;  %v1246_v2 = vperm.slane %v1244_v24, 0  ;;  %v1782_v60 = vunpack.c.l.b16 %v1587_v13  ;;  %v1783_v9 = vunpack.c.h.b16 %v1587_v13 }
  0xca   : > { %v5875_v53 = vunpack.c.l.bf16 %v1178_v49  ;;  %v5880_v30 = vunpack.c.l.bf16 %v1182_v15  ;;  %v5882_v1 = vunpack.c.l.bf16 %v1242_v47  ;;  %v563_v13 = vsel %vm551_vm11, %v561_v39, %v562_v44 }
  0xcb   : > { %v1798_v46 = vunpack.c.l.b16 %v1595_v6  ;;  %v1799_v61 = vunpack.c.h.b16 %v1595_v6  ;;  %v5884_v10 = vunpack.c.l.bf16 %v1246_v2  ;;  %v564_v49 = vsel %vm499_vm10, %v5349_v19, %v5351_v20 }
  0xcc   : > { %7655 = vst [vmem:[#allocation73_spill] sm:$0xff] %v5875_v53  ;;  %v1513_v28 = vmul.f32 %v5859_v40, %v5875_v53  ;;  %v1514_v38 = vmul.f32 %v5863_v3, %v5880_v30  ;;  %v1529_v24 = vmul.f32 %v5859_v40, %v5882_v1  ;;  %v565_v6 = vsel %vm485_vm8, %v5353_v21, %v5355_v22 }
  0xcd   : > { %7656 = vst [vmem:[#allocation74_spill] sm:$0xff] %v5880_v30  ;;  %v1862_v14 = vpack.c.b16 %v1798_v46, %v1782_v60  ;;  %v1863_v5 = vpack.c.b16 %v1799_v61, %v1783_v9  ;;  %v1530_v52 = vmul.f32 %v5863_v3, %v5884_v10  ;;  %v540_v44 = vsel %vm524_vm0, %v5828_v51, %v5343_v16 }
  0xce   : > { %7657 = vst [vmem:[#allocation75_spill] sm:$0xff] %v5882_v1  ;;  %v541_v46 = vsel %vm526_vm1, %v5345_v17, %v5347_v18  ;;  %v1588_v61 = vpack.c.bf16 %v1514_v38, %v1513_v28  ;;  %v566_v39 = vsel %vm555_vm12, %v565_v6, %v564_v49  ;;  %v543_v60 = vsel %vm530_vm2, %v5349_v19, %v5351_v20 }
  0xcf   : > { %7658 = vst [vmem:[#allocation76_spill] sm:$0xff] %v5884_v10  ;;  %2054 = vmatpush.bf16.msra.mxu0 %v1862_v14  ;;  %2068 = vmatpush.bf16.msra.mxu1 %v1863_v5  ;;  %v542_v15 = vsel %vm528_vm13, %v540_v44, %v541_v46  ;;  %v1596_v47 = vpack.c.bf16 %v1530_v52, %v1529_v24  ;;  %vm7659_vm0 = vcmask 1044481   ;;  %vm7668_vm1 = vcmask 1043456  }
  0xd0   : > { %v567_v2 = vsel %vm557_vm14, %v563_v13, %v566_v39  ;;  %v544_v9 = vsel %vm532_vm3, %v5355_v22, %v5353_v21  ;;  %v1784_v10 = vunpack.c.l.b16 %v1588_v61  ;;  %v1785_v1 = vunpack.c.h.b16 %v1588_v61 }
  0xd1   : > { %v569_v14 = vrot.slane %v567_v2, 2  ;;  %v545_v28 = vsel %vm534_vm15, %v543_v60, %v544_v9  ;;  %v1800_v5 = vunpack.c.l.b16 %v1596_v47  ;;  %v1801_v49 = vunpack.c.h.b16 %v1596_v47 }
  0xd2   : > { %v546_v38 = vsel %vm7659_vm0, %v542_v15, %v545_v28  ;;  %v510_v13 = vsel %vm485_vm8, %v5828_v51, %v5343_v16  ;;  %v513_v44 = vsel %vm489_vm7, %v5345_v17, %v5347_v18  ;;  %v5932_v15 = vsel %vm495_vm9, %v5349_v19, %v5351_v20 }
  0xd3   : > { %v602_v24 = vunpack.i.h.s16 %v569_v14  ;;  %v5921_v52 = vpack.i.b16 %v569_v14, %v569_v14  ;;  %v548_v6 = vrot.slane %v546_v38, 1  ;;  %v1864_v46 = vpack.c.b16 %v1800_v5, %v1784_v10 }
  0xd4   : > { %v1865_v61 = vpack.c.b16 %v1801_v49, %v1785_v1  ;;  %v5927_v39 = vsel %vm493_vm5, %v510_v13, %v513_v44  ;;  %v5945_v19 = vsel %vm499_vm10, %v5353_v21, %v5355_v22 }
  0xd5   : > { %v5934_v47 = vpack.i.b16 %v602_v24, %v602_v24  ;;  %v695_v16 = vperm.slane %v5921_v52, 0  ;;  %v696_v51 = vperm.slane %v5921_v52, 1  ;;  %v697_v2 = vperm.slane %v5921_v52, 2  ;;  %2082 = vmatpush.bf16.msra.mxu2 %v1864_v46 }
  0xd6   : > { %2096 = vmatpush.bf16.msra.mxu3 %v1865_v61  ;;  %v698_v17 = vperm.slane %v5921_v52, 3  ;;  %v598_v18 = vunpack.i.h.s16 %v548_v6  ;;  %v5940_v1 = vpack.i.b16 %v548_v6, %v548_v6 }
  0xd7   : > { %v711_v20 = vperm.slane %v5934_v47, 0  ;;  %v712_v10 = vperm.slane %v5934_v47, 1  ;;  %v1040_v60 = vpack.i.b16 %v695_v16, %v695_v16  ;;  %v1044_v9 = vpack.i.b16 %v696_v51, %v696_v51 }
  0xd8   : > { %v713_v14 = vperm.slane %v5934_v47, 2  ;;  %v714_v28 = vperm.slane %v5934_v47, 3  ;;  %v1048_v5 = vpack.i.b16 %v697_v2, %v697_v2  ;;  %v1052_v49 = vpack.i.b16 %v698_v17, %v698_v17 }
  0xd9   : > { %v1042_v38 = vperm.slane %v1040_v60, 0  ;;  %v1046_v13 = vperm.slane %v1044_v9, 0  ;;  %v1104_v24 = vpack.i.b16 %v711_v20, %v711_v20  ;;  %v1108_v6 = vpack.i.b16 %v712_v10, %v712_v10 }
  0xda   : > { %v1050_v44 = vperm.slane %v1048_v5, 0  ;;  %v1054_v46 = vperm.slane %v1052_v49, 0  ;;  %v1112_v21 = vpack.i.b16 %v713_v14, %v713_v14  ;;  %v1116_v22 = vpack.i.b16 %v714_v28, %v714_v28 }
  0xdb   : > { %v1106_v61 = vperm.slane %v1104_v24, 0  ;;  %v1110_v30 = vperm.slane %v1108_v6, 0  ;;  %v5951_v53 = vunpack.c.l.bf16 %v1042_v38  ;;  %v5953_v16 = vunpack.c.l.bf16 %v1046_v13 }
  0xdc   : > { %v1114_v51 = vperm.slane %v1112_v21, 0  ;;  %v1118_v25 = vperm.slane %v1116_v22, 0  ;;  %v5955_v0 = vunpack.c.l.bf16 %v1050_v44  ;;  %v5957_v2 = vunpack.c.l.bf16 %v1054_v46 }
  0xdd   : > { %7660 = vst [vmem:[#allocation77_spill] sm:$0xff] %v5951_v53  ;;  %v5959_v17 = vunpack.c.l.bf16 %v1106_v61  ;;  %v5961_v20 = vunpack.c.l.bf16 %v1110_v30  ;;  %v1479_v10 = vmul.f32 %v5831_v58, %v5951_v53  ;;  %v1480_v60 = vmul.f32 %v5834_v57, %v5953_v16 }
  0xde   : > { %7661 = vst [vmem:[#allocation78_spill] sm:$0xff] %v5953_v16  ;;  %v5967_v9 = vunpack.c.l.bf16 %v1114_v51  ;;  %v5969_v14 = vunpack.c.l.bf16 %v1118_v25  ;;  %v1481_v28 = vmul.f32 %v5859_v40, %v5955_v0  ;;  %v1482_v5 = vmul.f32 %v5863_v3, %v5957_v2 }
  0xdf   : > { %7662 = vst [vmem:[#allocation79_spill] sm:$0xff] %v5955_v0  ;;  %v1495_v30 = vmul.f32 %v5831_v58, %v5959_v17  ;;  %v1496_v49 = vmul.f32 %v5834_v57, %v5961_v20  ;;  %v1571_v38 = vpack.c.bf16 %v1480_v60, %v1479_v10  ;;  %v5979_v13 = vpack.i.b16 %v598_v18, %v598_v18 }
  0xe0   : > { %7663 = vst [vmem:[#allocation80_spill] sm:$0xff] %v5957_v2  ;;  %v1497_v24 = vmul.f32 %v5859_v40, %v5967_v9  ;;  %v1498_v25 = vmul.f32 %v5863_v3, %v5969_v14  ;;  %v1572_v6 = vpack.c.bf16 %v1482_v5, %v1481_v28  ;;  %v663_v44 = vperm.slane %v5940_v1, 0 }
  0xe1   : > { %7664 = vst [vmem:[#allocation81_spill] sm:$0xff] %v5959_v17  ;;  %v1579_v46 = vpack.c.bf16 %v1496_v49, %v1495_v30  ;;  %v1750_v21 = vunpack.c.l.b16 %v1571_v38  ;;  %v1751_v22 = vunpack.c.h.b16 %v1571_v38  ;;  %v664_v61 = vperm.slane %v5940_v1, 1 }
  0xe2   : > { %7665 = vst [vmem:[#allocation82_spill] sm:$0xff] %v5961_v20  ;;  %v1580_v51 = vpack.c.bf16 %v1498_v25, %v1497_v24  ;;  %v1752_v2 = vunpack.c.l.b16 %v1572_v6  ;;  %v1753_v0 = vunpack.c.h.b16 %v1572_v6  ;;  %v679_v18 = vperm.slane %v5979_v13, 0 }
  0xe3   : > { %7666 = vst [vmem:[#allocation83_spill] sm:$0xff] %v5967_v9  ;;  %v1766_v10 = vunpack.c.l.b16 %v1579_v46  ;;  %v1767_v60 = vunpack.c.h.b16 %v1579_v46  ;;  %v680_v9 = vperm.slane %v5979_v13, 1  ;;  %v912_v20 = vpack.i.b16 %v663_v44, %v663_v44 }
  0xe4   : > { %7667 = vst [vmem:[#allocation84_spill] sm:$0xff] %v5969_v14  ;;  %v1768_v17 = vunpack.c.l.b16 %v1580_v51  ;;  %v1769_v14 = vunpack.c.h.b16 %v1580_v51  ;;  %v916_v28 = vpack.i.b16 %v664_v61, %v664_v61  ;;  %v976_v5 = vpack.i.b16 %v679_v18, %v679_v18 }
  0xe5   : > { %v1846_v16 = vpack.c.b16 %v1766_v10, %v1750_v21  ;;  %v1847_v30 = vpack.c.b16 %v1767_v60, %v1751_v22  ;;  %v914_v49 = vperm.slane %v912_v20, 0  ;;  %v980_v38 = vpack.i.b16 %v680_v9, %v680_v9 }
  0xe6   : > { %v1848_v53 = vpack.c.b16 %v1768_v17, %v1752_v2  ;;  %v1849_v35 = vpack.c.b16 %v1769_v14, %v1753_v0  ;;  %v918_v24 = vperm.slane %v916_v28, 0  ;;  %v978_v25 = vperm.slane %v976_v5, 0 }
  0xe7   : > { %2055 = vmatpush.bf16.msra.mxu0 %v1846_v16  ;;  %2069 = vmatpush.bf16.msra.mxu1 %v1847_v30  ;;  %v982_v6 = vperm.slane %v980_v38, 0  ;;  %v5989_v45 = vunpack.c.l.bf16 %v914_v49  ;;  %v665_v46 = vperm.slane %v5940_v1, 2  ;;  %v666_v44 = vperm.slane %v5940_v1, 3 }
  0xe8   : > { %2083 = vmatpush.bf16.msra.mxu2 %v1848_v53  ;;  %2097 = vmatpush.bf16.msra.mxu3 %v1849_v35  ;;  %v5993_v61 = vunpack.c.l.bf16 %v918_v24  ;;  %v5995_v21 = vunpack.c.l.bf16 %v978_v25  ;;  %v681_v2 = vperm.slane %v5979_v13, 2  ;;  %v682_v0 = vperm.slane %v5979_v13, 3 }
  0xe9   : > { %v5999_v17 = vunpack.c.l.bf16 %v982_v6  ;;  %v1447_v16 = vmul.f32 %v5831_v58, %v5989_v45  ;;  %v920_v20 = vpack.i.b16 %v665_v46, %v665_v46  ;;  %v924_v9 = vpack.i.b16 %v666_v44, %v666_v44 }
  0xea   : > { %v1448_v14 = vmul.f32 %v5834_v57, %v5993_v61  ;;  %v1463_v35 = vmul.f32 %v5831_v58, %v5995_v21  ;;  %v984_v53 = vpack.i.b16 %v681_v2, %v681_v2  ;;  %v988_v22 = vpack.i.b16 %v682_v0, %v682_v0 }
  0xeb   : > { %v1464_v51 = vmul.f32 %v5834_v57, %v5999_v17  ;;  %v922_v18 = vperm.slane %v920_v20, 0  ;;  %v926_v10 = vperm.slane %v924_v9, 0  ;;  %v521_v60 = vsel %vm503_vm6, %v5932_v15, %v5945_v19 }
  0xec   : > { %v1555_v28 = vpack.c.bf16 %v1448_v14, %v1447_v16  ;;  %v986_v5 = vperm.slane %v984_v53, 0  ;;  %v990_v30 = vperm.slane %v988_v22, 0  ;;  %v522_v49 = vsel %vm7668_vm1, %v5927_v39, %v521_v60 }
  0xed   : > { %v1563_v38 = vpack.c.bf16 %v1464_v51, %v1463_v35  ;;  %v6014_v24 = vunpack.c.l.bf16 %v922_v18  ;;  %v6016_v25 = vunpack.c.l.bf16 %v926_v10  ;;  %v594_v6 = vunpack.i.h.s16 %v522_v49 }
  0xee   : > { %v1718_v46 = vunpack.c.l.b16 %v1555_v28  ;;  %v1719_v44 = vunpack.c.h.b16 %v1555_v28  ;;  %v6018_v2 = vunpack.c.l.bf16 %v986_v5  ;;  %v6020_v0 = vunpack.c.l.bf16 %v990_v30 }
  0xef   : > { %7669 = vst [vmem:[#allocation85_spill] sm:$0xff] %v6014_v24  ;;  %v1734_v20 = vunpack.c.l.b16 %v1563_v38  ;;  %v1735_v15 = vunpack.c.h.b16 %v1563_v38  ;;  %v1449_v19 = vmul.f32 %v5859_v40, %v6014_v24  ;;  %v1450_v39 = vmul.f32 %v5863_v3, %v6016_v25 }
  0xf0   : > { %7670 = vst [vmem:[#allocation86_spill] sm:$0xff] %v6016_v25  ;;  %v1465_v16 = vmul.f32 %v5859_v40, %v6018_v2  ;;  %v1466_v9 = vmul.f32 %v5863_v3, %v6020_v0  ;;  %v6030_v14 = vpack.i.b16 %v522_v49, %v522_v49  ;;  %v6032_v35 = vpack.i.b16 %v594_v6, %v594_v6 }
  0xf1   : > { %7671 = vst [vmem:[#allocation87_spill] sm:$0xff] %v6018_v2  ;;  %v1830_v53 = vpack.c.b16 %v1734_v20, %v1718_v46  ;;  %v1831_v22 = vpack.c.b16 %v1735_v15, %v1719_v44  ;;  %v1556_v51 = vpack.c.bf16 %v1450_v39, %v1449_v19 }
  0xf2   : > { %7672 = vst [vmem:[#allocation88_spill] sm:$0xff] %v6020_v0  ;;  %v1564_v10 = vpack.c.bf16 %v1466_v9, %v1465_v16  ;;  %v631_v60 = vperm.slane %v6030_v14, 0  ;;  %v632_v28 = vperm.slane %v6030_v14, 1  ;;  %v647_v5 = vperm.slane %v6032_v35, 0 }
  0xf3   : > { %2056 = vmatpush.bf16.msra.mxu0 %v1830_v53  ;;  %2070 = vmatpush.bf16.msra.mxu1 %v1831_v22  ;;  %v1720_v30 = vunpack.c.l.b16 %v1556_v51  ;;  %v1721_v38 = vunpack.c.h.b16 %v1556_v51  ;;  %v648_v49 = vperm.slane %v6032_v35, 1  ;;  %v633_v6 = vperm.slane %v6030_v14, 2 }
  0xf4   : > { %v1736_v46 = vunpack.c.l.b16 %v1564_v10  ;;  %v1737_v44 = vunpack.c.h.b16 %v1564_v10  ;;  %v784_v20 = vpack.i.b16 %v631_v60, %v631_v60  ;;  %v788_v15 = vpack.i.b16 %v632_v28, %v632_v28  ;;  %v3285_v10 = vld [vmem:[%s7371_s6] sm:$0xff] }
  0xf5   : > { %v848_v19 = vpack.i.b16 %v647_v5, %v647_v5  ;;  %v852_v39 = vpack.i.b16 %v648_v49, %v648_v49  ;;  %v634_v16 = vperm.slane %v6030_v14, 3  ;;  %v649_v9 = vperm.slane %v6032_v35, 2  ;;  %3496 = vperm.xlu2 %4994, %v3285_v10  }
  0xf6   : > { %v1832_v18 = vpack.c.b16 %v1736_v46, %v1720_v30  ;;  %v1833_v0 = vpack.c.b16 %v1737_v44, %v1721_v38  ;;  %v786_v53 = vperm.slane %v784_v20, 0  ;;  %v790_v22 = vperm.slane %v788_v15, 0 }
  0xf7   : > { %v850_v2 = vperm.slane %v848_v19, 0  ;;  %v854_v51 = vperm.slane %v852_v39, 0  ;;  %v650_v25 = vperm.slane %v6032_v35, 3  ;;  %v792_v24 = vpack.i.b16 %v633_v6, %v633_v6 }
  0xf8   : > { %2084 = vmatpush.bf16.msra.mxu2 %v1832_v18  ;;  %2098 = vmatpush.bf16.msra.mxu3 %v1833_v0  ;;  %v6046_v60 = vunpack.c.l.bf16 %v786_v53  ;;  %v6048_v28 = vunpack.c.l.bf16 %v790_v22  ;;  %v796_v5 = vpack.i.b16 %v634_v16, %v634_v16  ;;  %v856_v30 = vpack.i.b16 %v649_v9, %v649_v9 }
  0xf9   : > { %v6050_v38 = vunpack.c.l.bf16 %v850_v2  ;;  %v6052_v49 = vunpack.c.l.bf16 %v854_v51  ;;  %v794_v46 = vperm.slane %v792_v24, 0  ;;  %v860_v44 = vpack.i.b16 %v650_v25, %v650_v25 }
  0xfa   : > { %7673 = vst [vmem:[#allocation89_spill] sm:$0xff] %v6046_v60  ;;  %v1415_v6 = vmul.f32 %v5831_v58, %v6046_v60  ;;  %v1416_v18 = vmul.f32 %v5834_v57, %v6048_v28  ;;  %v798_v0 = vperm.slane %v796_v5, 0  ;;  %v858_v20 = vperm.slane %v856_v30, 0 }
  0xfb   : > { %7674 = vst [vmem:[#allocation90_spill] sm:$0xff] %v6048_v28  ;;  %v1431_v15 = vmul.f32 %v5831_v58, %v6050_v38  ;;  %v1432_v2 = vmul.f32 %v5834_v57, %v6052_v49  ;;  %v862_v19 = vperm.slane %v860_v44, 0  ;;  %v6062_v39 = vunpack.c.l.bf16 %v794_v46 }
  0xfc   : > { %7675 = vst [vmem:[#allocation91_spill] sm:$0xff] %v6050_v38  ;;  %v1539_v24 = vpack.c.bf16 %v1416_v18, %v1415_v6  ;;  %v6064_v25 = vunpack.c.l.bf16 %v798_v0  ;;  %v6066_v16 = vunpack.c.l.bf16 %v858_v20  ;;  %v732_v9 = vperm.slane %v5803_v50, 5 }
  0xfd   : > { %7676 = vst [vmem:[#allocation92_spill] sm:$0xff] %v6052_v49  ;;  %v1547_v53 = vpack.c.bf16 %v1432_v2, %v1431_v15  ;;  %v6069_v22 = vunpack.c.l.bf16 %v862_v19  ;;  %v1417_v51 = vmul.f32 %v5859_v40, %v6062_v39  ;;  %v747_v58 = vperm.slane %v5813_v33, 4 }
  0xfe   : > { %7677 = vst [vmem:[#allocation93_spill] sm:$0xff] %v6062_v39  ;;  %v1686_v10 = vunpack.c.l.b16 %v1539_v24  ;;  %v1687_v57 = vunpack.c.h.b16 %v1539_v24  ;;  %v1418_v5 = vmul.f32 %v5863_v3, %v6064_v25  ;;  %v1433_v30 = vmul.f32 %v5859_v40, %v6066_v16 }
  0xff   : > { %7678 = vst [vmem:[#allocation94_spill] sm:$0xff] %v6064_v25  ;;  %v1702_v46 = vunpack.c.l.b16 %v1547_v53  ;;  %v1703_v44 = vunpack.c.h.b16 %v1547_v53  ;;  %v1434_v6 = vmul.f32 %v5863_v3, %v6069_v22  ;;  %v748_v18 = vperm.slane %v5813_v33, 5 }
 0x100   : > { %7679 = vst [vmem:[#allocation95_spill] sm:$0xff] %v6066_v16  ;;  %v1540_v0 = vpack.c.bf16 %v1418_v5, %v1417_v51  ;;  %v7681_v20 = vperm.slane %v5803_v50, 4  ;;  %v1188_v2 = vpack.i.b16 %v732_v9, %v732_v9  ;;  %v1248_v19 = vpack.i.b16 %v747_v58, %v747_v58  ;;  %v4997_v9 = vld [vmem:[%s5300_s15 + $0x30] sm:$0xff] }
 0x101   : > { %7680 = vst [vmem:[#allocation96_spill] sm:$0xff] %v6069_v22  ;;  %v1814_v24 = vpack.c.b16 %v1702_v46, %v1686_v10  ;;  %v1815_v25 = vpack.c.b16 %v1703_v44, %v1687_v57  ;;  %v1548_v39 = vpack.c.bf16 %v1434_v6, %v1433_v30  ;;  %v1252_v49 = vpack.i.b16 %v748_v18, %v748_v18 }
 0x102   : > { %v1184_v15 = vpack.i.b16 %v7681_v20, %v7681_v20  ;;  %v1688_v40 = vunpack.c.l.b16 %v1540_v0  ;;  %v1689_v16 = vunpack.c.h.b16 %v1540_v0  ;;  %v1190_v38 = vperm.slane %v1188_v2, 0 }
 0x103   : > { %2057 = vmatpush.bf16.msra.mxu0 %v1814_v24  ;;  %2071 = vmatpush.bf16.msra.mxu1 %v1815_v25  ;;  %v1704_v3 = vunpack.c.l.b16 %v1548_v39  ;;  %v1705_v22 = vunpack.c.h.b16 %v1548_v39  ;;  %v1250_v51 = vperm.slane %v1248_v19, 0  ;;  %v1254_v5 = vperm.slane %v1252_v49, 0  ;;  %v6100_v39 = vld [vmem:[%s7366_s1] sm:$0xff] }
 0x104   : > { %v1186_v53 = vperm.slane %v1184_v15, 0  ;;  %v6086_v20 = vunpack.c.l.bf16 %v1190_v38  ;;  %v6089_v58 = vunpack.c.l.bf16 %v4997_v9  ;;  %v6091_v10 = vunpack.c.h.bf16 %v4997_v9  ;;  %v4999_v24 = vld [vmem:[%s5300_s15 + $0x38] sm:$0xff]  ;;  %s4773_s15 = scalar_lea.hbm %s7377_s12, %s5229_s29 }
 0x105   : > { %v1816_v57 = vpack.c.b16 %v1704_v3, %v1688_v40  ;;  %v1817_v30 = vpack.c.b16 %v1705_v22, %v1689_v16  ;;  %v6093_v46 = vunpack.c.l.bf16 %v1250_v51  ;;  %v6095_v44 = vunpack.c.l.bf16 %v1254_v5  ;;  %s4777_s21 = sshll.u32 %s4773_s15, 4  ;;  %s4778_s21 = int_to_ptr.hbm [resolvable:$true] %s4777_s21 }
 0x106   : > { %v6084_v28 = vunpack.c.l.bf16 %v1186_v53  ;;  %7683 = vst [vmem:[#allocation98_spill] sm:$0xff] %v6086_v20  ;;  %4883 = vmatmul.msk.bf16.vlgmr.msra.gmra.mxu0 %vm1934_vm4, %v6100_v39  ;;  %4884 = vmatmul.msk.bf16.vlgmr.msra.gmra.mxu1 %vm1934_vm4, %v6100_v39  ;;  %v1516_v49 = vmul.f32 %v6091_v10, %v6086_v20  ;;  %v733_v25 = vperm.slane %v5803_v50, 6  ;;  %v734_v16 = vperm.slane %v5803_v50, 7  ;;  %s5075_s28 = sshra.s32 %s4778_s21, 4  ;;  %s5076_s28 = int_to_ptr.hbm [resolvable:$true] %s5075_s28 }
 0x107   : > { %7684 = vst [vmem:[#allocation99_spill] sm:$0xff] %v6093_v46  ;;  %2085 = vmatpush.bf16.msra.mxu2 %v1816_v57  ;;  %2099 = vmatpush.bf16.msra.mxu3 %v1817_v30  ;;  %v1531_v22 = vmul.f32 %v6089_v58, %v6093_v46  ;;  %v1532_v6 = vmul.f32 %v6091_v10, %v6095_v44  ;;  %v749_v18 = vperm.slane %v5813_v33, 6  ;;  %v750_v0 = vperm.slane %v5813_v33, 7  ;;  %s5077_s20 = scalar_lea.hbm %s5076_s28, 1  ;;  %p5082_p12 = scmp.lt.s32.totalorder %s5076_s28, %s7377_s12 }
 0x108   : > { %7682 = vst [vmem:[#allocation97_spill] sm:$0xff] %v6084_v28  ;;  %v1515_v38 = vmul.f32 %v6089_v58, %v6084_v28  ;;  %v1192_v2 = vpack.i.b16 %v733_v25, %v733_v25  ;;  %v1196_v19 = vpack.i.b16 %v734_v16, %v734_v16  ;;  %v6119_v40 = vunpack.c.l.bf16 %v4999_v24  ;;  %p5078_p1 = scmp.ne.s32.totalorder %s5076_s28, %s5077_s20  ;;  %p5083_p8 = scmp.lt.s32.totalorder %s5081_s11, %s5077_s20 }
 0x109   : > { %7685 = vst [vmem:[#allocation100_spill] sm:$0xff] %v6095_v44  ;;  %v1597_v53 = vpack.c.bf16 %v1532_v6, %v1531_v22  ;;  %v1256_v50 = vpack.i.b16 %v749_v18, %v749_v18  ;;  %v1260_v3 = vpack.i.b16 %v750_v0, %v750_v0  ;;  %v6121_v51 = vunpack.c.h.bf16 %v4999_v24 }
 0x10a   : > { %v1589_v15 = vpack.c.bf16 %v1516_v49, %v1515_v38  ;;  %4885 = vmatmul.msk.bf16.vlgmr.msra.gmra.mxu2 %vm1934_vm4, %v6100_v39  ;;  %4886 = vmatmul.msk.bf16.vlgmr.msra.gmra.mxu3 %vm1934_vm4, %v6100_v39  ;;  %v1194_v33 = vperm.slane %v1192_v2, 0  ;;  %v1198_v57 = vperm.slane %v1196_v19, 0  ;;  %v699_v6 = vperm.slane %v5921_v52, 4  ;;  %p5079_p3 = pnand %p5078_p1, %p5265_p13  ;;  %p5084_p7 = por %p5083_p8, %p5082_p12 }
 0x10b   : > { %v1802_v30 = vunpack.c.l.b16 %v1597_v53  ;;  %v1803_v38 = vunpack.c.h.b16 %v1597_v53  ;;  %v1258_v49 = vperm.slane %v1256_v50, 0  ;;  %v1262_v25 = vperm.slane %v1260_v3, 0 }
 0x10c   : > { %v1786_v5 = vunpack.c.l.b16 %v1589_v15  ;;  %v1787_v9 = vunpack.c.h.b16 %v1589_v15  ;;  %v6127_v16 = vunpack.c.l.bf16 %v1194_v33  ;;  %v6129_v22 = vunpack.c.l.bf16 %v1198_v57  ;;  %p5080_p5 = pneg %p5079_p3 }
 0x10d   : > { %v700_v18 = vperm.slane %v5921_v52, 5  ;;  %v6133_v44 = vunpack.c.l.bf16 %v1258_v49  ;;  %v6135_v46 = vunpack.c.l.bf16 %v1262_v25  ;;  %v715_v19 = vperm.slane %v5934_v47, 4 }
 0x10e   : > { %7686 = vst [vmem:[#allocation101_spill] sm:$0xff] %v6127_v16  ;;  %v1866_v0 = vpack.c.b16 %v1802_v30, %v1786_v5  ;;  %v1867_v24 = vpack.c.b16 %v1803_v38, %v1787_v9  ;;  %v1517_v15 = vmul.f32 %v6119_v40, %v6127_v16  ;;  %v1518_v2 = vmul.f32 %v6121_v51, %v6129_v22  ;;  %p5085_p9 = pnand %p5084_p7, %p5080_p5 }
 0x10f   : > { %7687 = vst [vmem:[#allocation102_spill] sm:$0xff] %v6129_v22  ;;  %v716_v53 = vperm.slane %v5934_v47, 5  ;;  %v1533_v50 = vmul.f32 %v6119_v40, %v6133_v44  ;;  %v1534_v3 = vmul.f32 %v6121_v51, %v6135_v46  ;;  %v1056_v5 = vpack.i.b16 %v699_v6, %v699_v6 }
 0x110   : > { %7688 = vst [vmem:[#allocation103_spill] sm:$0xff] %v6133_v44  ;;  %2110 = vmatpush.bf16.msrb.mxu0 %v1866_v0  ;;  %2124 = vmatpush.bf16.msrb.mxu1 %v1867_v24  ;;  %v701_v9 = vperm.slane %v5921_v52, 6  ;;  %v1590_v33 = vpack.c.bf16 %v1518_v2, %v1517_v15  ;;  %v1060_v57 = vpack.i.b16 %v700_v18, %v700_v18  ;;  %v702_v22 = vperm.slane %v5921_v52, 7  ;;  %v2202_v18 = vld [vmem:[%s7372_s7] sm:$0xff] }
 0x111   : > { %7689 = vst [vmem:[#allocation104_spill] sm:$0xff] %v6135_v46  ;;  %v1120_v30 = vpack.i.b16 %v715_v19, %v715_v19  ;;  %v1124_v38 = vpack.i.b16 %v716_v53, %v716_v53  ;;  %v1598_v49 = vpack.c.bf16 %v1534_v3, %v1533_v50  ;;  %v1058_v25 = vperm.slane %v1056_v5, 0  ;;  %2205 = vperm.xlu2 %4994, %v2202_v18  }
 0x112   : > { %v717_v0 = vperm.slane %v5934_v47, 6  ;;  %v1788_v24 = vunpack.c.l.b16 %v1590_v33  ;;  %v1789_v16 = vunpack.c.h.b16 %v1590_v33  ;;  %v1062_v20 = vperm.slane %v1060_v57, 0 }
 0x113   : > { %v1122_v44 = vperm.slane %v1120_v30, 0  ;;  %v1804_v28 = vunpack.c.l.b16 %v1598_v49  ;;  %v1805_v60 = vunpack.c.h.b16 %v1598_v49  ;;  %v1126_v46 = vperm.slane %v1124_v38, 0 }
 0x114   : > { %v6150_v6 = vunpack.c.l.bf16 %v1058_v25  ;;  %v6155_v15 = vunpack.c.l.bf16 %v1062_v20  ;;  %v718_v52 = vperm.slane %v5934_v47, 7  ;;  %v1064_v19 = vpack.i.b16 %v701_v9, %v701_v9 }
 0x115   : > { %v6157_v2 = vunpack.c.l.bf16 %v1122_v44  ;;  %v1868_v53 = vpack.c.b16 %v1804_v28, %v1788_v24  ;;  %v1869_v50 = vpack.c.b16 %v1805_v60, %v1789_v16  ;;  %v6160_v3 = vunpack.c.l.bf16 %v1126_v46 }
 0x116   : > { %7690 = vst [vmem:[#allocation105_spill] sm:$0xff] %v6150_v6  ;;  %v1483_v5 = vmul.f32 %v6089_v58, %v6150_v6  ;;  %v1484_v33 = vmul.f32 %v6091_v10, %v6155_v15  ;;  %v1066_v57 = vperm.slane %v1064_v19, 0  ;;  %v1068_v44 = vpack.i.b16 %v702_v22, %v702_v22 }
 0x117   : > { %7691 = vst [vmem:[#allocation106_spill] sm:$0xff] %v6155_v15  ;;  %v1499_v20 = vmul.f32 %v6089_v58, %v6157_v2  ;;  %2138 = vmatpush.bf16.msrb.mxu2 %v1868_v53  ;;  %2152 = vmatpush.bf16.msrb.mxu3 %v1869_v50  ;;  %v1500_v47 = vmul.f32 %v6091_v10, %v6160_v3  ;;  %v667_v46 = vperm.slane %v5940_v1, 4  ;;  %v668_v38 = vperm.slane %v5940_v1, 5 }
 0x118   : > { %7692 = vst [vmem:[#allocation107_spill] sm:$0xff] %v6157_v2  ;;  %v1128_v28 = vpack.i.b16 %v717_v0, %v717_v0  ;;  %v1132_v60 = vpack.i.b16 %v718_v52, %v718_v52  ;;  %v1573_v16 = vpack.c.bf16 %v1484_v33, %v1483_v5  ;;  %v1070_v9 = vperm.slane %v1068_v44, 0 }
 0x119   : > { %7693 = vst [vmem:[#allocation108_spill] sm:$0xff] %v6160_v3  ;;  %v6171_v30 = vunpack.c.l.bf16 %v1066_v57  ;;  %v1581_v49 = vpack.c.bf16 %v1500_v47, %v1499_v20  ;;  %v683_v22 = vperm.slane %v5979_v13, 4  ;;  %v684_v57 = vperm.slane %v5979_v13, 5 }
 0x11a   : > { %v1130_v25 = vperm.slane %v1128_v28, 0  ;;  %v1134_v24 = vperm.slane %v1132_v60, 0  ;;  %v1754_v18 = vunpack.c.l.b16 %v1573_v16  ;;  %v1755_v19 = vunpack.c.h.b16 %v1573_v16 }
 0x11b   : > { %7694 = vst [vmem:[#allocation109_spill] sm:$0xff] %v6171_v30  ;;  %v6175_v53 = vunpack.c.l.bf16 %v1070_v9  ;;  %v1485_v0 = vmul.f32 %v6119_v40, %v6171_v30  ;;  %v1770_v52 = vunpack.c.l.b16 %v1581_v49  ;;  %v1771_v50 = vunpack.c.h.b16 %v1581_v49 }
 0x11c   : > { %v6179_v5 = vunpack.c.l.bf16 %v1130_v25  ;;  %v6181_v33 = vunpack.c.l.bf16 %v1134_v24  ;;  %v928_v44 = vpack.i.b16 %v667_v46, %v667_v46  ;;  %v932_v47 = vpack.i.b16 %v668_v38, %v668_v38 }
 0x11d   : > { %7695 = vst [vmem:[#allocation110_spill] sm:$0xff] %v6175_v53  ;;  %v1486_v20 = vmul.f32 %v6121_v51, %v6175_v53  ;;  %v1850_v28 = vpack.c.b16 %v1770_v52, %v1754_v18  ;;  %v1851_v60 = vpack.c.b16 %v1771_v50, %v1755_v19  ;;  %v992_v24 = vpack.i.b16 %v683_v22, %v683_v22 }
 0x11e   : > { %7696 = vst [vmem:[#allocation111_spill] sm:$0xff] %v6179_v5  ;;  %v1501_v16 = vmul.f32 %v6119_v40, %v6179_v5  ;;  %v1502_v9 = vmul.f32 %v6121_v51, %v6181_v33  ;;  %v930_v25 = vperm.slane %v928_v44, 0  ;;  %v934_v30 = vperm.slane %v932_v47, 0 }
 0x11f   : > { %7697 = vst [vmem:[#allocation112_spill] sm:$0xff] %v6181_v33  ;;  %v1574_v49 = vpack.c.bf16 %v1486_v20, %v1485_v0  ;;  %2111 = vmatpush.bf16.msrb.mxu0 %v1850_v28  ;;  %2125 = vmatpush.bf16.msrb.mxu1 %v1851_v60  ;;  %v996_v53 = vpack.i.b16 %v684_v57, %v684_v57  ;;  %v669_v2 = vperm.slane %v5940_v1, 6  ;;  %v670_v46 = vperm.slane %v5940_v1, 7 }
 0x120   : > { %v1582_v3 = vpack.c.bf16 %v1502_v9, %v1501_v16  ;;  %v994_v19 = vperm.slane %v992_v24, 0  ;;  %v6192_v52 = vunpack.c.l.bf16 %v930_v25  ;;  %v6194_v0 = vunpack.c.l.bf16 %v934_v30 }
 0x121   : > { %v1756_v38 = vunpack.c.l.b16 %v1574_v49  ;;  %v1757_v18 = vunpack.c.h.b16 %v1574_v49  ;;  %v998_v33 = vperm.slane %v996_v53, 0  ;;  %v685_v57 = vperm.slane %v5979_v13, 6 }
 0x122   : > { %7698 = vst [vmem:[#allocation113_spill] sm:$0xff] %v6192_v52  ;;  %v1772_v50 = vunpack.c.l.b16 %v1582_v3  ;;  %v1773_v5 = vunpack.c.h.b16 %v1582_v3  ;;  %v6196_v20 = vunpack.c.l.bf16 %v994_v19  ;;  %v1451_v22 = vmul.f32 %v6089_v58, %v6192_v52 }
 0x123   : > { %7699 = vst [vmem:[#allocation114_spill] sm:$0xff] %v6194_v0  ;;  %v686_v44 = vperm.slane %v5979_v13, 7  ;;  %v6202_v28 = vunpack.c.l.bf16 %v998_v33  ;;  %v1452_v60 = vmul.f32 %v6091_v10, %v6194_v0  ;;  %v936_v30 = vpack.i.b16 %v669_v2, %v669_v2 }
 0x124   : > { %7700 = vst [vmem:[#allocation115_spill] sm:$0xff] %v6196_v20  ;;  %v1852_v1 = vpack.c.b16 %v1772_v50, %v1756_v38  ;;  %v1853_v47 = vpack.c.b16 %v1773_v5, %v1757_v18  ;;  %v1467_v3 = vmul.f32 %v6089_v58, %v6196_v20  ;;  %v940_v53 = vpack.i.b16 %v670_v46, %v670_v46 }
 0x125   : > { %7701 = vst [vmem:[#allocation116_spill] sm:$0xff] %v6202_v28  ;;  %v1000_v16 = vpack.i.b16 %v685_v57, %v685_v57  ;;  %v1468_v9 = vmul.f32 %v6091_v10, %v6202_v28  ;;  %v1557_v49 = vpack.c.bf16 %v1452_v60, %v1451_v22  ;;  %v1004_v13 = vpack.i.b16 %v686_v44, %v686_v44 }
 0x126   : > { %2139 = vmatpush.bf16.msrb.mxu2 %v1852_v1  ;;  %2153 = vmatpush.bf16.msrb.mxu3 %v1853_v47  ;;  %v635_v5 = vperm.slane %v6030_v14, 4  ;;  %v938_v33 = vperm.slane %v936_v30, 0  ;;  %v942_v25 = vperm.slane %v940_v53, 0  ;;  %v636_v38 = vperm.slane %v6030_v14, 5 }
 0x127   : > { %v1002_v24 = vperm.slane %v1000_v16, 0  ;;  %v1565_v18 = vpack.c.bf16 %v1468_v9, %v1467_v3  ;;  %v1722_v19 = vunpack.c.l.b16 %v1557_v49  ;;  %v1723_v50 = vunpack.c.h.b16 %v1557_v49 }
 0x128   : > { %v1006_v2 = vperm.slane %v1004_v13, 0  ;;  %v6212_v46 = vunpack.c.l.bf16 %v938_v33  ;;  %v6214_v57 = vunpack.c.l.bf16 %v942_v25  ;;  %v651_v22 = vperm.slane %v6032_v35, 4 }
 0x129   : > { %v6216_v1 = vunpack.c.l.bf16 %v1002_v24  ;;  %v1738_v44 = vunpack.c.l.b16 %v1565_v18  ;;  %v1739_v47 = vunpack.c.h.b16 %v1565_v18  ;;  %v652_v30 = vperm.slane %v6032_v35, 5 }
 0x12a   : > { %7702 = vst [vmem:[#allocation117_spill] sm:$0xff] %v6212_v46  ;;  %v6219_v60 = vunpack.c.l.bf16 %v1006_v2  ;;  %v1453_v3 = vmul.f32 %v6119_v40, %v6212_v46  ;;  %v1454_v53 = vmul.f32 %v6121_v51, %v6214_v57  ;;  %v800_v9 = vpack.i.b16 %v635_v5, %v635_v5 }
 0x12b   : > { %7703 = vst [vmem:[#allocation118_spill] sm:$0xff] %v6214_v57  ;;  %v1469_v16 = vmul.f32 %v6119_v40, %v6216_v1  ;;  %v1834_v49 = vpack.c.b16 %v1738_v44, %v1722_v19  ;;  %v1835_v13 = vpack.c.b16 %v1739_v47, %v1723_v50  ;;  %v804_v25 = vpack.i.b16 %v636_v38, %v636_v38 }
 0x12c   : > { %7704 = vst [vmem:[#allocation119_spill] sm:$0xff] %v6216_v1  ;;  %v1470_v33 = vmul.f32 %v6121_v51, %v6219_v60  ;;  %v1558_v24 = vpack.c.bf16 %v1454_v53, %v1453_v3  ;;  %v802_v18 = vperm.slane %v800_v9, 0  ;;  %v864_v2 = vpack.i.b16 %v651_v22, %v651_v22 }
 0x12d   : > { %7705 = vst [vmem:[#allocation120_spill] sm:$0xff] %v6219_v60  ;;  %v868_v28 = vpack.i.b16 %v652_v30, %v652_v30  ;;  %2112 = vmatpush.bf16.msrb.mxu0 %v1834_v49  ;;  %2126 = vmatpush.bf16.msrb.mxu1 %v1835_v13  ;;  %v806_v20 = vperm.slane %v804_v25, 0  ;;  %v637_v57 = vperm.slane %v6030_v14, 6  ;;  %v638_v0 = vperm.slane %v6030_v14, 7 }
 0x12e   : > { %v1566_v46 = vpack.c.bf16 %v1470_v33, %v1469_v16  ;;  %v1724_v1 = vunpack.c.l.b16 %v1558_v24  ;;  %v1725_v5 = vunpack.c.h.b16 %v1558_v24  ;;  %v866_v19 = vperm.slane %v864_v2, 0 }
 0x12f   : > { %v870_v50 = vperm.slane %v868_v28, 0  ;;  %v6232_v60 = vunpack.c.l.bf16 %v802_v18  ;;  %v6234_v38 = vunpack.c.l.bf16 %v806_v20  ;;  %v653_v3 = vperm.slane %v6032_v35, 6 }
 0x130   : > { %v1740_v44 = vunpack.c.l.b16 %v1566_v46  ;;  %v1741_v47 = vunpack.c.h.b16 %v1566_v46  ;;  %v6236_v22 = vunpack.c.l.bf16 %v866_v19  ;;  %v654_v53 = vperm.slane %v6032_v35, 7 }
 0x131   : > { %v6238_v30 = vunpack.c.l.bf16 %v870_v50  ;;  %v1419_v9 = vmul.f32 %v6089_v58, %v6232_v60  ;;  %v1420_v28 = vmul.f32 %v6091_v10, %v6234_v38  ;;  %v808_v49 = vpack.i.b16 %v637_v57, %v637_v57 }
 0x132   : > { %7706 = vst [vmem:[#allocation121_spill] sm:$0xff] %v6236_v22  ;;  %v1836_v16 = vpack.c.b16 %v1740_v44, %v1724_v1  ;;  %v1837_v14 = vpack.c.b16 %v1741_v47, %v1725_v5  ;;  %v1435_v20 = vmul.f32 %v6089_v58, %v6236_v22  ;;  %v812_v13 = vpack.i.b16 %v638_v0, %v638_v0 }
 0x133   : > { %v1436_v46 = vmul.f32 %v6091_v10, %v6238_v30  ;;  %v1541_v33 = vpack.c.bf16 %v1420_v28, %v1419_v9  ;;  %v872_v35 = vpack.i.b16 %v653_v3, %v653_v3  ;;  %v876_v1 = vpack.i.b16 %v654_v53, %v654_v53 }
 0x134   : > { %2140 = vmatpush.bf16.msrb.mxu2 %v1836_v16  ;;  %2154 = vmatpush.bf16.msrb.mxu3 %v1837_v14  ;;  %v810_v24 = vperm.slane %v808_v49, 0  ;;  %v814_v18 = vperm.slane %v812_v13, 0 }
 0x135   : > { %v1549_v25 = vpack.c.bf16 %v1436_v46, %v1435_v20  ;;  %v1690_v2 = vunpack.c.l.b16 %v1541_v33  ;;  %v1691_v5 = vunpack.c.h.b16 %v1541_v33  ;;  %v874_v19 = vperm.slane %v872_v35, 0  ;;  %v6270_v35 = vpop.f32.mrf.mxu0 }
 0x136   : > { %v878_v50 = vperm.slane %v876_v1, 0  ;;  %v6250_v58 = vunpack.c.l.bf16 %v810_v24  ;;  %v6252_v22 = vunpack.c.l.bf16 %v814_v18  ;;  %7709 = vst [vmem:[#allocation124_spill] sm:$0xff] %v6270_v35  ;;  %v6280_v24 = vpop.f32.mrf.mxu3 }
 0x137   : > { %v1706_v44 = vunpack.c.l.b16 %v1549_v25  ;;  %v1707_v47 = vunpack.c.h.b16 %v1549_v25  ;;  %v6254_v10 = vunpack.c.l.bf16 %v874_v19  ;;  %v6278_v25 = vpop.f32.mrf.mxu2  ;;  %7712 = vst [vmem:[#allocation127_spill] sm:$0xff] %v6280_v24 }
 0x138   : > { %7707 = vst [vmem:[#allocation122_spill] sm:$0xff] %v6252_v22  ;;  %v6256_v0 = vunpack.c.l.bf16 %v878_v50  ;;  %v1421_v53 = vmul.f32 %v6119_v40, %v6250_v58  ;;  %v1422_v16 = vmul.f32 %v6121_v51, %v6252_v22 }
 0x139   : > { %v1818_v57 = vpack.c.b16 %v1706_v44, %v1690_v2  ;;  %v1819_v3 = vpack.c.b16 %v1707_v47, %v1691_v5  ;;  %v1437_v14 = vmul.f32 %v6119_v40, %v6254_v10  ;;  %v6272_v40 = vpop.f32.mrf.mxu1  ;;  %7711 = vst [vmem:[#allocation126_spill] sm:$0xff] %v6278_v25  ;;  %v6282_v5 = vpop.permute.xlu0 %1606 }
 0x13a   : > { %7708 = vst [vmem:[#allocation123_spill] sm:$0xff] %v6256_v0  ;;  %v1438_v9 = vmul.f32 %v6121_v51, %v6256_v0  ;;  %v1542_v28 = vpack.c.bf16 %v1422_v16, %v1421_v53 }
 0x13b   : > { %2113 = vmatpush.bf16.msrb.mxu0 %v1818_v57  ;;  %2127 = vmatpush.bf16.msrb.mxu1 %v1819_v3  ;;  %7710 = vst [vmem:[#allocation125_spill] sm:$0xff] %v6272_v40 }
 0x13c   : > { %v1550_v20 = vpack.c.bf16 %v1438_v9, %v1437_v14  ;;  %v1692_v46 = vunpack.c.l.b16 %v1542_v28  ;;  %v1693_v49 = vunpack.c.h.b16 %v1542_v28 }
 0x13d   : > { %v1949_v18 = vpop.f32.mrf.mxu0 }
 0x13e   : > { %v1708_v13 = vunpack.c.l.b16 %v1550_v20  ;;  %v1709_v33 = vunpack.c.h.b16 %v1550_v20  ;;  %4887 = vmatmul.msk.bf16.vlgmr.msrb.gmra.mxu0 %vm1934_vm4, %v6100_v39  ;;  %4888 = vmatmul.msk.bf16.vlgmr.msrb.gmra.mxu1 %vm1934_vm4, %v6100_v39  ;;  %v1950_v19 = vadd.f32 %v1949_v18, %v6282_v5  ;;  %v1991_v3 = vpop.f32.mrf.mxu3 }
 0x13f   : > { %v1977_v44 = vpop.f32.mrf.mxu2 }
 0x140   : > { %v1820_v1 = vpack.c.b16 %v1708_v13, %v1692_v46  ;;  %v1821_v51 = vpack.c.b16 %v1709_v33, %v1693_v49  ;;  %v2178_v47 = vmax.f32 %v1950_v19, 0.0  ;;  %v1978_v53 = vadd.f32 %v1977_v44, %v6282_v5 }
 0x141   : > { %v1963_v2 = vpop.f32.mrf.mxu1 }
 0x142   : > { %2141 = vmatpush.bf16.msrb.mxu2 %v1820_v1  ;;  %2155 = vmatpush.bf16.msrb.mxu3 %v1821_v51  ;;  %v1964_v50 = vadd.f32 %v1963_v2, %v6282_v5  ;;  %v2180_v14 = vmax.f32 %v1978_v53, 0.0 }
 0x144   : > { %v2179_v57 = vmax.f32 %v1964_v50, 0.0 }
 0x145   : > { %4889 = vmatmul.msk.bf16.vlgmr.msrb.gmra.mxu2 %vm1934_vm4, %v6100_v39  ;;  %4890 = vmatmul.msk.bf16.vlgmr.msrb.gmra.mxu3 %vm1934_vm4, %v6100_v39  ;;  %v1992_v39 = vadd.f32 %v1991_v3, %v6282_v5 }
 0x146   : > { %v2194_v16 = vpack.c.bf16 %v2179_v57, %v2178_v47 }
 0x147   : > { %v2181_v9 = vmax.f32 %v1992_v39, 0.0 }
 0x148   : > { %v6288_v28 = vunpack.c.l.bf16 %v2194_v16  ;;  %v6290_v20 = vunpack.c.h.bf16 %v2194_v16 }
 0x149   : > { %v2195_v46 = vpack.c.bf16 %v2181_v9, %v2180_v14 }
 0x14a   : > { %v2452_v49 = vmul.f32 %v6288_v28, %v5437_v31  ;;  %v2453_v13 = vmul.f32 %v6290_v20, %v5439_v32  ;;  %v2468_v33 = vmul.f32 %v6288_v28, %v5445_v42  ;;  %v2469_v1 = vmul.f32 %v6290_v20, %v5447_v43 }
 0x14b   : > { %v2420_v51 = vmul.f32 %v6288_v28, %v5484_v26  ;;  %v2421_v18 = vmul.f32 %v6290_v20, %v5486_v27  ;;  %v6304_v2 = vunpack.c.l.bf16 %v2195_v46  ;;  %v6306_v19 = vunpack.c.h.bf16 %v2195_v46 }
 0x14c   : > { %v2532_v50 = vpack.c.bf16 %v2453_v13, %v2452_v49  ;;  %v2540_v44 = vpack.c.bf16 %v2469_v1, %v2468_v33  ;;  %v2436_v47 = vmul.f32 %v6288_v28, %v5488_v29  ;;  %v2437_v57 = vmul.f32 %v6290_v20, %v5490_v34  ;;  %v6318_v13 = vpop.f32.mrf.mxu0  ;;  %v6320_v33 = vpop.f32.mrf.mxu1 }
 0x14d   : > { %v2516_v14 = vpack.c.bf16 %v2421_v18, %v2420_v51  ;;  %v2454_v25 = vmul.f32 %v6304_v2, %v5441_v36  ;;  %v2455_v46 = vmul.f32 %v6306_v19, %v5443_v37  ;;  %v2470_v49 = vmul.f32 %v6304_v2, %v5453_v48  ;;  %7713 = vst [vmem:[#allocation128_spill] sm:$0xff] %v6318_v13  ;;  %v7715_v18 = vld [vmem:[#allocation19_spill] sm:$0xff] }
 0x14e   : > { %v2723_v3 = vunpack.c.l.b16 %v2532_v50  ;;  %v2739_v53 = vunpack.c.l.b16 %v2540_v44  ;;  %v2724_v39 = vunpack.c.h.b16 %v2532_v50  ;;  %v2740_v16 = vunpack.c.h.b16 %v2540_v44  ;;  %7714 = vst [vmem:[#allocation129_spill] sm:$0xff] %v6320_v33 }
 0x14f   : > { %v2524_v9 = vpack.c.bf16 %v2437_v57, %v2436_v47  ;;  %v2691_v40 = vunpack.c.l.b16 %v2516_v14  ;;  %v2692_v44 = vunpack.c.h.b16 %v2516_v14  ;;  %v2471_v47 = vmul.f32 %v6306_v19, %v7715_v18  ;;  %v7722_v18 = vld [vmem:[#allocation22_spill] sm:$0xff] }
 0x150   : > { %v2803_v24 = vpack.c.b16 %v2739_v53, %v2723_v3  ;;  %v2804_v1 = vpack.c.b16 %v2740_v16, %v2724_v39  ;;  %v2533_v57 = vpack.c.bf16 %v2455_v46, %v2454_v25 }
 0x151   : > { %v2707_v50 = vunpack.c.l.b16 %v2524_v9  ;;  %v2708_v51 = vunpack.c.h.b16 %v2524_v9  ;;  %v2541_v35 = vpack.c.bf16 %v2471_v47, %v2470_v49  ;;  %v2388_v49 = vmul.f32 %v6288_v28, %v5528_v56 }
 0x152   : > { %2890 = vmatpush.bf16.msra.mxu0 %v2803_v24  ;;  %2904 = vmatpush.bf16.msra.mxu1 %v2804_v1  ;;  %v2725_v37 = vunpack.c.l.b16 %v2533_v57  ;;  %v2726_v48 = vunpack.c.h.b16 %v2533_v57  ;;  %v2389_v1 = vmul.f32 %v6290_v20, %v5530_v55  ;;  %v7719_v57 = vld [vmem:[#allocation21_spill] sm:$0xff] }
 0x153   : > { %v2787_v3 = vpack.c.b16 %v2707_v50, %v2691_v40  ;;  %v2788_v53 = vpack.c.b16 %v2708_v51, %v2692_v44  ;;  %v2741_v13 = vunpack.c.l.b16 %v2541_v35  ;;  %v2742_v36 = vunpack.c.h.b16 %v2541_v35  ;;  %v7716_v35 = vld [vmem:[#allocation24_spill] sm:$0xff] }
 0x154   : > { %v2005_v24 = vpop.f32.mrf.mxu0  ;;  %v2019_v14 = vpop.f32.mrf.mxu1  ;;  %v7718_v51 = vld [vmem:[#allocation20_spill] sm:$0xff] }
 0x155   : > { %v2805_v39 = vpack.c.b16 %v2741_v13, %v2725_v37  ;;  %v2806_v16 = vpack.c.b16 %v2742_v36, %v2726_v48  ;;  %v2006_v9 = vadd.f32 %v2005_v24, %v6282_v5  ;;  %v2020_v25 = vadd.f32 %v2019_v14, %v6282_v5  ;;  %v7717_v36 = vld [vmem:[#allocation25_spill] sm:$0xff] }
 0x156   : > { %2891 = vmatpush.bf16.msra.mxu0 %v2787_v3  ;;  %2905 = vmatpush.bf16.msra.mxu1 %v2788_v53  ;;  %v2404_v37 = vmul.f32 %v6288_v28, %v7716_v35  ;;  %v2405_v48 = vmul.f32 %v6290_v20, %v7717_v36  ;;  %v2500_v13 = vpack.c.bf16 %v2389_v1, %v2388_v49  ;;  %v6338_v53 = vpop.f32.mrf.mxu2  ;;  %v7745_v36 = vld [vmem:[#allocation53_spill] sm:$0xff] }
 0x157   : > { %2918 = vmatpush.bf16.msra.mxu2 %v2805_v39  ;;  %2932 = vmatpush.bf16.msra.mxu3 %v2806_v16  ;;  %v2182_v46 = vmax.f32 %v2006_v9, 0.0  ;;  %v2183_v40 = vmax.f32 %v2020_v25, 0.0  ;;  %v2422_v47 = vmul.f32 %v6304_v2, %v7718_v51  ;;  %v2423_v3 = vmul.f32 %v6306_v19, %v7719_v57  ;;  %7720 = vst [vmem:[#allocation24_spill] sm:$0xff] %v6338_v53  ;;  %v6340_v39 = vpop.f32.mrf.mxu3  ;;  %v7727_v51 = vld [vmem:[#allocation28_spill] sm:$0xff] }
 0x158   : > { %v2508_v50 = vpack.c.bf16 %v2405_v48, %v2404_v37  ;;  %7721 = vst [vmem:[#allocation130_spill] sm:$0xff] %v6340_v39  ;;  %v2659_v16 = vunpack.c.l.b16 %v2500_v13  ;;  %v2660_v14 = vunpack.c.h.b16 %v2500_v13  ;;  %v2438_v49 = vmul.f32 %v6304_v2, %v7722_v18 }
 0x159   : > { %v2196_v44 = vpack.c.bf16 %v2183_v40, %v2182_v46  ;;  %v7723_v46 = vld [vmem:[#allocation23_spill] sm:$0xff]  ;;  %v2517_v37 = vpack.c.bf16 %v2423_v3, %v2422_v47  ;;  %v2356_v39 = vmul.f32 %v6288_v28, %v5594_v63  ;;  %v2357_v13 = vmul.f32 %v6290_v20, %v5596_v7  ;;  %v7744_v63 = vld [vmem:[#allocation52_spill] sm:$0xff] }
 0x15a   : > { %v2675_v24 = vunpack.c.l.b16 %v2508_v50  ;;  %v2676_v9 = vunpack.c.h.b16 %v2508_v50  ;;  %v2439_v40 = vmul.f32 %v6306_v19, %v7723_v46  ;;  %v2372_v50 = vmul.f32 %v6288_v28, %v5602_v59  ;;  %v7728_v59 = vld [vmem:[#allocation29_spill] sm:$0xff] }
 0x15b   : > { %v6346_v1 = vunpack.c.l.bf16 %v2196_v44  ;;  %v6350_v53 = vunpack.c.h.bf16 %v2196_v44  ;;  %v2484_v47 = vpack.c.bf16 %v2357_v13, %v2356_v39  ;;  %v7726_v44 = vld [vmem:[#allocation27_spill] sm:$0xff]  ;;  %v2406_v28 = vmul.f32 %v6304_v2, %v7727_v51 }
 0x15c   : > { %v2771_v25 = vpack.c.b16 %v2675_v24, %v2659_v16  ;;  %v2772_v33 = vpack.c.b16 %v2676_v9, %v2660_v14  ;;  %v2525_v48 = vpack.c.bf16 %v2439_v40, %v2438_v49  ;;  %v7724_v16 = vld [vmem:[#allocation35_spill] sm:$0xff]  ;;  %v2693_v14 = vunpack.c.l.b16 %v2517_v37  ;;  %v7725_v49 = vld [vmem:[#allocation26_spill] sm:$0xff] }
 0x15d   : > { %v2373_v24 = vmul.f32 %v6290_v20, %v7724_v16  ;;  %v2390_v40 = vmul.f32 %v6304_v2, %v7725_v49  ;;  %v2391_v46 = vmul.f32 %v6306_v19, %v7726_v44  ;;  %v2407_v20 = vmul.f32 %v6306_v19, %v7728_v59 }
 0x15e   : > { %2892 = vmatpush.bf16.msra.mxu0 %v2771_v25  ;;  %2906 = vmatpush.bf16.msra.mxu1 %v2772_v33  ;;  %v2709_v9 = vunpack.c.l.b16 %v2525_v48  ;;  %v2694_v25 = vunpack.c.h.b16 %v2517_v37  ;;  %v2710_v33 = vunpack.c.h.b16 %v2525_v48  ;;  %v2627_v16 = vunpack.c.l.b16 %v2484_v47  ;;  %v2033_v39 = vpop.f32.mrf.mxu2 }
 0x15f   : > { %v2492_v3 = vpack.c.bf16 %v2373_v24, %v2372_v50  ;;  %v2628_v37 = vunpack.c.h.b16 %v2484_v47  ;;  %v2047_v13 = vpop.f32.mrf.mxu3  ;;  %v2501_v50 = vpack.c.bf16 %v2391_v46, %v2390_v40  ;;  %v2509_v24 = vpack.c.bf16 %v2407_v20, %v2406_v28 }
 0x160   : > { %v2789_v18 = vpack.c.b16 %v2709_v9, %v2693_v14  ;;  %v2790_v57 = vpack.c.b16 %v2710_v33, %v2694_v25  ;;  %v2456_v14 = vmul.f32 %v6346_v1, %v5626_v62  ;;  %v2457_v59 = vmul.f32 %v6350_v53, %v5628_v54 }
 0x161   : > { %v2643_v7 = vunpack.c.l.b16 %v2492_v3  ;;  %v2644_v48 = vunpack.c.h.b16 %v2492_v3  ;;  %v2472_v47 = vmul.f32 %v6346_v1, %v5630_v41  ;;  %v2661_v3 = vunpack.c.l.b16 %v2501_v50 }
 0x162   : > { %2919 = vmatpush.bf16.msra.mxu2 %v2789_v18  ;;  %2933 = vmatpush.bf16.msra.mxu3 %v2790_v57  ;;  %v2677_v18 = vunpack.c.l.b16 %v2509_v24  ;;  %v6379_v57 = vld [vmem:[%s7368_s3] sm:$0xff]  ;;  %v2662_v46 = vunpack.c.h.b16 %v2501_v50  ;;  %v2678_v40 = vunpack.c.h.b16 %v2509_v24  ;;  %v2034_v28 = vadd.f32 %v2033_v39, %v6282_v5 }
 0x163   : > { %v2755_v33 = vpack.c.b16 %v2643_v7, %v2627_v16  ;;  %v2756_v51 = vpack.c.b16 %v2644_v48, %v2628_v37  ;;  %v2473_v7 = vmul.f32 %v6350_v53, %v5643_v23  ;;  %v2534_v16 = vpack.c.bf16 %v2457_v59, %v2456_v14  ;;  %v7729_v48 = vld [vmem:[#allocation32_spill] sm:$0xff]  ;;  %v7732_v14 = vld [vmem:[#allocation37_spill] sm:$0xff] }
 0x164   : > { %v2048_v20 = vadd.f32 %v2047_v13, %v6282_v5  ;;  %v2773_v37 = vpack.c.b16 %v2677_v18, %v2661_v3  ;;  %v2358_v44 = vmul.f32 %v6304_v2, %v7729_v48  ;;  %v2774_v49 = vpack.c.b16 %v2678_v40, %v2662_v46  ;;  %v7731_v13 = vld [vmem:[#allocation36_spill] sm:$0xff] }
 0x165   : > { %2893 = vmatpush.bf16.msra.mxu0 %v2755_v33  ;;  %2907 = vmatpush.bf16.msra.mxu1 %v2756_v51  ;;  %v2542_v41 = vpack.c.bf16 %v2473_v7, %v2472_v47  ;;  %v2727_v54 = vunpack.c.l.b16 %v2534_v16  ;;  %v2728_v62 = vunpack.c.h.b16 %v2534_v16  ;;  %v7730_v51 = vld [vmem:[#allocation33_spill] sm:$0xff]  ;;  %v2374_v24 = vmul.f32 %v6304_v2, %v7731_v13 }
 0x166   : > { %2920 = vmatpush.bf16.msra.mxu2 %v2773_v37  ;;  %v2359_v50 = vmul.f32 %v6306_v19, %v7730_v51  ;;  %2934 = vmatpush.bf16.msra.mxu3 %v2774_v49  ;;  %v2375_v33 = vmul.f32 %v6306_v19, %v7732_v14  ;;  %v2184_v47 = vmax.f32 %v2034_v28, 0.0  ;;  %v2185_v3 = vmax.f32 %v2048_v20, 0.0  ;;  %v7738_v14 = vld [vmem:[#allocation44_spill] sm:$0xff] }
 0x167   : > { %v2743_v59 = vunpack.c.l.b16 %v2542_v41  ;;  %v2744_v39 = vunpack.c.h.b16 %v2542_v41 }
 0x168   : > { %4895 = vmatmul.msk.bf16.vlgmr.msra.gmra.mxu0 %vm1934_vm4, %v6379_v57  ;;  %4896 = vmatmul.msk.bf16.vlgmr.msra.gmra.mxu1 %vm1934_vm4, %v6379_v57  ;;  %v2485_v18 = vpack.c.bf16 %v2359_v50, %v2358_v44  ;;  %v2493_v7 = vpack.c.bf16 %v2375_v33, %v2374_v24  ;;  %v2197_v23 = vpack.c.bf16 %v2185_v3, %v2184_v47  ;;  %v7735_v24 = vld [vmem:[#allocation49_spill] sm:$0xff] }
 0x169   : > { %v2807_v46 = vpack.c.b16 %v2743_v59, %v2727_v54  ;;  %v2808_v40 = vpack.c.b16 %v2744_v39, %v2728_v62  ;;  %v2424_v54 = vmul.f32 %v6346_v1, %v5694_v12  ;;  %v7733_v62 = vld [vmem:[#allocation47_spill] sm:$0xff]  ;;  %v7734_v59 = vld [vmem:[#allocation48_spill] sm:$0xff]  ;;  %v2441_v33 = vmul.f32 %v6350_v53, %v7735_v24 }
 0x16a   : > { %v2629_v41 = vunpack.c.l.b16 %v2485_v18  ;;  %v2645_v48 = vunpack.c.l.b16 %v2493_v7  ;;  %v2630_v2 = vunpack.c.h.b16 %v2485_v18  ;;  %v2646_v13 = vunpack.c.h.b16 %v2493_v7 }
 0x16b   : > { %2946 = vmatpush.bf16.msrb.mxu0 %v2807_v46  ;;  %2960 = vmatpush.bf16.msrb.mxu1 %v2808_v40  ;;  %v2425_v44 = vmul.f32 %v6350_v53, %v7733_v62  ;;  %v2440_v39 = vmul.f32 %v6346_v1, %v7734_v59 }
 0x16c   : > { %v2757_v19 = vpack.c.b16 %v2645_v48, %v2629_v41  ;;  %v2758_v28 = vpack.c.b16 %v2646_v13, %v2630_v2  ;;  %v6411_v48 = vunpack.c.l.bf16 %v2197_v23  ;;  %v6413_v13 = vunpack.c.h.bf16 %v2197_v23 }
 0x16d   : > { %v2518_v47 = vpack.c.bf16 %v2425_v44, %v2424_v54  ;;  %v2526_v3 = vpack.c.bf16 %v2441_v33, %v2440_v39  ;;  %v7736_v44 = vld [vmem:[#allocation42_spill] sm:$0xff] }
 0x16e   : > { %2921 = vmatpush.bf16.msra.mxu2 %v2757_v19  ;;  %2935 = vmatpush.bf16.msra.mxu3 %v2758_v28 }
 0x16f   : > { %v2695_v40 = vunpack.c.l.b16 %v2518_v47  ;;  %v2711_v7 = vunpack.c.l.b16 %v2526_v3 }
 0x171   : > { %4897 = vmatmul.msk.bf16.vlgmr.msra.gmra.mxu2 %vm1934_vm4, %v6379_v57  ;;  %4898 = vmatmul.msk.bf16.vlgmr.msra.gmra.mxu3 %vm1934_vm4, %v6379_v57  ;;  %v2791_v28 = vpack.c.b16 %v2711_v7, %v2695_v40  ;;  %v2392_v40 = vmul.f32 %v6346_v1, %v5736_v11  ;;  %v7743_v11 = vld [vmem:[#allocation51_spill] sm:$0xff] }
 0x172   : > { %v2427_v62 = vmul.f32 %v6413_v13, %v7743_v11 }
 0x173   : > { %2947 = vmatpush.bf16.msrb.mxu0 %v2791_v28 }
 0x183   : > { %v6368_v9 = vpop.f32.mrf.mxu0  ;;  %v6370_v25 = vpop.f32.mrf.mxu1 }
 0x18b   : > { %v2061_v16 = vpop.f32.mrf.mxu0  ;;  %v2075_v37 = vpop.f32.mrf.mxu1 }
 0x18c   : > { %v2062_v20 = vadd.f32 %v2061_v16, %v6282_v5  ;;  %v2076_v50 = vadd.f32 %v2075_v37, %v6282_v5  ;;  %v2696_v16 = vunpack.c.h.b16 %v2518_v47  ;;  %v2712_v37 = vunpack.c.h.b16 %v2526_v3  ;;  %v7739_v3 = vld [vmem:[#allocation45_spill] sm:$0xff] }
 0x18d   : > { %v6397_v49 = vpop.f32.mrf.mxu2  ;;  %v6399_v51 = vpop.f32.mrf.mxu3  ;;  %v2474_v47 = vmul.f32 %v6411_v48, %v7738_v14  ;;  %v2475_v24 = vmul.f32 %v6413_v13, %v7739_v3  ;;  %v7740_v14 = vld [vmem:[#allocation56_spill] sm:$0xff]  ;;  %v7741_v3 = vld [vmem:[#allocation57_spill] sm:$0xff] }
 0x18e   : > { %v2186_v18 = vmax.f32 %v2062_v20, 0.0  ;;  %v2187_v46 = vmax.f32 %v2076_v50, 0.0  ;;  %v2792_v54 = vpack.c.b16 %v2712_v37, %v2696_v16  ;;  %v2458_v20 = vmul.f32 %v6411_v48, %v7736_v44  ;;  %v7737_v50 = vld [vmem:[#allocation43_spill] sm:$0xff] }
 0x18f   : > { %v2459_v39 = vmul.f32 %v6413_v13, %v7737_v50  ;;  %v2543_v7 = vpack.c.bf16 %v2475_v24, %v2474_v47  ;;  %v2408_v50 = vmul.f32 %v6346_v1, %v7740_v14  ;;  %v7742_v24 = vld [vmem:[#allocation50_spill] sm:$0xff]  ;;  %v2442_v14 = vmul.f32 %v6411_v48, %v7744_v63 }
 0x190   : > { %v2198_v33 = vpack.c.bf16 %v2187_v46, %v2186_v18  ;;  %2961 = vmatpush.bf16.msrb.mxu1 %v2792_v54  ;;  %v2393_v18 = vmul.f32 %v6350_v53, %v5738_v8  ;;  %v2426_v47 = vmul.f32 %v6411_v48, %v7742_v24 }
 0x191   : > { %v2745_v28 = vunpack.c.l.b16 %v2543_v7  ;;  %v2746_v54 = vunpack.c.h.b16 %v2543_v7 }
 0x192   : > { %v6433_v46 = vunpack.c.l.bf16 %v2198_v33 }
 0x195   : > { %v2089_v41 = vpop.f32.mrf.mxu2  ;;  %v2103_v2 = vpop.f32.mrf.mxu3 }
 0x196   : > { %v2090_v19 = vadd.f32 %v2089_v41, %v6282_v5  ;;  %v2104_v23 = vadd.f32 %v2103_v2, %v6282_v5  ;;  %v2535_v41 = vpack.c.bf16 %v2459_v39, %v2458_v20  ;;  %v2502_v39 = vpack.c.bf16 %v2393_v18, %v2392_v40 }
 0x197   : > { %v2519_v40 = vpack.c.bf16 %v2427_v62, %v2426_v47 }
 0x198   : > { %v2188_v59 = vmax.f32 %v2090_v19, 0.0  ;;  %v2189_v2 = vmax.f32 %v2104_v23, 0.0  ;;  %v2729_v16 = vunpack.c.l.b16 %v2535_v41  ;;  %v2730_v37 = vunpack.c.h.b16 %v2535_v41 }
 0x199   : > { %v2409_v19 = vmul.f32 %v6350_v53, %v7741_v3  ;;  %v6439_v23 = vunpack.c.h.bf16 %v2198_v33  ;;  %v2663_v7 = vunpack.c.l.b16 %v2502_v39  ;;  %v2664_v12 = vunpack.c.h.b16 %v2502_v39 }
 0x19a   : > { %v2199_v20 = vpack.c.bf16 %v2189_v2, %v2188_v59  ;;  %v2809_v41 = vpack.c.b16 %v2745_v28, %v2729_v16  ;;  %v2810_v44 = vpack.c.b16 %v2746_v54, %v2730_v37  ;;  %v2443_v33 = vmul.f32 %v6413_v13, %v7745_v36  ;;  %v7746_v37 = vld [vmem:[#allocation62_spill] sm:$0xff]  ;;  %v7747_v28 = vld [vmem:[#allocation63_spill] sm:$0xff] }
 0x19b   : > { %v2510_v8 = vpack.c.bf16 %v2409_v19, %v2408_v50  ;;  %v2360_v16 = vmul.f32 %v6346_v1, %v5782_v4  ;;  %v2361_v18 = vmul.f32 %v6350_v53, %v7746_v37  ;;  %v2376_v54 = vmul.f32 %v6346_v1, %v7747_v28  ;;  %v7748_v19 = vld [vmem:[#allocation64_spill] sm:$0xff]  ;;  %v7749_v1 = vld [vmem:[#allocation58_spill] sm:$0xff] }
 0x19c   : > { %2974 = vmatpush.bf16.msrb.mxu2 %v2809_v41  ;;  %2988 = vmatpush.bf16.msrb.mxu3 %v2810_v44  ;;  %v2527_v50 = vpack.c.bf16 %v2443_v33, %v2442_v14  ;;  %v2377_v39 = vmul.f32 %v6350_v53, %v7748_v19  ;;  %v2697_v62 = vunpack.c.l.b16 %v2519_v40  ;;  %v2698_v44 = vunpack.c.h.b16 %v2519_v40  ;;  %v7754_v28 = vld [vmem:[#allocation70_spill] sm:$0xff] }
 0x19d   : > { %v2679_v59 = vunpack.c.l.b16 %v2510_v8  ;;  %v2680_v2 = vunpack.c.h.b16 %v2510_v8  ;;  %v2338_v8 = vld [vmem:[%s7369_s4] sm:$0xff]  ;;  %v2486_v41 = vpack.c.bf16 %v2361_v18, %v2360_v16  ;;  %v6460_v11 = vunpack.c.l.bf16 %v2199_v20  ;;  %v7752_v18 = vld [vmem:[#allocation61_spill] sm:$0xff] }
 0x19e   : > { %2550 = vperm.xlu1 %4993, %v2338_v8   ;;  %v2713_v47 = vunpack.c.l.b16 %v2527_v50  ;;  %v2714_v14 = vunpack.c.h.b16 %v2527_v50  ;;  %v2494_v33 = vpack.c.bf16 %v2377_v39, %v2376_v54  ;;  %v2394_v53 = vmul.f32 %v6411_v48, %v7749_v1  ;;  %v7753_v1 = vld [vmem:[#allocation69_spill] sm:$0xff] }
 0x19f   : > { %v2775_v63 = vpack.c.b16 %v2679_v59, %v2663_v7  ;;  %v2776_v36 = vpack.c.b16 %v2680_v2, %v2664_v12  ;;  %v7750_v7 = vld [vmem:[#allocation59_spill] sm:$0xff]  ;;  %v7751_v59 = vld [vmem:[#allocation60_spill] sm:$0xff]  ;;  %v2631_v8 = vunpack.c.l.b16 %v2486_v41  ;;  %v2632_v50 = vunpack.c.h.b16 %v2486_v41 }
 0x1a0   : > { %v2395_v12 = vmul.f32 %v6413_v13, %v7750_v7  ;;  %v2410_v2 = vmul.f32 %v6411_v48, %v7751_v59  ;;  %v2793_v24 = vpack.c.b16 %v2713_v47, %v2697_v62  ;;  %v2794_v40 = vpack.c.b16 %v2714_v14, %v2698_v44  ;;  %v7758_v59 = vld [vmem:[#allocation66_spill] sm:$0xff] }
 0x1a1   : > { %2948 = vmatpush.bf16.msrb.mxu0 %v2775_v63  ;;  %2962 = vmatpush.bf16.msrb.mxu1 %v2776_v36  ;;  %v2647_v19 = vunpack.c.l.b16 %v2494_v33  ;;  %v2648_v16 = vunpack.c.h.b16 %v2494_v33  ;;  %v2411_v54 = vmul.f32 %v6413_v13, %v7752_v18  ;;  %v6470_v36 = vunpack.c.h.bf16 %v2199_v20  ;;  %v7755_v33 = vld [vmem:[#allocation71_spill] sm:$0xff] }
 0x1a2   : > { %v2503_v63 = vpack.c.bf16 %v2395_v12, %v2394_v53  ;;  %2975 = vmatpush.bf16.msrb.mxu2 %v2793_v24  ;;  %2989 = vmatpush.bf16.msrb.mxu3 %v2794_v40  ;;  %v2460_v7 = vmul.f32 %v6433_v46, %v7753_v1  ;;  %v2461_v62 = vmul.f32 %v6439_v23, %v7754_v28  ;;  %v7756_v53 = vld [vmem:[#allocation72_spill] sm:$0xff]  ;;  %v7757_v12 = vld [vmem:[#allocation65_spill] sm:$0xff] }
 0x1a3   : > { %v2759_v39 = vpack.c.b16 %v2647_v19, %v2631_v8  ;;  %v2760_v44 = vpack.c.b16 %v2648_v16, %v2632_v50  ;;  %v2511_v47 = vpack.c.bf16 %v2411_v54, %v2410_v2  ;;  %v2476_v18 = vmul.f32 %v6433_v46, %v7755_v33  ;;  %v7759_v2 = vld [vmem:[#allocation67_spill] sm:$0xff]  ;;  %v7760_v33 = vld [vmem:[#allocation68_spill] sm:$0xff] }
 0x1a4   : > { %v2665_v14 = vunpack.c.l.b16 %v2503_v63  ;;  %v2666_v41 = vunpack.c.h.b16 %v2503_v63  ;;  %v2477_v20 = vmul.f32 %v6439_v23, %v7756_v53  ;;  %v2536_v24 = vpack.c.bf16 %v2461_v62, %v2460_v7 }
 0x1a5   : > { %2949 = vmatpush.bf16.msrb.mxu0 %v2759_v39  ;;  %v2362_v19 = vmul.f32 %v6411_v48, %v7757_v12  ;;  %2963 = vmatpush.bf16.msrb.mxu1 %v2760_v44  ;;  %v2681_v40 = vunpack.c.l.b16 %v2511_v47  ;;  %v2682_v8 = vunpack.c.h.b16 %v2511_v47  ;;  %v2363_v50 = vmul.f32 %v6413_v13, %v7758_v59  ;;  %v7761_v44 = vld [vmem:[#allocation77_spill] sm:$0xff] }
 0x1a6   : > { %v2378_v16 = vmul.f32 %v6411_v48, %v7759_v2  ;;  %v2544_v54 = vpack.c.bf16 %v2477_v20, %v2476_v18  ;;  %v2731_v63 = vunpack.c.l.b16 %v2536_v24  ;;  %v2732_v39 = vunpack.c.h.b16 %v2536_v24  ;;  %v7762_v20 = vld [vmem:[#allocation78_spill] sm:$0xff] }
 0x1a7   : > { %v2379_v28 = vmul.f32 %v6413_v13, %v7760_v33  ;;  %v2777_v53 = vpack.c.b16 %v2681_v40, %v2665_v14  ;;  %v2778_v7 = vpack.c.b16 %v2682_v8, %v2666_v41  ;;  %v2487_v62 = vpack.c.bf16 %v2363_v50, %v2362_v19  ;;  %v7763_v41 = vld [vmem:[#allocation81_spill] sm:$0xff]  ;;  %v7764_v19 = vld [vmem:[#allocation82_spill] sm:$0xff] }
 0x1a8   : > { %4899 = vmatmul.msk.bf16.vlgmr.msrb.gmra.mxu0 %vm1934_vm4, %v6379_v57  ;;  %v2428_v47 = vmul.f32 %v6433_v46, %v7761_v44  ;;  %4900 = vmatmul.msk.bf16.vlgmr.msrb.gmra.mxu1 %vm1934_vm4, %v6379_v57  ;;  %v2747_v59 = vunpack.c.l.b16 %v2544_v54  ;;  %v2748_v48 = vunpack.c.h.b16 %v2544_v54  ;;  %v2429_v24 = vmul.f32 %v6439_v23, %v7762_v20  ;;  %v7766_v20 = vld [vmem:[#allocation74_spill] sm:$0xff] }
 0x1a9   : > { %v2495_v18 = vpack.c.bf16 %v2379_v28, %v2378_v16  ;;  %2976 = vmatpush.bf16.msrb.mxu2 %v2777_v53  ;;  %2990 = vmatpush.bf16.msrb.mxu3 %v2778_v7  ;;  %v2633_v13 = vunpack.c.l.b16 %v2487_v62  ;;  %v2634_v14 = vunpack.c.h.b16 %v2487_v62  ;;  %v2444_v40 = vmul.f32 %v6433_v46, %v7763_v41  ;;  %v7765_v28 = vld [vmem:[#allocation73_spill] sm:$0xff]  ;;  %v7767_v41 = vld [vmem:[#allocation75_spill] sm:$0xff] }
 0x1aa   : > { %v2445_v8 = vmul.f32 %v6439_v23, %v7764_v19  ;;  %v2811_v50 = vpack.c.b16 %v2747_v59, %v2731_v63  ;;  %v2812_v33 = vpack.c.b16 %v2748_v48, %v2732_v39  ;;  %v2520_v44 = vpack.c.bf16 %v2429_v24, %v2428_v47  ;;  %v7768_v47 = vld [vmem:[#allocation76_spill] sm:$0xff] }
 0x1ab   : > { %v2649_v2 = vunpack.c.l.b16 %v2495_v18  ;;  %v2650_v12 = vunpack.c.h.b16 %v2495_v18  ;;  %v2462_v16 = vmul.f32 %v6460_v11, %v7765_v28  ;;  %v2463_v53 = vmul.f32 %v6470_v36, %v7766_v20 }
 0x1ac   : > { %v2528_v54 = vpack.c.bf16 %v2445_v8, %v2444_v40  ;;  %3002 = vmatpush.bf16.msra.mxu0 %v2811_v50  ;;  %3016 = vmatpush.bf16.msra.mxu1 %v2812_v33  ;;  %v2478_v1 = vmul.f32 %v6460_v11, %v7767_v41  ;;  %v2699_v19 = vunpack.c.l.b16 %v2520_v44  ;;  %v2700_v63 = vunpack.c.h.b16 %v2520_v44 }
 0x1ad   : > { %v2761_v7 = vpack.c.b16 %v2649_v2, %v2633_v13  ;;  %v2762_v62 = vpack.c.b16 %v2650_v12, %v2634_v14  ;;  %v2479_v48 = vmul.f32 %v6470_v36, %v7768_v47  ;;  %v2537_v18 = vpack.c.bf16 %v2463_v53, %v2462_v16 }
 0x1ae   : > { %v2715_v59 = vunpack.c.l.b16 %v2528_v54  ;;  %v2716_v39 = vunpack.c.h.b16 %v2528_v54  ;;  %v2396_v24 = vmul.f32 %v6433_v46, %v5989_v45  ;;  %v2397_v12 = vmul.f32 %v6439_v23, %v5993_v61  ;;  %v7769_v54 = vld [vmem:[#allocation79_spill] sm:$0xff] }
 0x1af   : > { %2977 = vmatpush.bf16.msrb.mxu2 %v2761_v7  ;;  %2991 = vmatpush.bf16.msrb.mxu3 %v2762_v62  ;;  %v2412_v2 = vmul.f32 %v6433_v46, %v5995_v21  ;;  %v2545_v13 = vpack.c.bf16 %v2479_v48, %v2478_v1  ;;  %v2733_v44 = vunpack.c.l.b16 %v2537_v18  ;;  %v2734_v14 = vunpack.c.h.b16 %v2537_v18  ;;  %v7772_v18 = vld [vmem:[#allocation84_spill] sm:$0xff] }
 0x1b0   : > { %v2795_v40 = vpack.c.b16 %v2715_v59, %v2699_v19  ;;  %v2796_v33 = vpack.c.b16 %v2716_v39, %v2700_v63  ;;  %v2413_v8 = vmul.f32 %v6439_v23, %v5999_v17  ;;  %v2504_v50 = vpack.c.bf16 %v2397_v12, %v2396_v24  ;;  %v7770_v19 = vld [vmem:[#allocation80_spill] sm:$0xff]  ;;  %v7771_v59 = vld [vmem:[#allocation83_spill] sm:$0xff] }
 0x1b1   : > { %v2430_v16 = vmul.f32 %v6460_v11, %v7769_v54  ;;  %v2431_v53 = vmul.f32 %v6470_v36, %v7770_v19  ;;  %v2749_v1 = vunpack.c.l.b16 %v2545_v13  ;;  %v2750_v7 = vunpack.c.h.b16 %v2545_v13 }
 0x1b2   : > { %3003 = vmatpush.bf16.msra.mxu0 %v2795_v40  ;;  %3017 = vmatpush.bf16.msra.mxu1 %v2796_v33  ;;  %v2512_v62 = vpack.c.bf16 %v2413_v8, %v2412_v2  ;;  %v2446_v63 = vmul.f32 %v6460_v11, %v7771_v59  ;;  %v2667_v39 = vunpack.c.l.b16 %v2504_v50  ;;  %v2668_v48 = vunpack.c.h.b16 %v2504_v50  ;;  %v7773_v50 = vld [vmem:[#allocation89_spill] sm:$0xff] }
 0x1b3   : > { %4901 = vmatmul.msk.bf16.vlgmr.msrb.gmra.mxu2 %vm1934_vm4, %v6379_v57  ;;  %4902 = vmatmul.msk.bf16.vlgmr.msrb.gmra.mxu3 %vm1934_vm4, %v6379_v57  ;;  %v2447_v24 = vmul.f32 %v6470_v36, %v7772_v18  ;;  %v2521_v40 = vpack.c.bf16 %v2431_v53, %v2430_v16  ;;  %v2813_v19 = vpack.c.b16 %v2749_v1, %v2733_v44  ;;  %v7774_v53 = vld [vmem:[#allocation90_spill] sm:$0xff] }
 0x1b4   : > { %v2814_v54 = vpack.c.b16 %v2750_v7, %v2734_v14  ;;  %v2683_v47 = vunpack.c.l.b16 %v2512_v62  ;;  %v2684_v41 = vunpack.c.h.b16 %v2512_v62  ;;  %v2364_v28 = vmul.f32 %v6433_v46, %v7773_v50  ;;  %v7775_v14 = vld [vmem:[#allocation91_spill] sm:$0xff]  ;;  %v7776_v7 = vld [vmem:[#allocation92_spill] sm:$0xff] }
 0x1b5   : > { %v2529_v20 = vpack.c.bf16 %v2447_v24, %v2446_v63  ;;  %v2701_v13 = vunpack.c.l.b16 %v2521_v40  ;;  %3030 = vmatpush.bf16.msra.mxu2 %v2813_v19  ;;  %v2702_v59 = vunpack.c.h.b16 %v2521_v40  ;;  %v2365_v44 = vmul.f32 %v6439_v23, %v7774_v53  ;;  %v7777_v63 = vld [vmem:[#allocation85_spill] sm:$0xff]  ;;  %v7779_v24 = vld [vmem:[#allocation87_spill] sm:$0xff] }
 0x1b6   : > { %3044 = vmatpush.bf16.msra.mxu3 %v2814_v54  ;;  %v2779_v2 = vpack.c.b16 %v2683_v47, %v2667_v39  ;;  %v2780_v8 = vpack.c.b16 %v2684_v41, %v2668_v48  ;;  %v2380_v1 = vmul.f32 %v6433_v46, %v7775_v14  ;;  %v2381_v19 = vmul.f32 %v6439_v23, %v7776_v7  ;;  %v7778_v48 = vld [vmem:[#allocation86_spill] sm:$0xff] }
 0x1b7   : > { %v2717_v18 = vunpack.c.l.b16 %v2529_v20  ;;  %v2718_v16 = vunpack.c.h.b16 %v2529_v20  ;;  %v2488_v41 = vpack.c.bf16 %v2365_v44, %v2364_v28  ;;  %v2398_v39 = vmul.f32 %v6460_v11, %v7777_v63 }
 0x1b8   : > { %3004 = vmatpush.bf16.msra.mxu0 %v2779_v2  ;;  %3018 = vmatpush.bf16.msra.mxu1 %v2780_v8  ;;  %v2496_v62 = vpack.c.bf16 %v2381_v19, %v2380_v1  ;;  %v2399_v20 = vmul.f32 %v6470_v36, %v7778_v48  ;;  %v2414_v40 = vmul.f32 %v6460_v11, %v7779_v24  ;;  %v7780_v2 = vld [vmem:[#allocation88_spill] sm:$0xff] }
 0x1b9   : > { %v2797_v54 = vpack.c.b16 %v2717_v18, %v2701_v13  ;;  %v2798_v47 = vpack.c.b16 %v2718_v16, %v2702_v59  ;;  %v2415_v46 = vmul.f32 %v6470_v36, %v7780_v2  ;;  %v2635_v18 = vunpack.c.l.b16 %v2488_v41 }
 0x1ba   : > { %v2651_v59 = vunpack.c.l.b16 %v2496_v62  ;;  %v2636_v28 = vunpack.c.h.b16 %v2488_v41  ;;  %v2652_v13 = vunpack.c.h.b16 %v2496_v62 }
 0x1bb   : > { %v6528_v33 = vpop.f32.mrf.mxu0  ;;  %v6530_v12 = vpop.f32.mrf.mxu1  ;;  %3031 = vmatpush.bf16.msra.mxu2 %v2797_v54  ;;  %3045 = vmatpush.bf16.msra.mxu3 %v2798_v47  ;;  %v2505_v54 = vpack.c.bf16 %v2399_v20, %v2398_v39  ;;  %v2513_v47 = vpack.c.bf16 %v2415_v46, %v2414_v40  ;;  %v7781_v39 = vld [vmem:[#allocation93_spill] sm:$0xff]  ;;  %v7782_v40 = vld [vmem:[#allocation94_spill] sm:$0xff] }
 0x1bc   : > { %v2763_v1 = vpack.c.b16 %v2651_v59, %v2635_v18  ;;  %v2764_v19 = vpack.c.b16 %v2652_v13, %v2636_v28  ;;  %v2366_v20 = vmul.f32 %v6460_v11, %v7781_v39  ;;  %v7786_v59 = vld [vmem:[#allocation99_spill] sm:$0xff]  ;;  %v7787_v13 = vld [vmem:[#allocation100_spill] sm:$0xff] }
 0x1bd   : > { %v2669_v24 = vunpack.c.l.b16 %v2505_v54  ;;  %v2685_v2 = vunpack.c.l.b16 %v2513_v47  ;;  %v2670_v7 = vunpack.c.h.b16 %v2505_v54  ;;  %v2686_v14 = vunpack.c.h.b16 %v2513_v47 }
 0x1be   : > { %3005 = vmatpush.bf16.msra.mxu0 %v2763_v1  ;;  %3019 = vmatpush.bf16.msra.mxu1 %v2764_v19 }
 0x1bf   : > { %v2782_v50 = vpack.c.b16 %v2686_v14, %v2670_v7  ;;  %v7784_v7 = vld [vmem:[#allocation98_spill] sm:$0xff] }
 0x1c1   : > { %4903 = vmatmul.msk.bf16.vlgmr.msra.gmra.mxu0 %vm1934_vm4, %v6379_v57  ;;  %4904 = vmatmul.msk.bf16.vlgmr.msra.gmra.mxu1 %vm1934_vm4, %v6379_v57 }
 0x1c2   : > { %3046 = vmatpush.bf16.msra.mxu3 %v2782_v50  ;;  %v7788_v50 = vld [vmem:[#allocation96_spill] sm:$0xff] }
 0x1c3   : > { %v2117_v8 = vpop.f32.mrf.mxu0  ;;  %v2131_v23 = vpop.f32.mrf.mxu1  ;;  %v2383_v1 = vmul.f32 %v6470_v36, %v7788_v50 }
 0x1c4   : > { %v2118_v16 = vadd.f32 %v2117_v8, %v6282_v5  ;;  %v2132_v44 = vadd.f32 %v2131_v23, %v6282_v5  ;;  %v2781_v8 = vpack.c.b16 %v2685_v2, %v2669_v24  ;;  %v7785_v2 = vld [vmem:[#allocation95_spill] sm:$0xff] }
 0x1c5   : > { %v2382_v46 = vmul.f32 %v6460_v11, %v7785_v2 }
 0x1c6   : > { %v2190_v48 = vmax.f32 %v2118_v16, 0.0  ;;  %v2191_v63 = vmax.f32 %v2132_v44, 0.0  ;;  %3032 = vmatpush.bf16.msra.mxu2 %v2781_v8 }
 0x1c7   : > { %v2497_v39 = vpack.c.bf16 %v2383_v1, %v2382_v46 }
 0x1c8   : > { %v6550_v53 = vpop.f32.mrf.mxu2  ;;  %v6552_v41 = vpop.f32.mrf.mxu3  ;;  %v2200_v62 = vpack.c.bf16 %v2191_v63, %v2190_v48  ;;  %v2367_v63 = vmul.f32 %v6470_v36, %v7782_v40  ;;  %v7783_v48 = vld [vmem:[#allocation97_spill] sm:$0xff] }
 0x1c9   : > { %v2654_v46 = vunpack.c.h.b16 %v2497_v39 }
 0x1ca   : > { %v6554_v23 = vunpack.c.l.bf16 %v2200_v62  ;;  %v6556_v18 = vunpack.c.h.bf16 %v2200_v62  ;;  %v2489_v19 = vpack.c.bf16 %v2367_v63, %v2366_v20  ;;  %v2653_v20 = vunpack.c.l.b16 %v2497_v39 }
 0x1cc   : > { %v2464_v14 = vmul.f32 %v6554_v23, %v7783_v48  ;;  %v2465_v24 = vmul.f32 %v6556_v18, %v7784_v7  ;;  %v2480_v28 = vmul.f32 %v6554_v23, %v7786_v59  ;;  %v2481_v16 = vmul.f32 %v6556_v18, %v7787_v13 }
 0x1cd   : > { %v2432_v11 = vmul.f32 %v6554_v23, %v6150_v6  ;;  %v2637_v7 = vunpack.c.l.b16 %v2489_v19  ;;  %v2638_v63 = vunpack.c.h.b16 %v2489_v19  ;;  %v7789_v6 = vld [vmem:[#allocation107_spill] sm:$0xff] }
 0x1ce   : > { %v2538_v44 = vpack.c.bf16 %v2465_v24, %v2464_v14  ;;  %v2546_v54 = vpack.c.bf16 %v2481_v16, %v2480_v28  ;;  %v2433_v14 = vmul.f32 %v6556_v18, %v6155_v15 }
 0x1cf   : > { %v2765_v13 = vpack.c.b16 %v2653_v20, %v2637_v7  ;;  %v7791_v7 = vld [vmem:[#allocation101_spill] sm:$0xff] }
 0x1d0   : > { %v2145_v47 = vpop.f32.mrf.mxu2  ;;  %v2159_v62 = vpop.f32.mrf.mxu3  ;;  %v2735_v8 = vunpack.c.l.b16 %v2538_v44  ;;  %v2736_v40 = vunpack.c.h.b16 %v2538_v44  ;;  %v2751_v24 = vunpack.c.l.b16 %v2546_v54  ;;  %v2752_v36 = vunpack.c.h.b16 %v2546_v54 }
 0x1d1   : > { %v2146_v2 = vadd.f32 %v2145_v47, %v6282_v5  ;;  %v2160_v59 = vadd.f32 %v2159_v62, %v6282_v5  ;;  %v2448_v47 = vmul.f32 %v6554_v23, %v7789_v6  ;;  %v2766_v5 = vpack.c.b16 %v2654_v46, %v2638_v63  ;;  %v7790_v62 = vld [vmem:[#allocation108_spill] sm:$0xff]  ;;  %3033 = vmatpush.bf16.msra.mxu2 %v2765_v13  ;;  %v7795_v63 = vld [vmem:[#allocation114_spill] sm:$0xff]  ;;  %v7800_v6 = vld [vmem:[#allocation111_spill] sm:$0xff] }
 0x1d2   : > { %v2815_v50 = vpack.c.b16 %v2751_v24, %v2735_v8  ;;  %v2816_v44 = vpack.c.b16 %v2752_v36, %v2736_v40  ;;  %v2449_v15 = vmul.f32 %v6556_v18, %v7790_v62  ;;  %v2522_v48 = vpack.c.bf16 %v2433_v14, %v2432_v11  ;;  %v7792_v8 = vld [vmem:[#allocation102_spill] sm:$0xff]  ;;  %v7793_v14 = vld [vmem:[#allocation103_spill] sm:$0xff]  ;;  %v7797_v46 = vld [vmem:[#allocation116_spill] sm:$0xff] }
 0x1d3   : > { %v2192_v28 = vmax.f32 %v2146_v2, 0.0  ;;  %v2193_v16 = vmax.f32 %v2160_v59, 0.0  ;;  %3047 = vmatpush.bf16.msra.mxu3 %v2766_v5  ;;  %v2400_v24 = vmul.f32 %v6554_v23, %v6192_v52 }
 0x1d4   : > { %3058 = vmatpush.bf16.msrb.mxu0 %v2815_v50  ;;  %3072 = vmatpush.bf16.msrb.mxu1 %v2816_v44  ;;  %v2530_v40 = vpack.c.bf16 %v2449_v15, %v2448_v47  ;;  %v2703_v39 = vunpack.c.l.b16 %v2522_v48  ;;  %v2704_v2 = vunpack.c.h.b16 %v2522_v48  ;;  %v7794_v15 = vld [vmem:[#allocation104_spill] sm:$0xff] }
 0x1d5   : > { %v2201_v1 = vpack.c.bf16 %v2193_v16, %v2192_v28  ;;  %4905 = vmatmul.msk.bf16.vlgmr.msra.gmra.mxu2 %vm1934_vm4, %v6379_v57  ;;  %v2401_v28 = vmul.f32 %v6556_v18, %v7795_v63  ;;  %v7796_v16 = vld [vmem:[#allocation115_spill] sm:$0xff]  ;;  %v7799_v63 = vld [vmem:[#allocation110_spill] sm:$0xff] }
 0x1d6   : > { %v2719_v36 = vunpack.c.l.b16 %v2530_v40  ;;  %v2720_v11 = vunpack.c.h.b16 %v2530_v40  ;;  %4906 = vmatmul.msk.bf16.vlgmr.msra.gmra.mxu3 %vm1934_vm4, %v6379_v57  ;;  %v2416_v44 = vmul.f32 %v6554_v23, %v7796_v16 }
 0x1d7   : > { %v6588_v54 = vunpack.c.l.bf16 %v2201_v1  ;;  %v6590_v19 = vunpack.c.h.bf16 %v2201_v1  ;;  %v2417_v1 = vmul.f32 %v6556_v18, %v7797_v46  ;;  %v2506_v52 = vpack.c.bf16 %v2401_v28, %v2400_v24 }
 0x1d8   : > { %v2799_v47 = vpack.c.b16 %v2719_v36, %v2703_v39  ;;  %v2800_v5 = vpack.c.b16 %v2720_v11, %v2704_v2 }
 0x1d9   : > { %v2466_v59 = vmul.f32 %v6588_v54, %v7791_v7  ;;  %v2467_v50 = vmul.f32 %v6590_v19, %v7792_v8  ;;  %v2482_v13 = vmul.f32 %v6588_v54, %v7793_v14  ;;  %v2483_v48 = vmul.f32 %v6590_v19, %v7794_v15  ;;  %v7798_v14 = vld [vmem:[#allocation109_spill] sm:$0xff] }
 0x1da   : > { %v2434_v8 = vmul.f32 %v6588_v54, %v7798_v14  ;;  %v2514_v62 = vpack.c.bf16 %v2417_v1, %v2416_v44  ;;  %3059 = vmatpush.bf16.msrb.mxu0 %v2799_v47  ;;  %3073 = vmatpush.bf16.msrb.mxu1 %v2800_v5  ;;  %v2435_v16 = vmul.f32 %v6590_v19, %v7799_v63  ;;  %v2671_v39 = vunpack.c.l.b16 %v2506_v52  ;;  %v7801_v14 = vld [vmem:[#allocation112_spill] sm:$0xff] }
 0x1db   : > { %v2539_v20 = vpack.c.bf16 %v2467_v50, %v2466_v59  ;;  %v2547_v40 = vpack.c.bf16 %v2483_v48, %v2482_v13  ;;  %v2450_v46 = vmul.f32 %v6588_v54, %v7800_v6  ;;  %v2672_v36 = vunpack.c.h.b16 %v2506_v52 }
 0x1dc   : > { %v2687_v2 = vunpack.c.l.b16 %v2514_v62  ;;  %v2688_v11 = vunpack.c.h.b16 %v2514_v62  ;;  %v2451_v24 = vmul.f32 %v6590_v19, %v7801_v14  ;;  %v2368_v1 = vmul.f32 %v6554_v23, %v6232_v60  ;;  %v7802_v62 = vld [vmem:[#allocation121_spill] sm:$0xff] }
 0x1dd   : > { %v2737_v15 = vunpack.c.l.b16 %v2539_v20  ;;  %v2738_v7 = vunpack.c.h.b16 %v2539_v20  ;;  %v2753_v59 = vunpack.c.l.b16 %v2547_v40  ;;  %v2754_v50 = vunpack.c.h.b16 %v2547_v40 }
 0x1de   : > { %v2523_v20 = vpack.c.bf16 %v2435_v16, %v2434_v8  ;;  %v2783_v28 = vpack.c.b16 %v2687_v2, %v2671_v39  ;;  %v2784_v44 = vpack.c.b16 %v2688_v11, %v2672_v36  ;;  %v2369_v47 = vmul.f32 %v6556_v18, %v6234_v38  ;;  %v7803_v16 = vld [vmem:[#allocation117_spill] sm:$0xff]  ;;  %v7804_v2 = vld [vmem:[#allocation118_spill] sm:$0xff] }
 0x1df   : > { %v2817_v13 = vpack.c.b16 %v2753_v59, %v2737_v15  ;;  %v2818_v48 = vpack.c.b16 %v2754_v50, %v2738_v7  ;;  %v2531_v5 = vpack.c.bf16 %v2451_v24, %v2450_v46  ;;  %v2384_v7 = vmul.f32 %v6554_v23, %v7802_v62  ;;  %v7805_v46 = vld [vmem:[#allocation119_spill] sm:$0xff]  ;;  %v7806_v24 = vld [vmem:[#allocation120_spill] sm:$0xff] }
 0x1e0   : > { %v2705_v40 = vunpack.c.l.b16 %v2523_v20  ;;  %v2706_v52 = vunpack.c.h.b16 %v2523_v20  ;;  %3060 = vmatpush.bf16.msrb.mxu0 %v2783_v28  ;;  %3074 = vmatpush.bf16.msrb.mxu1 %v2784_v44  ;;  %v2385_v8 = vmul.f32 %v6556_v18, %v6238_v30  ;;  %v2490_v15 = vpack.c.bf16 %v2369_v47, %v2368_v1 }
 0x1e1   : > { %3086 = vmatpush.bf16.msrb.mxu2 %v2817_v13  ;;  %3100 = vmatpush.bf16.msrb.mxu3 %v2818_v48  ;;  %v2402_v59 = vmul.f32 %v6588_v54, %v7803_v16  ;;  %v2721_v50 = vunpack.c.l.b16 %v2531_v5  ;;  %v2722_v39 = vunpack.c.h.b16 %v2531_v5  ;;  %v2403_v36 = vmul.f32 %v6590_v19, %v7804_v2 }
 0x1e2   : > { %v2418_v11 = vmul.f32 %v6588_v54, %v7805_v46  ;;  %v2498_v13 = vpack.c.bf16 %v2385_v8, %v2384_v7  ;;  %v2639_v48 = vunpack.c.l.b16 %v2490_v15  ;;  %v2640_v23 = vunpack.c.h.b16 %v2490_v15 }
 0x1e3   : > { %v2419_v20 = vmul.f32 %v6590_v19, %v7806_v24  ;;  %v2801_v28 = vpack.c.b16 %v2721_v50, %v2705_v40  ;;  %v2802_v18 = vpack.c.b16 %v2722_v39, %v2706_v52  ;;  %v2507_v44 = vpack.c.bf16 %v2403_v36, %v2402_v59 }
 0x1e4   : > { %v2370_v1 = vmul.f32 %v6588_v54, %v6250_v58  ;;  %v2655_v47 = vunpack.c.l.b16 %v2498_v13  ;;  %v2656_v5 = vunpack.c.h.b16 %v2498_v13  ;;  %v2371_v2 = vmul.f32 %v6590_v19, %v6252_v22 }
 0x1e5   : > { %v2515_v16 = vpack.c.bf16 %v2419_v20, %v2418_v11  ;;  %3087 = vmatpush.bf16.msrb.mxu2 %v2801_v28  ;;  %3101 = vmatpush.bf16.msrb.mxu3 %v2802_v18  ;;  %v2673_v7 = vunpack.c.l.b16 %v2507_v44  ;;  %v2674_v8 = vunpack.c.h.b16 %v2507_v44  ;;  %v2386_v15 = vmul.f32 %v6588_v54, %v6254_v10 }
 0x1e6   : > { %v2387_v40 = vmul.f32 %v6590_v19, %v6256_v0  ;;  %v2767_v52 = vpack.c.b16 %v2655_v47, %v2639_v48  ;;  %v2768_v59 = vpack.c.b16 %v2656_v5, %v2640_v23  ;;  %v2491_v36 = vpack.c.bf16 %v2371_v2, %v2370_v1  ;;  %v6654_v2 = vpop.f32.mrf.mxu1  ;;  %v6656_v48 = vpop.permute.xlu0 %2555  ;;  %v7834_v0 = vld [vmem:[#allocation41_spill] sm:$0xff] }
 0x1e7   : > { %v2689_v50 = vunpack.c.l.b16 %v2515_v16  ;;  %v2690_v39 = vunpack.c.h.b16 %v2515_v16  ;;  %v6652_v16 = vpop.f32.mrf.mxu0  ;;  %7808 = vst [vmem:[#allocation62_spill] sm:$0xff] %v6654_v2 }
 0x1e8   : > { %v2499_v13 = vpack.c.bf16 %v2387_v40, %v2386_v15  ;;  %3061 = vmatpush.bf16.msrb.mxu0 %v2767_v52  ;;  %3075 = vmatpush.bf16.msrb.mxu1 %v2768_v59  ;;  %v2641_v28 = vunpack.c.l.b16 %v2491_v36  ;;  %v2642_v22 = vunpack.c.h.b16 %v2491_v36  ;;  %7807 = vst [vmem:[#allocation57_spill] sm:$0xff] %v6652_v16  ;;  %v6660_v15 = vpop.permute.xlu2 %3496  ;;  %v6666_v52 = vpop.permute.xlu1 %1601 }
 0x1e9   : > { %v2785_v11 = vpack.c.b16 %v2689_v50, %v2673_v7  ;;  %v2786_v20 = vpack.c.b16 %v2690_v39, %v2674_v8  ;;  %7809 = vst [vmem:[#allocation110_spill] sm:$0xff] %v6660_v15  ;;  %v2060_v59 = vadd.f32 %v6368_v9, %v6666_v52  ;;  %v2074_v50 = vadd.f32 %v6370_v25, %v6666_v52 }
 0x1ea   : > { %v2657_v18 = vunpack.c.l.b16 %v2499_v13  ;;  %v2658_v44 = vunpack.c.h.b16 %v2499_v13  ;;  %7810 = vst [vmem:[#allocation111_spill] sm:$0xff] %v6666_v52  ;;  %v2088_v39 = vadd.f32 %v6397_v49, %v6666_v52  ;;  %v2102_v36 = vadd.f32 %v6399_v51, %v6666_v52 }
 0x1eb   : > { %3088 = vmatpush.bf16.msrb.mxu2 %v2785_v11  ;;  %3102 = vmatpush.bf16.msrb.mxu3 %v2786_v20  ;;  %v2171_v25 = vmax.f32 %v2074_v50, 0.0 }
 0x1ec   : > { %4907 = vmatmul.msk.bf16.vlgmr.msrb.gmra.mxu0 %vm1934_vm4, %v6379_v57  ;;  %4908 = vmatmul.msk.bf16.vlgmr.msrb.gmra.mxu1 %vm1934_vm4, %v6379_v57  ;;  %v2769_v54 = vpack.c.b16 %v2657_v18, %v2641_v28  ;;  %v2770_v19 = vpack.c.b16 %v2658_v44, %v2642_v22  ;;  %v2170_v28 = vmax.f32 %v2060_v59, 0.0  ;;  %v2172_v18 = vmax.f32 %v2088_v39, 0.0 }
 0x1ed   : > { %v2173_v44 = vmax.f32 %v2102_v36, 0.0  ;;  %v2130_v59 = vadd.f32 %v6530_v12, %v6666_v52 }
 0x1ee   : > { %v2911_v47 = vpop.f32.mrf.mxu1 }
 0x1ef   : > { %3089 = vmatpush.bf16.msrb.mxu2 %v2769_v54  ;;  %3103 = vmatpush.bf16.msrb.mxu3 %v2770_v19  ;;  %v2897_v23 = vpop.f32.mrf.mxu0  ;;  %v2912_v22 = vadd.f32 %v2911_v47, %v6656_v48 }
 0x1f0   : > { %v2898_v1 = vadd.f32 %v2897_v23, %v6656_v48 }
 0x1f1   : > { %v3127_v7 = vmax.f32 %v2912_v22, 0.0  ;;  %v2116_v22 = vadd.f32 %v6528_v33, %v6666_v52 }
 0x1f2   : > { %4909 = vmatmul.msk.bf16.vlgmr.msrb.gmra.mxu2 %vm1934_vm4, %v6379_v57  ;;  %4910 = vmatmul.msk.bf16.vlgmr.msrb.gmra.mxu3 %vm1934_vm4, %v6379_v57  ;;  %v3126_v5 = vmax.f32 %v2898_v1, 0.0 }
 0x1f4   : > { %v3142_v8 = vpack.c.bf16 %v3127_v7, %v3126_v5  ;;  %v6684_v19 = vpop.f32.mrf.mxu2  ;;  %v6686_v51 = vpop.f32.mrf.mxu3 }
 0x1f5   : > { %7811 = vst [vmem:[#allocation112_spill] sm:$0xff] %v6684_v19 }
 0x1f6   : > { %v6662_v40 = vunpack.c.l.bf16 %v3142_v8  ;;  %v6664_v57 = vunpack.c.h.bf16 %v3142_v8  ;;  %7812 = vst [vmem:[#allocation121_spill] sm:$0xff] %v6686_v51 }
 0x1f8   : > { %v3398_v13 = vmul.f32 %v6662_v40, %v5437_v31  ;;  %v3399_v11 = vmul.f32 %v6664_v57, %v5439_v32  ;;  %v3414_v20 = vmul.f32 %v6662_v40, %v5445_v42  ;;  %v3415_v9 = vmul.f32 %v6664_v57, %v5447_v43  ;;  %v6688_v31 = vpop.permute.xlu2 %2205 }
 0x1f9   : > { %7813 = vst [vmem:[#allocation119_spill] sm:$0xff] %v6688_v31  ;;  %v2216_v1 = vmul.f32 %v6688_v31, %v2170_v28  ;;  %v2217_v42 = vmul.f32 %v6688_v31, %v2171_v25  ;;  %v2218_v43 = vmul.f32 %v6688_v31, %v2172_v18  ;;  %v2219_v5 = vmul.f32 %v6688_v31, %v2173_v44 }
 0x1fa   : > { %v3478_v49 = vpack.c.bf16 %v3399_v11, %v3398_v13  ;;  %v3486_v54 = vpack.c.bf16 %v3415_v9, %v3414_v20  ;;  %v2174_v20 = vmax.f32 %v2116_v22, 0.0  ;;  %v2175_v9 = vmax.f32 %v2130_v59, 0.0 }
 0x1fb   : > { %v2272_v39 = vrot.slane %v2216_v1, 4  ;;  %v2278_v36 = vrot.slane %v2217_v42, 4  ;;  %v2284_v13 = vrot.slane %v2218_v43, 4  ;;  %v2290_v11 = vrot.slane %v2219_v5, 4 }
 0x1fc   : > { %v3659_v23 = vunpack.c.l.b16 %v3478_v49  ;;  %v3675_v32 = vunpack.c.l.b16 %v3486_v54  ;;  %v3660_v47 = vunpack.c.h.b16 %v3478_v49  ;;  %v3676_v8 = vunpack.c.h.b16 %v3486_v54  ;;  %v2925_v18 = vpop.f32.mrf.mxu2  ;;  %v2939_v44 = vpop.f32.mrf.mxu3 }
 0x1fd   : > { %v2273_v28 = vadd.f32 %v2272_v39, %v2216_v1  ;;  %v2279_v25 = vadd.f32 %v2278_v36, %v2217_v42  ;;  %v2285_v49 = vadd.f32 %v2284_v13, %v2218_v43  ;;  %v2291_v33 = vadd.f32 %v2290_v11, %v2219_v5 }
 0x1fe   : > { %v3739_v7 = vpack.c.b16 %v3675_v32, %v3659_v23  ;;  %v3740_v50 = vpack.c.b16 %v3676_v8, %v3660_v47  ;;  %v2220_v54 = vmul.f32 %v6688_v31, %v2174_v20  ;;  %v2221_v23 = vmul.f32 %v6688_v31, %v2175_v9 }
 0x1ff   : > { %v3366_v12 = vmul.f32 %v6662_v40, %v5484_v26  ;;  %v3367_v32 = vmul.f32 %v6664_v57, %v5486_v27  ;;  %v3382_v47 = vmul.f32 %v6662_v40, %v5488_v29  ;;  %v2926_v1 = vadd.f32 %v2925_v18, %v6656_v48 }
 0x200   : > { %3826 = vmatpush.bf16.msra.mxu0 %v3739_v7  ;;  %3839 = vmatpush.bf16.msra.mxu1 %v3740_v50  ;;  %v2940_v42 = vadd.f32 %v2939_v44, %v6656_v48  ;;  %v3383_v43 = vmul.f32 %v6664_v57, %v5490_v34  ;;  %v2274_v5 = vrot.slane %v2273_v28, 2  ;;  %v2280_v22 = vrot.slane %v2279_v25, 2 }
 0x201   : > { %v2144_v7 = vadd.f32 %v6550_v53, %v6666_v52  ;;  %v3462_v8 = vpack.c.bf16 %v3367_v32, %v3366_v12  ;;  %v2286_v26 = vrot.slane %v2285_v49, 2  ;;  %v2296_v59 = vrot.slane %v2220_v54, 4 }
 0x202   : > { %v3470_v29 = vpack.c.bf16 %v3383_v43, %v3382_v47  ;;  %v2292_v39 = vrot.slane %v2291_v33, 2  ;;  %v2302_v36 = vrot.slane %v2221_v23, 4  ;;  %v3128_v20 = vmax.f32 %v2926_v1, 0.0 }
 0x203   : > { %v3627_v13 = vunpack.c.l.b16 %v3462_v8  ;;  %v3628_v11 = vunpack.c.h.b16 %v3462_v8  ;;  %v3129_v9 = vmax.f32 %v2940_v42, 0.0  ;;  %v2275_v44 = vadd.f32 %v2274_v5, %v2273_v28 }
 0x204   : > { %v3643_v34 = vunpack.c.l.b16 %v3470_v29  ;;  %v3644_v18 = vunpack.c.h.b16 %v3470_v29  ;;  %v6716_v15 = vadd.f32 %v2280_v22, %v2279_v25  ;;  %v2176_v53 = vmax.f32 %v2144_v7, 0.0  ;;  %v7816_v22 = vld [vmem:[#allocation25_spill] sm:$0xff]  ;;  %v7817_v29 = vld [vmem:[#allocation30_spill] sm:$0xff] }
 0x205   : > { %v2158_v12 = vadd.f32 %v6552_v41, %v6666_v52  ;;  %v2297_v32 = vadd.f32 %v2296_v59, %v2220_v54  ;;  %v6720_v47 = vadd.f32 %v2292_v39, %v2291_v33  ;;  %v2303_v43 = vadd.f32 %v2302_v36, %v2221_v23  ;;  %v7818_v39 = vld [vmem:[#allocation31_spill] sm:$0xff] }
 0x206   : > { %v3724_v51 = vpack.c.b16 %v3644_v18, %v3628_v11  ;;  %v3143_v19 = vpack.c.bf16 %v3129_v9, %v3128_v20  ;;  %v2276_v1 = vrot.slane %v2275_v44, 1  ;;  %v2282_v42 = vrot.slane %v6716_v15, 1 }
 0x207   : > { %v2222_v28 = vmul.f32 %v6688_v31, %v2176_v53  ;;  %v2177_v25 = vmax.f32 %v2158_v12, 0.0  ;;  %v2298_v5 = vrot.slane %v2297_v32, 2  ;;  %v3334_v41 = vmul.f32 %v6662_v40, %v5528_v56  ;;  %v7821_v12 = vld [vmem:[#allocation34_spill] sm:$0xff] }
 0x208   : > { %3840 = vmatpush.bf16.msra.mxu1 %v3724_v51  ;;  %v3335_v54 = vmul.f32 %v6664_v57, %v5530_v55  ;;  %v2294_v23 = vrot.slane %v6720_v47, 1  ;;  %v2304_v51 = vrot.slane %v2303_v43, 2  ;;  %v3351_v7 = vmul.f32 %v6664_v57, %v7816_v22 }
 0x209   : > { %v6733_v8 = vunpack.c.l.bf16 %v3143_v19  ;;  %v3302_v56 = vmul.f32 %v6662_v40, %v7817_v29  ;;  %v3303_v55 = vmul.f32 %v6664_v57, %v7818_v39  ;;  %v2308_v36 = vrot.slane %v2222_v28, 4 }
 0x20a   : > { %v6742_v20 = vadd.f32 %v2298_v5, %v2297_v32 }
 0x20b   : > { %v3430_v5 = vpack.c.bf16 %v3303_v55, %v3302_v56  ;;  %v7826_v56 = vld [vmem:[#allocation19_spill] sm:$0xff] }
 0x225   : > { %v6712_v50 = vpop.f32.mrf.mxu0  ;;  %v6714_v27 = vpop.f32.mrf.mxu1 }
 0x226   : > { %7814 = vst [vmem:[#allocation120_spill] sm:$0xff] %v6712_v50  ;;  %v3723_v50 = vpack.c.b16 %v3643_v34, %v3627_v13  ;;  %v6740_v13 = vunpack.c.h.bf16 %v3143_v19 }
 0x227   : > { %7815 = vst [vmem:[#allocation131_spill] sm:$0xff] %v6714_v27  ;;  %v2287_v27 = vadd.f32 %v2286_v26, %v2285_v49  ;;  %v3350_v49 = vmul.f32 %v6662_v40, %v7716_v35  ;;  %v2223_v35 = vmul.f32 %v6688_v31, %v2177_v25  ;;  %v7824_v31 = vld [vmem:[#allocation17_spill] sm:$0xff] }
 0x228   : > { %3827 = vmatpush.bf16.msra.mxu0 %v3723_v50  ;;  %v3446_v50 = vpack.c.bf16 %v3335_v54, %v3334_v41  ;;  %v3318_v41 = vmul.f32 %v6662_v40, %v7821_v12  ;;  %v6750_v54 = vadd.f32 %v2304_v51, %v2303_v43  ;;  %v3401_v40 = vmul.f32 %v6740_v13, %v7824_v31 }
 0x229   : > { %v2288_v33 = vrot.slane %v2287_v27, 1  ;;  %v3454_v11 = vpack.c.bf16 %v3351_v7, %v3350_v49  ;;  %v7822_v49 = vld [vmem:[#allocation35_spill] sm:$0xff]  ;;  %v7823_v7 = vld [vmem:[#allocation16_spill] sm:$0xff]  ;;  %v3564_v12 = vunpack.c.h.b16 %v3430_v5  ;;  %v3417_v55 = vmul.f32 %v6740_v13, %v7826_v56 }
 0x22a   : > { %v3595_v18 = vunpack.c.l.b16 %v3446_v50  ;;  %v3596_v53 = vunpack.c.h.b16 %v3446_v50  ;;  %v3319_v32 = vmul.f32 %v6664_v57, %v7822_v49  ;;  %v3400_v39 = vmul.f32 %v6733_v8, %v7823_v7 }
 0x22b   : > { %v3611_v19 = vunpack.c.l.b16 %v3454_v11  ;;  %v3612_v29 = vunpack.c.h.b16 %v3454_v11  ;;  %v2314_v50 = vrot.slane %v2223_v35, 4  ;;  %v7825_v11 = vld [vmem:[#allocation18_spill] sm:$0xff]  ;;  %v6764_v49 = vadd.f32 %v2276_v1, %v2275_v44 }
 0x22c   : > { %v3438_v51 = vpack.c.bf16 %v3319_v32, %v3318_v41  ;;  %v3416_v57 = vmul.f32 %v6733_v8, %v7825_v11  ;;  %v6767_v31 = vadd.f32 %v2282_v42, %v6716_v15  ;;  %v6774_v44 = vadd.f32 %v2294_v23, %v6720_v47  ;;  %v6783_v47 = vld [vmem:[%s7370_s5] sm:$0xf] }
 0x22d   : > { %v2953_v26 = vpop.f32.mrf.mxu0  ;;  %v2967_v59 = vpop.f32.mrf.mxu1  ;;  %v3708_v43 = vpack.c.b16 %v3612_v29, %v3596_v53  ;;  %v6769_v53 = vadd.f32 %v2288_v33, %v2287_v27  ;;  %v2300_v1 = vrot.slane %v6742_v20, 1 }
 0x22e   : > { %v2954_v22 = vadd.f32 %v2953_v26, %v6656_v48  ;;  %v2968_v25 = vadd.f32 %v2967_v59, %v6656_v48  ;;  %v3563_v26 = vunpack.c.l.b16 %v3430_v5  ;;  %v3487_v29 = vpack.c.bf16 %v3417_v55, %v3416_v57  ;;  %v7828_v57 = vld [vmem:[#allocation21_spill] sm:$0xff]  ;;  %v6791_v55 = vpop.permute.xlu0 %3153 }
 0x22f   : > { %3841 = vmatpush.bf16.msra.mxu1 %v3708_v43  ;;  %v2306_v5 = vrot.slane %v6750_v54, 1  ;;  %v3369_v56 = vmul.f32 %v6740_v13, %v7828_v57 }
 0x230   : > { %v3130_v59 = vmax.f32 %v2954_v22, 0.0  ;;  %v3131_v2 = vmax.f32 %v2968_v25, 0.0  ;;  %v2315_v22 = vadd.f32 %v2314_v50, %v2223_v35  ;;  %v3677_v50 = vunpack.c.l.b16 %v3487_v29 }
 0x231   : > { %v3678_v43 = vunpack.c.h.b16 %v3487_v29  ;;  %v7829_v29 = vld [vmem:[#allocation22_spill] sm:$0xff] }
 0x232   : > { %v3144_v7 = vpack.c.bf16 %v3131_v2, %v3130_v59  ;;  %v2316_v2 = vrot.slane %v2315_v22, 2 }
 0x236   : > { %v6744_v9 = vpop.f32.mrf.mxu2  ;;  %v6746_v34 = vpop.f32.mrf.mxu3 }
 0x237   : > { %7819 = vst [vmem:[#allocation25_spill] sm:$0xff] %v6744_v9  ;;  %v3707_v9 = vpack.c.b16 %v3611_v19, %v3595_v18  ;;  %v3479_v18 = vpack.c.bf16 %v3401_v40, %v3400_v39 }
 0x238   : > { %7820 = vst [vmem:[#allocation30_spill] sm:$0xff] %v6746_v34  ;;  %v2309_v34 = vadd.f32 %v2308_v36, %v2222_v28  ;;  %v3579_v28 = vunpack.c.l.b16 %v3438_v51  ;;  %v3580_v36 = vunpack.c.h.b16 %v3438_v51  ;;  %v7827_v51 = vld [vmem:[#allocation20_spill] sm:$0xff] }
 0x239   : > { %3828 = vmatpush.bf16.msra.mxu0 %v3707_v9  ;;  %v6771_v9 = vpop.permute.xlu1 %2550  ;;  %v3661_v32 = vunpack.c.l.b16 %v3479_v18  ;;  %v3662_v40 = vunpack.c.h.b16 %v3479_v18 }
 0x23a   : > { %v2310_v41 = vrot.slane %v2309_v34, 2  ;;  %v3691_v25 = vpack.c.b16 %v3579_v28, %v3563_v26  ;;  %v3692_v19 = vpack.c.b16 %v3580_v36, %v3564_v12  ;;  %v3368_v26 = vmul.f32 %v6733_v8, %v7827_v51 }
 0x23b   : > { %v3741_v11 = vpack.c.b16 %v3677_v50, %v3661_v32  ;;  %v6793_v28 = vunpack.c.l.bf16 %v3144_v7  ;;  %v6795_v36 = vunpack.c.h.bf16 %v3144_v7  ;;  %v3384_v32 = vmul.f32 %v6733_v8, %v7829_v29 }
 0x23c   : > { %3842 = vmatpush.bf16.msra.mxu1 %v3692_v19  ;;  %v6785_v23 = vadd.f32 %v2310_v41, %v2309_v34  ;;  %v3742_v19 = vpack.c.b16 %v3678_v43, %v3662_v40  ;;  %v6808_v7 = vadd.f32 %v2300_v1, %v6742_v20  ;;  %v7831_v20 = vld [vmem:[#allocation38_spill] sm:$0xff] }
 0x23d   : > { %3829 = vmatpush.bf16.msra.mxu0 %v3691_v25  ;;  %3852 = vmatpush.bf16.msra.mxu2 %v3741_v11  ;;  %v3402_v1 = vmul.f32 %v6793_v28, %v7831_v20 }
 0x23e   : > { %v3007_v15 = vpop.f32.mrf.mxu0  ;;  %v3021_v42 = vpop.f32.mrf.mxu1  ;;  %3865 = vmatpush.bf16.msra.mxu3 %v3742_v19 }
 0x23f   : > { %v3008_v27 = vadd.f32 %v3007_v15, %v6771_v9  ;;  %v3022_v33 = vadd.f32 %v3021_v42, %v6771_v9  ;;  %v2981_v35 = vpop.f32.mrf.mxu2  ;;  %v2995_v39 = vpop.f32.mrf.mxu3  ;;  %4912 = vmatmul.msk.bf16.vlgmr.msra.gmra.mxu1 %vm1934_vm4, %v6783_v47  ;;  %v6811_v15 = vadd.f32 %v2306_v5, %v6750_v54  ;;  %v7830_v42 = vld [vmem:[#allocation23_spill] sm:$0xff] }
 0x240   : > { %v2982_v34 = vadd.f32 %v2981_v35, %v6656_v48  ;;  %v2996_v18 = vadd.f32 %v2995_v39, %v6656_v48  ;;  %4911 = vmatmul.msk.bf16.vlgmr.msra.gmra.mxu0 %vm1934_vm4, %v6783_v47  ;;  %v6816_v39 = vadd.f32 %v2316_v2, %v2315_v22  ;;  %v7832_v54 = vld [vmem:[#allocation39_spill] sm:$0xff] }
 0x241   : > { %v3118_v12 = vmax.f32 %v3008_v27, 0.0  ;;  %v3119_v59 = vmax.f32 %v3022_v33, 0.0  ;;  %v3385_v27 = vmul.f32 %v6740_v13, %v7830_v42  ;;  %v3463_v33 = vpack.c.bf16 %v3369_v56, %v3368_v26  ;;  %v7833_v42 = vld [vmem:[#allocation40_spill] sm:$0xff] }
 0x242   : > { %v3403_v5 = vmul.f32 %v6795_v36, %v7832_v54  ;;  %v3132_v26 = vmax.f32 %v2982_v34, 0.0  ;;  %v3133_v56 = vmax.f32 %v2996_v18, 0.0  ;;  %v3418_v19 = vmul.f32 %v6793_v28, %v7833_v42  ;;  %v7836_v42 = vld [vmem:[#allocation27_spill] sm:$0xff] }
 0x243   : > { %v3164_v41 = vmul.f32 %v6791_v55, %v3118_v12  ;;  %v3165_v25 = vmul.f32 %v6791_v55, %v3119_v59  ;;  %v3471_v12 = vpack.c.bf16 %v3385_v27, %v3384_v32  ;;  %v3629_v59 = vunpack.c.l.b16 %v3463_v33 }
 0x244   : > { %v3630_v22 = vunpack.c.h.b16 %v3463_v33  ;;  %v7835_v33 = vld [vmem:[#allocation26_spill] sm:$0xff] }
 0x245   : > { %v3220_v50 = vrot.slane %v3164_v41, 4  ;;  %v3226_v51 = vrot.slane %v3165_v25, 4  ;;  %v3645_v29 = vunpack.c.l.b16 %v3471_v12  ;;  %v3646_v2 = vunpack.c.h.b16 %v3471_v12 }
 0x246   : > { %v3009_v40 = vpop.f32.mrf.mxu0  ;;  %v3023_v43 = vpop.f32.mrf.mxu1 }
 0x247   : > { %v3221_v11 = vadd.f32 %v3220_v50, %v3164_v41  ;;  %v3227_v57 = vadd.f32 %v3226_v51, %v3165_v25  ;;  %v3010_v32 = vadd.f32 %v3009_v40, %v6656_v48  ;;  %v3024_v27 = vadd.f32 %v3023_v43, %v6656_v48 }
 0x248   : > { %v3725_v20 = vpack.c.b16 %v3645_v29, %v3629_v59  ;;  %v3726_v52 = vpack.c.b16 %v3646_v2, %v3630_v22  ;;  %v3419_v41 = vmul.f32 %v6795_v36, %v7834_v0  ;;  %v3480_v25 = vpack.c.bf16 %v3403_v5, %v3402_v1  ;;  %v7839_v2 = vld [vmem:[#allocation46_spill] sm:$0xff] }
 0x249   : > { %v3222_v35 = vrot.slane %v3221_v11, 2  ;;  %v3228_v16 = vrot.slane %v3227_v57, 2  ;;  %v6828_v50 = vpack.c.bf16 %v3133_v56, %v3132_v26  ;;  %v3336_v51 = vmul.f32 %v6733_v8, %v7835_v33  ;;  %v7840_v33 = vld [vmem:[#allocation47_spill] sm:$0xff] }
 0x24a   : > { %3853 = vmatpush.bf16.msra.mxu2 %v3725_v20  ;;  %3866 = vmatpush.bf16.msra.mxu3 %v3726_v52  ;;  %v3488_v12 = vpack.c.bf16 %v3419_v41, %v3418_v19  ;;  %v3663_v54 = vunpack.c.l.b16 %v3480_v25  ;;  %v3664_v40 = vunpack.c.h.b16 %v3480_v25  ;;  %v3337_v43 = vmul.f32 %v6740_v13, %v7836_v42 }
 0x24b   : > { %v3223_v34 = vadd.f32 %v3222_v35, %v3221_v11  ;;  %v3229_v18 = vadd.f32 %v3228_v16, %v3227_v57  ;;  %v3134_v22 = vmax.f32 %v3010_v32, 0.0  ;;  %v3135_v0 = vmax.f32 %v3024_v27, 0.0  ;;  %v7837_v16 = vld [vmem:[#allocation28_spill] sm:$0xff]  ;;  %v7838_v11 = vld [vmem:[#allocation29_spill] sm:$0xff] }
 0x24c   : > { %v3679_v1 = vunpack.c.l.b16 %v3488_v12  ;;  %v3680_v35 = vunpack.c.h.b16 %v3488_v12  ;;  %v3352_v5 = vmul.f32 %v6733_v8, %v7837_v16  ;;  %v3353_v57 = vmul.f32 %v6740_v13, %v7838_v11 }
 0x24d   : > { %v3224_v59 = vrot.slane %v3223_v34, 1  ;;  %v3230_v29 = vrot.slane %v3229_v18, 1  ;;  %v3447_v56 = vpack.c.bf16 %v3337_v43, %v3336_v51  ;;  %v3370_v19 = vmul.f32 %v6793_v28, %v7839_v2  ;;  %v7841_v51 = vld [vmem:[#allocation48_spill] sm:$0xff] }
 0x24e   : > { %v3743_v20 = vpack.c.b16 %v3679_v1, %v3663_v54  ;;  %v3744_v41 = vpack.c.b16 %v3680_v35, %v3664_v40  ;;  %v3455_v25 = vpack.c.bf16 %v3353_v57, %v3352_v5  ;;  %v3371_v32 = vmul.f32 %v6795_v36, %v7840_v33  ;;  %v7842_v40 = vld [vmem:[#allocation49_spill] sm:$0xff] }
 0x24f   : > { %v3225_v26 = vadd.f32 %v3224_v59, %v3223_v34  ;;  %v3231_v52 = vadd.f32 %v3230_v29, %v3229_v18  ;;  %v3597_v42 = vunpack.c.l.b16 %v3447_v56  ;;  %v3598_v16 = vunpack.c.h.b16 %v3447_v56  ;;  %v7845_v33 = vld [vmem:[#allocation33_spill] sm:$0xff] }
 0x250   : > { %3878 = vmatpush.bf16.msrb.mxu0 %v3743_v20  ;;  %3891 = vmatpush.bf16.msrb.mxu1 %v3744_v41  ;;  %v3613_v34 = vunpack.c.l.b16 %v3455_v25  ;;  %v3614_v18 = vunpack.c.h.b16 %v3455_v25  ;;  %v3386_v54 = vmul.f32 %v6793_v28, %v7841_v51  ;;  %v3387_v43 = vmul.f32 %v6795_v36, %v7842_v40  ;;  %v7844_v41 = vld [vmem:[#allocation32_spill] sm:$0xff] }
 0x251   : > { %v6843_v27 = vadd.f32 %v3225_v26, %v6764_v49  ;;  %v6846_v12 = vadd.f32 %v3231_v52, %v6767_v31  ;;  %v7843_v59 = vrot.slane %v6785_v23, 1  ;;  %v2318_v31 = vrot.slane %v6816_v39, 1  ;;  %v4046_v25 = vld [vmem:[%s7374_s9] sm:$0xff] }
 0x252   : > { %v6859_v29 = vunpack.c.l.bf16 %v6828_v50  ;;  %v3464_v1 = vpack.c.bf16 %v3371_v32, %v3370_v19  ;;  %v6861_v35 = vpack.c.bf16 %v3135_v0, %v3134_v22  ;;  %v3709_v11 = vpack.c.b16 %v3613_v34, %v3597_v42  ;;  %4049 = vperm.xlu1 %4993, %v4046_v25  }
 0x253   : > { %v6855_v49 = vadd.f32 %v7843_v59, %v6785_v23  ;;  %v3710_v57 = vpack.c.b16 %v3614_v18, %v3598_v16  ;;  %v3472_v26 = vpack.c.bf16 %v3387_v43, %v3386_v54  ;;  %v3304_v23 = vmul.f32 %v6733_v8, %v7844_v41  ;;  %v7846_v16 = vld [vmem:[#allocation36_spill] sm:$0xff]  ;;  %v7847_v18 = vld [vmem:[#allocation37_spill] sm:$0xff]  ;;  %v7848_v54 = vld [vmem:[#allocation54_spill] sm:$0xff] }
 0x254   : > { %v3631_v2 = vunpack.c.l.b16 %v3464_v1  ;;  %v3632_v20 = vunpack.c.h.b16 %v3464_v1  ;;  %3854 = vmatpush.bf16.msra.mxu2 %v3709_v11  ;;  %v3305_v32 = vmul.f32 %v6740_v13, %v7845_v33  ;;  %v3320_v34 = vmul.f32 %v6733_v8, %v7846_v16 }
 0x255   : > { %3867 = vmatpush.bf16.msra.mxu3 %v3710_v57  ;;  %v3647_v22 = vunpack.c.l.b16 %v3472_v26  ;;  %v3648_v0 = vunpack.c.h.b16 %v3472_v26  ;;  %v3321_v51 = vmul.f32 %v6740_v13, %v7847_v18  ;;  %v3338_v40 = vmul.f32 %v6793_v28, %v7848_v54  ;;  %v7849_v26 = vld [vmem:[#allocation55_spill] sm:$0xff] }
 0x256   : > { %v3307_v16 = vmul.f32 %v6795_v36, %v7746_v37 }
 0x257   : > { %v3727_v59 = vpack.c.b16 %v3647_v22, %v3631_v2  ;;  %v3728_v1 = vpack.c.b16 %v3648_v0, %v3632_v20  ;;  %v3439_v57 = vpack.c.bf16 %v3321_v51, %v3320_v34  ;;  %v3355_v2 = vmul.f32 %v6795_v36, %v7741_v3 }
 0x258   : > { %v3035_v5 = vpop.f32.mrf.mxu2 }
 0x259   : > { %v3036_v52 = vadd.f32 %v3035_v5, %v6771_v9  ;;  %v3049_v56 = vpop.f32.mrf.mxu3  ;;  %v3431_v5 = vpack.c.bf16 %v3305_v32, %v3304_v23  ;;  %3879 = vmatpush.bf16.msrb.mxu0 %v3727_v59  ;;  %3892 = vmatpush.bf16.msrb.mxu1 %v3728_v1  ;;  %v3581_v23 = vunpack.c.l.b16 %v3439_v57  ;;  %v3582_v25 = vunpack.c.h.b16 %v3439_v57 }
 0x25a   : > { %v3050_v19 = vadd.f32 %v3049_v56, %v6771_v9  ;;  %v7850_v56 = vld [vmem:[#allocation56_spill] sm:$0xff] }
 0x25b   : > { %v3120_v42 = vmax.f32 %v3036_v52, 0.0  ;;  %v3339_v52 = vmul.f32 %v6795_v36, %v7849_v26  ;;  %v3354_v8 = vmul.f32 %v6793_v28, %v7850_v56  ;;  %v3565_v13 = vunpack.c.l.b16 %v3431_v5 }
 0x25c   : > { %v3121_v43 = vmax.f32 %v3050_v19, 0.0  ;;  %v3566_v33 = vunpack.c.h.b16 %v3431_v5 }
 0x25d   : > { %v3166_v11 = vmul.f32 %v6791_v55, %v3120_v42  ;;  %v3448_v19 = vpack.c.bf16 %v3339_v52, %v3338_v40  ;;  %v3456_v0 = vpack.c.bf16 %v3355_v2, %v3354_v8  ;;  %v3306_v42 = vmul.f32 %v6793_v28, %v5782_v4  ;;  %v7851_v4 = vld [vmem:[#allocation63_spill] sm:$0xff]  ;;  %v7852_v8 = vld [vmem:[#allocation64_spill] sm:$0xff] }
 0x25e   : > { %v3167_v41 = vmul.f32 %v6791_v55, %v3121_v43  ;;  %v3693_v18 = vpack.c.b16 %v3581_v23, %v3565_v13  ;;  %v3694_v51 = vpack.c.b16 %v3582_v25, %v3566_v33  ;;  %v3322_v52 = vmul.f32 %v6793_v28, %v7851_v4 }
 0x25f   : > { %v3232_v20 = vrot.slane %v3166_v11, 4  ;;  %v3599_v54 = vunpack.c.l.b16 %v3448_v19  ;;  %v3615_v3 = vunpack.c.l.b16 %v3456_v0  ;;  %v3600_v1 = vunpack.c.h.b16 %v3448_v19 }
 0x260   : > { %v3238_v22 = vrot.slane %v3167_v41, 4  ;;  %v3037_v32 = vpop.f32.mrf.mxu2  ;;  %v3616_v5 = vunpack.c.h.b16 %v3456_v0  ;;  %3855 = vmatpush.bf16.msra.mxu2 %v3693_v18  ;;  %3868 = vmatpush.bf16.msra.mxu3 %v3694_v51  ;;  %v3323_v13 = vmul.f32 %v6795_v36, %v7852_v8  ;;  %v6900_v33 = vunpack.c.l.bf16 %v6861_v35 }
 0x261   : > { %v3233_v34 = vadd.f32 %v3232_v20, %v3166_v11  ;;  %v3051_v43 = vpop.f32.mrf.mxu3  ;;  %v3038_v40 = vadd.f32 %v3037_v32, %v6656_v48  ;;  %v3711_v11 = vpack.c.b16 %v3615_v3, %v3599_v54  ;;  %v3432_v20 = vpack.c.bf16 %v3307_v16, %v3306_v42 }
 0x262   : > { %v3239_v59 = vadd.f32 %v3238_v22, %v3167_v41  ;;  %v3052_v26 = vadd.f32 %v3051_v43, %v6656_v48  ;;  %v3712_v56 = vpack.c.b16 %v3616_v5, %v3600_v1  ;;  %v6897_v41 = vunpack.c.h.bf16 %v6828_v50 }
 0x263   : > { %v3234_v57 = vrot.slane %v3233_v34, 2  ;;  %3880 = vmatpush.bf16.msrb.mxu0 %v3711_v11  ;;  %v3136_v28 = vmax.f32 %v3038_v40, 0.0  ;;  %v3440_v0 = vpack.c.bf16 %v3323_v13, %v3322_v52  ;;  %v6903_v32 = vunpack.c.h.bf16 %v6861_v35  ;;  %4913 = vmatmul.msk.bf16.vlgmr.msra.gmra.mxu2 %vm1934_vm4, %v6783_v47  ;;  %v7853_v35 = vld [vmem:[#allocation42_spill] sm:$0xff]  ;;  %v7855_v13 = vld [vmem:[#allocation44_spill] sm:$0xff] }
 0x264   : > { %v3240_v37 = vrot.slane %v3239_v59, 2  ;;  %3893 = vmatpush.bf16.msrb.mxu1 %v3712_v56  ;;  %v3137_v22 = vmax.f32 %v3052_v26, 0.0  ;;  %4914 = vmatmul.msk.bf16.vlgmr.msra.gmra.mxu3 %vm1934_vm4, %v6783_v47  ;;  %v3567_v16 = vunpack.c.l.b16 %v3432_v20  ;;  %v3568_v51 = vunpack.c.h.b16 %v3432_v20  ;;  %v7856_v20 = vld [vmem:[#allocation45_spill] sm:$0xff] }
 0x265   : > { %v3235_v2 = vadd.f32 %v3234_v57, %v3233_v34  ;;  %v3583_v34 = vunpack.c.l.b16 %v3440_v0  ;;  %v3404_v3 = vmul.f32 %v6859_v29, %v7853_v35  ;;  %v3584_v40 = vunpack.c.h.b16 %v3440_v0 }
 0x266   : > { %v3241_v23 = vadd.f32 %v3240_v37, %v3239_v59  ;;  %v6913_v5 = vpack.c.bf16 %v3137_v22, %v3136_v28  ;;  %v7854_v37 = vld [vmem:[#allocation43_spill] sm:$0xff]  ;;  %v7857_v28 = vld [vmem:[#allocation50_spill] sm:$0xff] }
 0x267   : > { %v3236_v36 = vrot.slane %v3235_v2, 1  ;;  %v3695_v57 = vpack.c.b16 %v3583_v34, %v3567_v16  ;;  %v3405_v11 = vmul.f32 %v6897_v41, %v7854_v37  ;;  %v3696_v8 = vpack.c.b16 %v3584_v40, %v3568_v51  ;;  %v7860_v34 = vld [vmem:[#allocation53_spill] sm:$0xff] }
 0x268   : > { %v3242_v42 = vrot.slane %v3241_v23, 1  ;;  %v3372_v22 = vmul.f32 %v6859_v29, %v7857_v28  ;;  %v3389_v51 = vmul.f32 %v6897_v41, %v7860_v34  ;;  %v6946_v28 = vadd.f32 %v2318_v31, %v6816_v39 }
 0x269   : > { %v3063_v25 = vpop.f32.mrf.mxu0  ;;  %v3077_v19 = vpop.f32.mrf.mxu1  ;;  %v3237_v54 = vadd.f32 %v3236_v36, %v3235_v2  ;;  %3881 = vmatpush.bf16.msrb.mxu0 %v3695_v57  ;;  %v3420_v2 = vmul.f32 %v6859_v29, %v7855_v13  ;;  %3894 = vmatpush.bf16.msrb.mxu1 %v3696_v8 }
 0x26a   : > { %v3064_v50 = vadd.f32 %v3063_v25, %v6771_v9  ;;  %v3078_v18 = vadd.f32 %v3077_v19, %v6771_v9  ;;  %v3243_v1 = vadd.f32 %v3242_v42, %v3241_v23  ;;  %v3421_v23 = vmul.f32 %v6897_v41, %v7856_v20  ;;  %v7859_v42 = vld [vmem:[#allocation52_spill] sm:$0xff] }
 0x26b   : > { %v6916_v26 = vadd.f32 %v3237_v54, %v6769_v53  ;;  %v3481_v19 = vpack.c.bf16 %v3405_v11, %v3404_v3  ;;  %v3388_v16 = vmul.f32 %v6859_v29, %v7859_v42  ;;  %v6951_v42 = vunpack.c.l.bf16 %v6913_v5 }
 0x26c   : > { %v3122_v43 = vmax.f32 %v3064_v50, 0.0  ;;  %v3123_v59 = vmax.f32 %v3078_v18, 0.0  ;;  %v6923_v56 = vadd.f32 %v3243_v1, %v6774_v44  ;;  %v3489_v0 = vpack.c.bf16 %v3421_v23, %v3420_v2  ;;  %v7858_v44 = vld [vmem:[#allocation51_spill] sm:$0xff]  ;;  %4915 = vmatmul.msk.bf16.vlgmr.msrb.gmra.mxu0 %vm1934_vm4, %v6783_v47  ;;  %4916 = vmatmul.msk.bf16.vlgmr.msrb.gmra.mxu1 %vm1934_vm4, %v6783_v47 }
 0x26d   : > { %v3373_v18 = vmul.f32 %v6897_v41, %v7858_v44  ;;  %v3666_v35 = vunpack.c.h.b16 %v3481_v19  ;;  %v3473_v13 = vpack.c.bf16 %v3389_v51, %v3388_v16  ;;  %v7862_v16 = vld [vmem:[#allocation70_spill] sm:$0xff] }
 0x26e   : > { %v3168_v4 = vmul.f32 %v6791_v55, %v3122_v43  ;;  %v3169_v52 = vmul.f32 %v6791_v55, %v3123_v59  ;;  %v3665_v59 = vunpack.c.l.b16 %v3481_v19  ;;  %v3681_v3 = vunpack.c.l.b16 %v3489_v0 }
 0x26f   : > { %v3682_v1 = vunpack.c.h.b16 %v3489_v0  ;;  %v3465_v8 = vpack.c.bf16 %v3373_v18, %v3372_v22  ;;  %v3649_v19 = vunpack.c.l.b16 %v3473_v13  ;;  %v3407_v34 = vmul.f32 %v6903_v32, %v7862_v16  ;;  %v7868_v16 = vld [vmem:[#allocation61_spill] sm:$0xff] }
 0x270   : > { %v3244_v53 = vrot.slane %v3168_v4, 4  ;;  %v3250_v25 = vrot.slane %v3169_v52, 4 }
 0x271   : > { %v3065_v36 = vpop.f32.mrf.mxu0  ;;  %v3079_v50 = vpop.f32.mrf.mxu1  ;;  %v3634_v0 = vunpack.c.h.b16 %v3465_v8 }
 0x272   : > { %v3245_v54 = vadd.f32 %v3244_v53, %v3168_v4  ;;  %v3251_v43 = vadd.f32 %v3250_v25, %v3169_v52  ;;  %v3066_v57 = vadd.f32 %v3065_v36, %v6656_v48  ;;  %v3080_v40 = vadd.f32 %v3079_v50, %v6656_v48  ;;  %v7861_v50 = vld [vmem:[#allocation69_spill] sm:$0xff] }
 0x273   : > { %v3745_v4 = vpack.c.b16 %v3681_v3, %v3665_v59  ;;  %v3746_v52 = vpack.c.b16 %v3682_v1, %v3666_v35  ;;  %v3633_v25 = vunpack.c.l.b16 %v3465_v8  ;;  %v3650_v36 = vunpack.c.h.b16 %v3473_v13  ;;  %v7863_v59 = vld [vmem:[#allocation71_spill] sm:$0xff] }
 0x274   : > { %v3246_v37 = vrot.slane %v3245_v54, 2  ;;  %v3252_v11 = vrot.slane %v3251_v43, 2  ;;  %v3138_v2 = vmax.f32 %v3066_v57, 0.0  ;;  %v3139_v20 = vmax.f32 %v3080_v40, 0.0  ;;  %v7864_v57 = vld [vmem:[#allocation72_spill] sm:$0xff] }
 0x275   : > { %3904 = vmatpush.bf16.msrb.mxu2 %v3745_v4  ;;  %3917 = vmatpush.bf16.msrb.mxu3 %v3746_v52  ;;  %v3406_v22 = vmul.f32 %v6900_v33, %v7861_v50  ;;  %v3091_v51 = vpop.f32.mrf.mxu2  ;;  %v3729_v39 = vpack.c.b16 %v3649_v19, %v3633_v25  ;;  %v3730_v31 = vpack.c.b16 %v3650_v36, %v3634_v0  ;;  %v7865_v4 = vld [vmem:[#allocation58_spill] sm:$0xff]  ;;  %v7866_v0 = vld [vmem:[#allocation59_spill] sm:$0xff] }
 0x276   : > { %v3247_v23 = vadd.f32 %v3246_v37, %v3245_v54  ;;  %v3253_v53 = vadd.f32 %v3252_v11, %v3251_v43  ;;  %v3105_v54 = vpop.f32.mrf.mxu3  ;;  %v6955_v43 = vpack.c.bf16 %v3139_v20, %v3138_v2  ;;  %v3422_v35 = vmul.f32 %v6900_v33, %v7863_v59 }
 0x277   : > { %v3423_v40 = vmul.f32 %v6903_v32, %v7864_v57  ;;  %v3482_v37 = vpack.c.bf16 %v3407_v34, %v3406_v22  ;;  %v6962_v11 = vunpack.c.h.bf16 %v6913_v5  ;;  %v3092_v8 = vadd.f32 %v3091_v51, %v6771_v9 }
 0x278   : > { %v3248_v44 = vrot.slane %v3247_v23, 1  ;;  %v3254_v18 = vrot.slane %v3253_v53, 1  ;;  %v3106_v13 = vadd.f32 %v3105_v54, %v6771_v9  ;;  %v3340_v52 = vmul.f32 %v6859_v29, %v7865_v4  ;;  %v7869_v54 = vld [vmem:[#allocation77_spill] sm:$0xff] }
 0x279   : > { %3905 = vmatpush.bf16.msrb.mxu2 %v3729_v39  ;;  %3918 = vmatpush.bf16.msrb.mxu3 %v3730_v31  ;;  %v3668_v25 = vunpack.c.h.b16 %v3482_v37  ;;  %v3124_v5 = vmax.f32 %v3092_v8, 0.0  ;;  %v3341_v36 = vmul.f32 %v6897_v41, %v7866_v0  ;;  %v3374_v39 = vmul.f32 %v6900_v33, %v7869_v54 }
 0x27a   : > { %v3249_v3 = vadd.f32 %v3248_v44, %v3247_v23  ;;  %v3255_v1 = vadd.f32 %v3254_v18, %v3253_v53  ;;  %v3490_v23 = vpack.c.bf16 %v3423_v40, %v3422_v35  ;;  %v3667_v53 = vunpack.c.l.b16 %v3482_v37  ;;  %v7867_v44 = vld [vmem:[#allocation60_spill] sm:$0xff] }
 0x27b   : > { %v3125_v19 = vmax.f32 %v3106_v13, 0.0  ;;  %v3356_v18 = vmul.f32 %v6859_v29, %v7867_v44  ;;  %v3170_v34 = vmul.f32 %v6791_v55, %v3124_v5  ;;  %v3449_v51 = vpack.c.bf16 %v3341_v36, %v3340_v52  ;;  %v7872_v5 = vld [vmem:[#allocation82_spill] sm:$0xff]  ;;  %v7873_v36 = vld [vmem:[#allocation65_spill] sm:$0xff] }
 0x27c   : > { %v6969_v2 = vadd.f32 %v3249_v3, %v6808_v7  ;;  %v6972_v20 = vadd.f32 %v3255_v1, %v6811_v15  ;;  %v3683_v50 = vunpack.c.l.b16 %v3490_v23  ;;  %v3684_v22 = vunpack.c.h.b16 %v3490_v23  ;;  %v7870_v3 = vld [vmem:[#allocation78_spill] sm:$0xff]  ;;  %v7871_v23 = vld [vmem:[#allocation81_spill] sm:$0xff] }
 0x27d   : > { %v3357_v7 = vmul.f32 %v6897_v41, %v7868_v16  ;;  %v3171_v15 = vmul.f32 %v6791_v55, %v3125_v19  ;;  %v3375_v1 = vmul.f32 %v6903_v32, %v7870_v3  ;;  %v3256_v57 = vrot.slane %v3170_v34, 4  ;;  %v7874_v16 = vld [vmem:[#allocation66_spill] sm:$0xff] }
 0x27e   : > { %v3747_v31 = vpack.c.b16 %v3683_v50, %v3667_v53  ;;  %v3748_v59 = vpack.c.b16 %v3684_v22, %v3668_v25  ;;  %v3601_v37 = vunpack.c.l.b16 %v3449_v51  ;;  %v3602_v8 = vunpack.c.h.b16 %v3449_v51 }
 0x27f   : > { %v3457_v35 = vpack.c.bf16 %v3357_v7, %v3356_v18  ;;  %v3262_v40 = vrot.slane %v3171_v15, 4  ;;  %v3390_v52 = vmul.f32 %v6900_v33, %v7871_v23  ;;  %v3391_v19 = vmul.f32 %v6903_v32, %v7872_v5  ;;  %v3093_v5 = vpop.f32.mrf.mxu2 }
 0x280   : > { %3930 = vmatpush.bf16.msra.mxu0 %v3747_v31  ;;  %3943 = vmatpush.bf16.msra.mxu1 %v3748_v59  ;;  %v3257_v53 = vadd.f32 %v3256_v57, %v3170_v34  ;;  %v3466_v0 = vpack.c.bf16 %v3375_v1, %v3374_v39  ;;  %v3308_v50 = vmul.f32 %v6859_v29, %v7873_v36  ;;  %v7875_v34 = vld [vmem:[#allocation67_spill] sm:$0xff]  ;;  %v7876_v39 = vld [vmem:[#allocation68_spill] sm:$0xff] }
 0x281   : > { %v3617_v13 = vunpack.c.l.b16 %v3457_v35  ;;  %v3618_v4 = vunpack.c.h.b16 %v3457_v35  ;;  %v3263_v25 = vadd.f32 %v3262_v40, %v3171_v15  ;;  %v3474_v18 = vpack.c.bf16 %v3391_v19, %v3390_v52 }
 0x282   : > { %v3309_v7 = vmul.f32 %v6897_v41, %v7874_v16  ;;  %v3258_v51 = vrot.slane %v3257_v53, 2  ;;  %v3635_v31 = vunpack.c.l.b16 %v3466_v0  ;;  %v3636_v59 = vunpack.c.h.b16 %v3466_v0 }
 0x283   : > { %v3713_v22 = vpack.c.b16 %v3617_v13, %v3601_v37  ;;  %v3714_v44 = vpack.c.b16 %v3618_v4, %v3602_v8  ;;  %v3264_v54 = vrot.slane %v3263_v25, 2  ;;  %v3651_v35 = vunpack.c.l.b16 %v3474_v18 }
 0x284   : > { %v3652_v3 = vunpack.c.h.b16 %v3474_v18  ;;  %v3324_v15 = vmul.f32 %v6859_v29, %v7875_v34  ;;  %v3325_v1 = vmul.f32 %v6897_v41, %v7876_v39  ;;  %v3259_v57 = vadd.f32 %v3258_v51, %v3257_v53  ;;  %v7877_v39 = vld [vmem:[#allocation89_spill] sm:$0xff] }
 0x285   : > { %3906 = vmatpush.bf16.msrb.mxu2 %v3713_v22  ;;  %3919 = vmatpush.bf16.msrb.mxu3 %v3714_v44  ;;  %v3265_v40 = vadd.f32 %v3264_v54, %v3263_v25  ;;  %v3433_v37 = vpack.c.bf16 %v3309_v7, %v3308_v50  ;;  %v3342_v8 = vmul.f32 %v6900_v33, %v5989_v45  ;;  %v3107_v22 = vpop.f32.mrf.mxu3 }
 0x286   : > { %v3731_v13 = vpack.c.b16 %v3651_v35, %v3635_v31  ;;  %v3732_v4 = vpack.c.b16 %v3652_v3, %v3636_v59  ;;  %v3441_v23 = vpack.c.bf16 %v3325_v1, %v3324_v15  ;;  %v3343_v52 = vmul.f32 %v6903_v32, %v5993_v61 }
 0x287   : > { %v3260_v19 = vrot.slane %v3259_v57, 1  ;;  %v3266_v0 = vrot.slane %v3265_v40, 1  ;;  %v3569_v36 = vunpack.c.l.b16 %v3433_v37  ;;  %v3570_v29 = vunpack.c.h.b16 %v3433_v37  ;;  %v7880_v37 = vld [vmem:[#allocation92_spill] sm:$0xff] }
 0x288   : > { %3931 = vmatpush.bf16.msra.mxu0 %v3731_v13  ;;  %3944 = vmatpush.bf16.msra.mxu1 %v3732_v4  ;;  %v3585_v41 = vunpack.c.l.b16 %v3441_v23  ;;  %v3586_v53 = vunpack.c.h.b16 %v3441_v23  ;;  %v3358_v25 = vmul.f32 %v6900_v33, %v5995_v21  ;;  %v3359_v45 = vmul.f32 %v6903_v32, %v5999_v17  ;;  %v7881_v4 = vld [vmem:[#allocation73_spill] sm:$0xff] }
 0x289   : > { %v3261_v50 = vadd.f32 %v3260_v19, %v3259_v57  ;;  %v3267_v44 = vadd.f32 %v3266_v0, %v3265_v40  ;;  %v3450_v18 = vpack.c.bf16 %v3343_v52, %v3342_v8  ;;  %v3094_v61 = vadd.f32 %v3093_v5, %v6656_v48  ;;  %v7878_v57 = vld [vmem:[#allocation90_spill] sm:$0xff]  ;;  %v7879_v40 = vld [vmem:[#allocation91_spill] sm:$0xff] }
 0x28a   : > { %v3697_v16 = vpack.c.b16 %v3585_v41, %v3569_v36  ;;  %v3698_v7 = vpack.c.b16 %v3586_v53, %v3570_v29  ;;  %v3458_v51 = vpack.c.bf16 %v3359_v45, %v3358_v25  ;;  %v3108_v54 = vadd.f32 %v3107_v22, %v6656_v48  ;;  %v7883_v29 = vld [vmem:[#allocation75_spill] sm:$0xff]  ;;  %v7884_v41 = vld [vmem:[#allocation76_spill] sm:$0xff] }
 0x28b   : > { %v7009_v31 = vadd.f32 %v3261_v50, %v6855_v49  ;;  %v7012_v59 = vadd.f32 %v3267_v44, %v6946_v28  ;;  %v3603_v21 = vunpack.c.l.b16 %v3450_v18  ;;  %v3604_v35 = vunpack.c.h.b16 %v3450_v18 }
 0x28c   : > { %3907 = vmatpush.bf16.msrb.mxu2 %v3697_v16  ;;  %3920 = vmatpush.bf16.msrb.mxu3 %v3698_v7  ;;  %v3619_v17 = vunpack.c.l.b16 %v3458_v51  ;;  %v3620_v3 = vunpack.c.h.b16 %v3458_v51  ;;  %v3140_v34 = vmax.f32 %v3094_v61, 0.0  ;;  %v3141_v15 = vmax.f32 %v3108_v54, 0.0  ;;  %v7885_v16 = vld [vmem:[#allocation79_spill] sm:$0xff]  ;;  %v7886_v7 = vld [vmem:[#allocation80_spill] sm:$0xff] }
 0x28d   : > { %v3310_v1 = vmul.f32 %v6900_v33, %v7877_v39  ;;  %v3311_v48 = vmul.f32 %v6903_v32, %v7878_v57  ;;  %v3326_v49 = vmul.f32 %v6900_v33, %v7879_v40  ;;  %v3327_v28 = vmul.f32 %v6903_v32, %v7880_v37  ;;  %v7882_v33 = vld [vmem:[#allocation74_spill] sm:$0xff]  ;;  %v7889_v37 = vld [vmem:[#allocation97_spill] sm:$0xff] }
 0x28e   : > { %v3715_v8 = vpack.c.b16 %v3619_v17, %v3603_v21  ;;  %v3716_v13 = vpack.c.b16 %v3620_v3, %v3604_v35  ;;  %v3408_v23 = vmul.f32 %v6951_v42, %v7881_v4  ;;  %v7025_v52 = vunpack.c.l.bf16 %v6955_v43  ;;  %v7887_v35 = vld [vmem:[#allocation83_spill] sm:$0xff]  ;;  %v7888_v3 = vld [vmem:[#allocation84_spill] sm:$0xff]  ;;  %v7890_v4 = vld [vmem:[#allocation98_spill] sm:$0xff] }
 0x28f   : > { %4917 = vmatmul.msk.bf16.vlgmr.msrb.gmra.mxu2 %vm1934_vm4, %v6783_v47  ;;  %4918 = vmatmul.msk.bf16.vlgmr.msrb.gmra.mxu3 %vm1934_vm4, %v6783_v47  ;;  %v3434_v5 = vpack.c.bf16 %v3311_v48, %v3310_v1  ;;  %v3442_v19 = vpack.c.bf16 %v3327_v28, %v3326_v49  ;;  %v3409_v0 = vmul.f32 %v6962_v11, %v7882_v33  ;;  %v7034_v32 = vunpack.c.h.bf16 %v6955_v43 }
 0x290   : > { %3932 = vmatpush.bf16.msra.mxu0 %v3715_v8  ;;  %3945 = vmatpush.bf16.msra.mxu1 %v3716_v13  ;;  %v7036_v36 = vpack.c.bf16 %v3141_v15, %v3140_v34  ;;  %v3424_v22 = vmul.f32 %v6951_v42, %v7883_v29  ;;  %v3425_v53 = vmul.f32 %v6962_v11, %v7884_v41  ;;  %v4436_v15 = vld [vmem:[#allocation2] sm:$0x1]  ;;  %v7892_v41 = vld [vmem:[#allocation100_spill] sm:$0xff] }
 0x291   : > { %v3571_v25 = vunpack.c.l.b16 %v3434_v5  ;;  %v3587_v45 = vunpack.c.l.b16 %v3442_v19  ;;  %v3572_v50 = vunpack.c.h.b16 %v3434_v5  ;;  %v3588_v44 = vunpack.c.h.b16 %v3442_v19  ;;  %4439 = vperm.xlu2 %4994, %v4436_v15   ;;  %v7891_v5 = vld [vmem:[#allocation99_spill] sm:$0xff]  ;;  %v7897_v15 = vld [vmem:[#allocation105_spill] sm:$0xff] }
 0x292   : > { %v3483_v18 = vpack.c.bf16 %v3409_v0, %v3408_v23  ;;  %v3491_v61 = vpack.c.bf16 %v3425_v53, %v3424_v22  ;;  %v3376_v43 = vmul.f32 %v6951_v42, %v7885_v16  ;;  %v3377_v51 = vmul.f32 %v6962_v11, %v7886_v7  ;;  %v7894_v16 = vld [vmem:[#allocation86_spill] sm:$0xff] }
 0x293   : > { %v3699_v54 = vpack.c.b16 %v3587_v45, %v3571_v25  ;;  %v3700_v21 = vpack.c.b16 %v3588_v44, %v3572_v50  ;;  %v3392_v17 = vmul.f32 %v6951_v42, %v7887_v35  ;;  %v3393_v34 = vmul.f32 %v6962_v11, %v7888_v3  ;;  %v7893_v45 = vld [vmem:[#allocation85_spill] sm:$0xff] }
 0x294   : > { %v3669_v39 = vunpack.c.l.b16 %v3483_v18  ;;  %v3685_v1 = vunpack.c.l.b16 %v3491_v61  ;;  %v3670_v57 = vunpack.c.h.b16 %v3483_v18  ;;  %v3686_v48 = vunpack.c.h.b16 %v3491_v61 }
 0x295   : > { %3933 = vmatpush.bf16.msra.mxu0 %v3699_v54  ;;  %3946 = vmatpush.bf16.msra.mxu1 %v3700_v21  ;;  %v3467_v40 = vpack.c.bf16 %v3377_v51, %v3376_v43  ;;  %v3475_v49 = vpack.c.bf16 %v3393_v34, %v3392_v17  ;;  %v3410_v28 = vmul.f32 %v7025_v52, %v7889_v37  ;;  %v7061_v44 = vunpack.c.l.bf16 %v7036_v36  ;;  %v7895_v21 = vld [vmem:[#allocation87_spill] sm:$0xff]  ;;  %v7896_v17 = vld [vmem:[#allocation88_spill] sm:$0xff] }
 0x296   : > { %v3749_v8 = vpack.c.b16 %v3685_v1, %v3669_v39  ;;  %v3750_v13 = vpack.c.b16 %v3686_v48, %v3670_v57  ;;  %v3411_v23 = vmul.f32 %v7034_v32, %v7890_v4  ;;  %v3426_v19 = vmul.f32 %v7025_v52, %v7891_v5  ;;  %v7898_v1 = vld [vmem:[#allocation106_spill] sm:$0xff] }
 0x297   : > { %v3637_v33 = vunpack.c.l.b16 %v3467_v40  ;;  %v3653_v0 = vunpack.c.l.b16 %v3475_v49  ;;  %v3638_v29 = vunpack.c.h.b16 %v3467_v40  ;;  %v3654_v22 = vunpack.c.h.b16 %v3475_v49  ;;  %v7899_v49 = vld [vmem:[#allocation107_spill] sm:$0xff] }
 0x298   : > { %3956 = vmatpush.bf16.msra.mxu2 %v3749_v8  ;;  %3969 = vmatpush.bf16.msra.mxu3 %v3750_v13  ;;  %v3427_v53 = vmul.f32 %v7034_v32, %v7892_v41  ;;  %v3484_v25 = vpack.c.bf16 %v3411_v23, %v3410_v28  ;;  %v3344_v50 = vmul.f32 %v6951_v42, %v7893_v45  ;;  %v7900_v28 = vld [vmem:[#allocation108_spill] sm:$0xff] }
 0x299   : > { %4919 = vmatmul.msk.bf16.vlgmr.msra.gmra.mxu0 %vm1934_vm4, %v6783_v47  ;;  %4920 = vmatmul.msk.bf16.vlgmr.msra.gmra.mxu1 %vm1934_vm4, %v6783_v47  ;;  %v3733_v18 = vpack.c.b16 %v3653_v0, %v3637_v33  ;;  %v3734_v61 = vpack.c.b16 %v3654_v22, %v3638_v29  ;;  %v3345_v43 = vmul.f32 %v6962_v11, %v7894_v16  ;;  %v7901_v29 = vld [vmem:[#allocation93_spill] sm:$0xff] }
 0x29a   : > { %v3492_v7 = vpack.c.bf16 %v3427_v53, %v3426_v19  ;;  %v3671_v51 = vunpack.c.l.b16 %v3484_v25  ;;  %v3672_v54 = vunpack.c.h.b16 %v3484_v25  ;;  %v3360_v35 = vmul.f32 %v6951_v42, %v7895_v21  ;;  %v7904_v21 = vld [vmem:[#allocation96_spill] sm:$0xff] }
 0x29b   : > { %v3361_v3 = vmul.f32 %v6962_v11, %v7896_v17  ;;  %v3451_v34 = vpack.c.bf16 %v3345_v43, %v3344_v50  ;;  %v3378_v39 = vmul.f32 %v7025_v52, %v7897_v15  ;;  %v3379_v57 = vmul.f32 %v7034_v32, %v7898_v1  ;;  %v7903_v43 = vld [vmem:[#allocation95_spill] sm:$0xff]  ;;  %v7905_v17 = vld [vmem:[#allocation113_spill] sm:$0xff]  ;;  %v7906_v1 = vld [vmem:[#allocation114_spill] sm:$0xff] }
 0x29c   : > { %3957 = vmatpush.bf16.msra.mxu2 %v3733_v18  ;;  %3970 = vmatpush.bf16.msra.mxu3 %v3734_v61  ;;  %v3687_v48 = vunpack.c.l.b16 %v3492_v7  ;;  %v3688_v40 = vunpack.c.h.b16 %v3492_v7  ;;  %v3394_v37 = vmul.f32 %v7025_v52, %v7899_v49  ;;  %v3395_v8 = vmul.f32 %v7034_v32, %v7900_v28  ;;  %v7902_v61 = vld [vmem:[#allocation94_spill] sm:$0xff] }
 0x29d   : > { %v3459_v13 = vpack.c.bf16 %v3361_v3, %v3360_v35  ;;  %v3605_v4 = vunpack.c.l.b16 %v3451_v34  ;;  %v3606_v23 = vunpack.c.h.b16 %v3451_v34  ;;  %v3468_v5 = vpack.c.bf16 %v3379_v57, %v3378_v39 }
 0x29e   : > { %v3751_v19 = vpack.c.b16 %v3687_v48, %v3671_v51  ;;  %v3752_v33 = vpack.c.b16 %v3688_v40, %v3672_v54  ;;  %v3476_v0 = vpack.c.bf16 %v3395_v8, %v3394_v37  ;;  %v3312_v22 = vmul.f32 %v6951_v42, %v7901_v29  ;;  %v7907_v40 = vld [vmem:[#allocation115_spill] sm:$0xff]  ;;  %v7908_v37 = vld [vmem:[#allocation116_spill] sm:$0xff] }
 0x29f   : > { %v3621_v41 = vunpack.c.l.b16 %v3459_v13  ;;  %v3622_v53 = vunpack.c.h.b16 %v3459_v13  ;;  %v3639_v25 = vunpack.c.l.b16 %v3468_v5  ;;  %v3640_v45 = vunpack.c.h.b16 %v3468_v5 }
 0x2a0   : > { %3982 = vmatpush.bf16.msrb.mxu0 %v3751_v19  ;;  %3995 = vmatpush.bf16.msrb.mxu1 %v3752_v33  ;;  %v3655_v50 = vunpack.c.l.b16 %v3476_v0  ;;  %v3656_v18 = vunpack.c.h.b16 %v3476_v0  ;;  %v3313_v16 = vmul.f32 %v6962_v11, %v7902_v61  ;;  %v3328_v7 = vmul.f32 %v6951_v42, %v7903_v43 }
 0x2a1   : > { %v3717_v51 = vpack.c.b16 %v3621_v41, %v3605_v4  ;;  %v3718_v54 = vpack.c.b16 %v3622_v53, %v3606_v23  ;;  %v3329_v35 = vmul.f32 %v6962_v11, %v7904_v21  ;;  %v3346_v3 = vmul.f32 %v7025_v52, %v7905_v17  ;;  %v7912_v21 = vld [vmem:[#allocation104_spill] sm:$0xff] }
 0x2a2   : > { %v3735_v34 = vpack.c.b16 %v3655_v50, %v3639_v25  ;;  %v3736_v15 = vpack.c.b16 %v3656_v18, %v3640_v45  ;;  %v3435_v39 = vpack.c.bf16 %v3313_v16, %v3312_v22  ;;  %v3347_v57 = vmul.f32 %v7034_v32, %v7906_v1  ;;  %v7909_v18 = vld [vmem:[#allocation101_spill] sm:$0xff]  ;;  %v7910_v16 = vld [vmem:[#allocation102_spill] sm:$0xff] }
 0x2a3   : > { %v7094_v48 = vunpack.c.h.bf16 %v7036_v36  ;;  %3958 = vmatpush.bf16.msra.mxu2 %v3717_v51  ;;  %3971 = vmatpush.bf16.msra.mxu3 %v3718_v54  ;;  %v3443_v42 = vpack.c.bf16 %v3329_v35, %v3328_v7  ;;  %v3362_v49 = vmul.f32 %v7025_v52, %v7907_v40  ;;  %v3363_v11 = vmul.f32 %v7034_v32, %v7908_v37  ;;  %v4195_v37 = vld [vmem:[#allocation6 + $0x78] sm:$0xff] }
 0x2a4   : > { %3983 = vmatpush.bf16.msrb.mxu0 %v3735_v34  ;;  %3996 = vmatpush.bf16.msrb.mxu1 %v3736_v15  ;;  %v3573_v28 = vunpack.c.l.b16 %v3435_v39  ;;  %v3574_v8 = vunpack.c.h.b16 %v3435_v39  ;;  %v3452_v13 = vpack.c.bf16 %v3347_v57, %v3346_v3  ;;  %v3314_v4 = vmul.f32 %v7025_v52, %v6232_v60  ;;  %v7913_v3 = vld [vmem:[#allocation109_spill] sm:$0xff] }
 0x2a5   : > { %v3589_v23 = vunpack.c.l.b16 %v3443_v42  ;;  %v3590_v36 = vunpack.c.h.b16 %v3443_v42  ;;  %v3460_v5 = vpack.c.bf16 %v3363_v11, %v3362_v49  ;;  %v3315_v19 = vmul.f32 %v7034_v32, %v6234_v38  ;;  %v4211_v11 = vld [vmem:[#allocation6 + $0xf8] sm:$0xff] }
 0x2a6   : > { %v3607_v33 = vunpack.c.l.b16 %v3452_v13  ;;  %v3608_v0 = vunpack.c.h.b16 %v3452_v13  ;;  %v3330_v29 = vmul.f32 %v7025_v52, %v7802_v62  ;;  %v3331_v22 = vmul.f32 %v7034_v32, %v6238_v30  ;;  %v7911_v62 = vld [vmem:[#allocation103_spill] sm:$0xff]  ;;  %v7914_v13 = vld [vmem:[#allocation117_spill] sm:$0xff] }
 0x2a7   : > { %v3701_v41 = vpack.c.b16 %v3589_v23, %v3573_v28  ;;  %v3702_v53 = vpack.c.b16 %v3590_v36, %v3574_v8  ;;  %v3623_v25 = vunpack.c.l.b16 %v3460_v5  ;;  %v3624_v45 = vunpack.c.h.b16 %v3460_v5 }
 0x2a8   : > { %v3436_v50 = vpack.c.bf16 %v3315_v19, %v3314_v4  ;;  %v3444_v60 = vpack.c.bf16 %v3331_v22, %v3330_v29  ;;  %v3412_v61 = vmul.f32 %v7061_v44, %v7909_v18  ;;  %v3413_v38 = vmul.f32 %v7094_v48, %v7910_v16  ;;  %v7915_v4 = vld [vmem:[#allocation118_spill] sm:$0xff]  ;;  %v4193_v16 = vld [vmem:[#allocation6 + $0x68] sm:$0xff] }
 0x2a9   : > { %3959 = vmatpush.bf16.msra.mxu2 %v3701_v41  ;;  %3972 = vmatpush.bf16.msra.mxu3 %v3702_v53  ;;  %v3719_v43 = vpack.c.b16 %v3623_v25, %v3607_v33  ;;  %v3720_v7 = vpack.c.b16 %v3624_v45, %v3608_v0  ;;  %v3428_v52 = vmul.f32 %v7061_v44, %v7911_v62  ;;  %v4194_v25 = vld [vmem:[#allocation6 + $0x70] sm:$0xff] }
 0x2aa   : > { %v3575_v30 = vunpack.c.l.b16 %v3436_v50  ;;  %v3591_v32 = vunpack.c.l.b16 %v3444_v60  ;;  %v3576_v51 = vunpack.c.h.b16 %v3436_v50  ;;  %v3592_v54 = vunpack.c.h.b16 %v3444_v60  ;;  %v4210_v45 = vld [vmem:[#allocation6 + $0xf0] sm:$0xff] }
 0x2ab   : > { %3984 = vmatpush.bf16.msrb.mxu0 %v3719_v43  ;;  %3997 = vmatpush.bf16.msrb.mxu1 %v3720_v7  ;;  %v3429_v35 = vmul.f32 %v7094_v48, %v7912_v21  ;;  %v3485_v17 = vpack.c.bf16 %v3413_v38, %v3412_v61  ;;  %v3380_v34 = vmul.f32 %v7061_v44, %v7913_v3  ;;  %v7916_v18 = vld [vmem:[#allocation122_spill] sm:$0xff]  ;;  %v4209_v38 = vld [vmem:[#allocation6 + $0xe8] sm:$0xff]  ;;  %v4192_v21 = vld [vmem:[#allocation6 + $0x60] sm:$0xff] }
 0x2ac   : > { %4921 = vmatmul.msk.bf16.vlgmr.msra.gmra.mxu2 %vm1934_vm4, %v6783_v47  ;;  %4922 = vmatmul.msk.bf16.vlgmr.msra.gmra.mxu3 %vm1934_vm4, %v6783_v47  ;;  %v3703_v15 = vpack.c.b16 %v3591_v32, %v3575_v30  ;;  %v3704_v39 = vpack.c.b16 %v3592_v54, %v3576_v51  ;;  %v3381_v1 = vmul.f32 %v7094_v48, %v7799_v63 }
 0x2ad   : > { %v3493_v57 = vpack.c.bf16 %v3429_v35, %v3428_v52  ;;  %v3673_v42 = vunpack.c.l.b16 %v3485_v17  ;;  %v3674_v40 = vunpack.c.h.b16 %v3485_v17  ;;  %v3396_v49 = vmul.f32 %v7061_v44, %v7800_v6  ;;  %v7917_v52 = vld [vmem:[#allocation123_spill] sm:$0xff] }
 0x2ae   : > { %v3397_v28 = vmul.f32 %v7094_v48, %v7801_v14  ;;  %v3469_v8 = vpack.c.bf16 %v3381_v1, %v3380_v34  ;;  %v3348_v47 = vmul.f32 %v7061_v44, %v7914_v13  ;;  %v3349_v23 = vmul.f32 %v7094_v48, %v7915_v4  ;;  %v4208_v35 = vld [vmem:[#allocation6 + $0xe0] sm:$0xff]  ;;  %v4227_v13 = vld [vmem:[#allocation6 + $0x178] sm:$0xff] }
 0x2af   : > { %3985 = vmatpush.bf16.msrb.mxu0 %v3703_v15  ;;  %3998 = vmatpush.bf16.msrb.mxu1 %v3704_v39  ;;  %v3689_v63 = vunpack.c.l.b16 %v3493_v57  ;;  %v3690_v36 = vunpack.c.h.b16 %v3493_v57  ;;  %v3364_v5 = vmul.f32 %v7061_v44, %v7805_v46  ;;  %v3365_v6 = vmul.f32 %v7094_v48, %v7806_v24  ;;  %v7141_v46 = vld [vmem:[%s7370_s5] sm:$0xf]  ;;  %v4190_v57 = vld [vmem:[#allocation6 + $0x50] sm:$0xff] }
 0x2b0   : > { %v3477_v19 = vpack.c.bf16 %v3397_v28, %v3396_v49  ;;  %v3641_v33 = vunpack.c.l.b16 %v3469_v8  ;;  %v3642_v14 = vunpack.c.h.b16 %v3469_v8  ;;  %v3453_v0 = vpack.c.bf16 %v3349_v23, %v3348_v47  ;;  %v4205_v49 = vld [vmem:[#allocation6 + $0xc8] sm:$0xff]  ;;  %v4188_v28 = vld [vmem:[#allocation6 + $0x40] sm:$0xff]  ;;  %v4243_v47 = vld [vmem:[#allocation6 + $0x1f8] sm:$0xff] }
 0x2b1   : > { %v3753_v29 = vpack.c.b16 %v3689_v63, %v3673_v42  ;;  %v3754_v22 = vpack.c.b16 %v3690_v36, %v3674_v40  ;;  %v3461_v41 = vpack.c.bf16 %v3365_v6, %v3364_v5  ;;  %v3316_v53 = vmul.f32 %v7061_v44, %v6250_v58  ;;  %v4206_v42 = vld [vmem:[#allocation6 + $0xd0] sm:$0xff]  ;;  %v4189_v40 = vld [vmem:[#allocation6 + $0x48] sm:$0xff]  ;;  %v4204_v8 = vld [vmem:[#allocation6 + $0xc0] sm:$0xff] }
 0x2b2   : > { %4923 = vmatmul.msk.bf16.vlgmr.msrb.gmra.mxu0 %vm1934_vm4, %v7141_v46  ;;  %4924 = vmatmul.msk.bf16.vlgmr.msrb.gmra.mxu1 %vm1934_vm4, %v7141_v46  ;;  %v3657_v24 = vunpack.c.l.b16 %v3477_v19  ;;  %v3658_v50 = vunpack.c.h.b16 %v3477_v19  ;;  %v3609_v60 = vunpack.c.l.b16 %v3453_v0  ;;  %v3317_v58 = vmul.f32 %v7094_v48, %v7916_v18  ;;  %v4187_v4 = vld [vmem:[#allocation6 + $0x38] sm:$0xff]  ;;  %v4226_v63 = vld [vmem:[#allocation6 + $0x170] sm:$0xff]  ;;  %v4225_v19 = vld [vmem:[#allocation6 + $0x168] sm:$0xff] }
 0x2b3   : > { %4443 = vmatpush.msra.mxu0 %v4195_v37  ;;  %4463 = vmatpush.msra.mxu1 %v4211_v11  ;;  %v3332_v61 = vmul.f32 %v7061_v44, %v6254_v10  ;;  %v3625_v43 = vunpack.c.l.b16 %v3461_v41  ;;  %v3610_v7 = vunpack.c.h.b16 %v3453_v0  ;;  %v3626_v62 = vunpack.c.h.b16 %v3461_v41  ;;  %v4191_v10 = vld [vmem:[#allocation6 + $0x58] sm:$0xff]  ;;  %v4242_v36 = vld [vmem:[#allocation6 + $0x1f0] sm:$0xff]  ;;  %v4201_v0 = vld [vmem:[#allocation6 + $0xa8] sm:$0xff] }
 0x2b4   : > { %4008 = vmatpush.bf16.msrb.mxu2 %v3753_v29  ;;  %4021 = vmatpush.bf16.msrb.mxu3 %v3754_v22  ;;  %v3333_v30 = vmul.f32 %v7094_v48, %v7917_v52  ;;  %v3737_v32 = vpack.c.b16 %v3657_v24, %v3641_v33  ;;  %v3738_v51 = vpack.c.b16 %v3658_v50, %v3642_v14  ;;  %v4207_v44 = vld [vmem:[#allocation6 + $0xd8] sm:$0xff]  ;;  %v4186_v5 = vld [vmem:[#allocation6 + $0x30] sm:$0xff]  ;;  %v4241_v33 = vld [vmem:[#allocation6 + $0x1e8] sm:$0xff] }
 0x2b5   : > { %4444 = vmatpush.msra.mxu0 %v4194_v25  ;;  %4464 = vmatpush.msra.mxu1 %v4210_v45  ;;  %v3437_v54 = vpack.c.bf16 %v3317_v58, %v3316_v53  ;;  %v3721_v3 = vpack.c.b16 %v3625_v43, %v3609_v60  ;;  %v3722_v34 = vpack.c.b16 %v3626_v62, %v3610_v7  ;;  %v4203_v23 = vld [vmem:[#allocation6 + $0xb8] sm:$0xff]  ;;  %v4202_v6 = vld [vmem:[#allocation6 + $0xb0] sm:$0xff]  ;;  %v4185_v14 = vld [vmem:[#allocation6 + $0x28] sm:$0xff] }
 0x2b6   : > { %v3445_v17 = vpack.c.bf16 %v3333_v30, %v3332_v61  ;;  %v4224_v41 = vld [vmem:[#allocation6 + $0x160] sm:$0xff]  ;;  %v4239_v24 = vld [vmem:[#allocation6 + $0x1d8] sm:$0xff]  ;;  %v4222_v18 = vld [vmem:[#allocation6 + $0x150] sm:$0xff] }
 0x2b7   : > { %4445 = vmatpush.msra.mxu0 %v4193_v16  ;;  %4465 = vmatpush.msra.mxu1 %v4209_v38  ;;  %v3577_v15 = vunpack.c.l.b16 %v3437_v54  ;;  %v3578_v39 = vunpack.c.h.b16 %v3437_v54  ;;  %v4240_v53 = vld [vmem:[#allocation6 + $0x1e0] sm:$0xff]  ;;  %v4183_v50 = vld [vmem:[#allocation6 + $0x18] sm:$0xff]  ;;  %v4238_v58 = vld [vmem:[#allocation6 + $0x1d0] sm:$0xff] }
 0x2b8   : > { %4009 = vmatpush.bf16.msrb.mxu2 %v3737_v32  ;;  %4022 = vmatpush.bf16.msrb.mxu3 %v3738_v51  ;;  %v3593_v48 = vunpack.c.l.b16 %v3445_v17  ;;  %v3594_v1 = vunpack.c.h.b16 %v3445_v17  ;;  %v4184_v25 = vld [vmem:[#allocation6 + $0x20] sm:$0xff]  ;;  %v4199_v60 = vld [vmem:[#allocation6 + $0x98] sm:$0xff]  ;;  %v4182_v43 = vld [vmem:[#allocation6 + $0x10] sm:$0xff] }
 0x2b9   : > { %4446 = vmatpush.msra.mxu0 %v4192_v21  ;;  %4466 = vmatpush.msra.mxu1 %v4208_v35  ;;  %v4200_v45 = vld [vmem:[#allocation6 + $0xa0] sm:$0xff]  ;;  %v4198_v7 = vld [vmem:[#allocation6 + $0x90] sm:$0xff]  ;;  %v4221_v51 = vld [vmem:[#allocation6 + $0x148] sm:$0xff] }
 0x2ba   : > { %v3705_v37 = vpack.c.b16 %v3593_v48, %v3577_v15  ;;  %v3706_v11 = vpack.c.b16 %v3594_v1, %v3578_v39  ;;  %v7918_v61 = vld [vmem:[#allocation111_spill] sm:$0xff]  ;;  %v7919_v16 = vld [vmem:[#allocation124_spill] sm:$0xff]  ;;  %v7920_v62 = vld [vmem:[#allocation57_spill] sm:$0xff] }
 0x2bb   : > { %4447 = vmatpush.msra.mxu0 %v4191_v10  ;;  %4467 = vmatpush.msra.mxu1 %v4207_v44  ;;  %v1948_v38 = vadd.f32 %v7919_v16, %v7918_v61  ;;  %v2896_v52 = vadd.f32 %v7920_v62, %v6771_v9  ;;  %v7921_v30 = vld [vmem:[#allocation62_spill] sm:$0xff]  ;;  %v4237_v54 = vld [vmem:[#allocation6 + $0x1c8] sm:$0xff]  ;;  %v4236_v15 = vld [vmem:[#allocation6 + $0x1c0] sm:$0xff] }
 0x2bc   : > { %4010 = vmatpush.bf16.msrb.mxu2 %v3721_v3  ;;  %4023 = vmatpush.bf16.msrb.mxu3 %v3722_v34  ;;  %v7159_v22 = vpop.f32.mrf.mxu1  ;;  %v2910_v32 = vadd.f32 %v7921_v30, %v6771_v9  ;;  %v4181_v21 = vld [vmem:[#allocation6 + $0x8] sm:$0xff]  ;;  %v4220_v34 = vld [vmem:[#allocation6 + $0x140] sm:$0xff] }
 0x2bd   : > { %4448 = vmatpush.msra.mxu0 %v4190_v57  ;;  %4468 = vmatpush.msra.mxu1 %v4206_v42  ;;  %v7157_v29 = vpop.f32.mrf.mxu0  ;;  %v4197_v35 = vld [vmem:[#allocation6 + $0x88] sm:$0xff]  ;;  %v2162_v48 = vmax.f32 %v1948_v38, 0.0  ;;  %v4180_v39 = vld [vmem:[#allocation6] sm:$0xff] }
 0x2be   : > { %v7922_v44 = vld [vmem:[#allocation125_spill] sm:$0xff]  ;;  %v4196_v1 = vld [vmem:[#allocation6 + $0x80] sm:$0xff] }
 0x2bf   : > { %4449 = vmatpush.msra.mxu0 %v4189_v40  ;;  %4469 = vmatpush.msra.mxu1 %v4205_v49  ;;  %v1962_v3 = vadd.f32 %v7922_v44, %v7918_v61  ;;  %v7923_v57 = vld [vmem:[#allocation128_spill] sm:$0xff]  ;;  %v3110_v40 = vmax.f32 %v2896_v52, 0.0  ;;  %v3111_v49 = vmax.f32 %v2910_v32, 0.0  ;;  %v7928_v38 = vld [vmem:[#allocation121_spill] sm:$0xff]  ;;  %v4271_v44 = vld [vmem:[#allocation6 + $0x2d8] sm:$0xff] }
 0x2c0   : > { %4011 = vmatpush.bf16.msrb.mxu2 %v3705_v37  ;;  %4024 = vmatpush.bf16.msrb.mxu3 %v3706_v11  ;;  %v2004_v42 = vadd.f32 %v7923_v57, %v7918_v61  ;;  %v4259_v37 = vld [vmem:[#allocation6 + $0x278] sm:$0xff]  ;;  %v4272_v62 = vld [vmem:[#allocation6 + $0x2e0] sm:$0xff]  ;;  %v7929_v52 = vld [vmem:[#allocation129_spill] sm:$0xff] }
 0x2c1   : > { %4450 = vmatpush.msra.mxu0 %v4188_v28  ;;  %4470 = vmatpush.msra.mxu1 %v4204_v8  ;;  %v4275_v11 = vld [vmem:[#allocation6 + $0x2f8] sm:$0xff]  ;;  %v2018_v30 = vadd.f32 %v7929_v52, %v7918_v61 }
 0x2c2   : > { %v7924_v28 = vld [vmem:[#allocation126_spill] sm:$0xff] }
 0x2c3   : > { %4925 = vmatmul.msk.bf16.vlgmr.msrb.gmra.mxu2 %vm1934_vm4, %v7141_v46  ;;  %4926 = vmatmul.msk.bf16.vlgmr.msrb.gmra.mxu3 %vm1934_vm4, %v7141_v46  ;;  %v4223_v46 = vld [vmem:[#allocation6 + $0x158] sm:$0xff]  ;;  %v1976_v8 = vadd.f32 %v7924_v28, %v7918_v61 }
 0x2c4   : > { %4483 = vmatpush.msra.mxu2 %v4227_v13  ;;  %4503 = vmatpush.msra.mxu3 %v4243_v47  ;;  %v3846_v10 = vpop.f32.mrf.mxu1  ;;  %v7925_v13 = vld [vmem:[#allocation127_spill] sm:$0xff] }
 0x2c5   : > { %4451 = vmatpush.msra.mxu0 %v4187_v4  ;;  %4471 = vmatpush.msra.mxu1 %v4203_v23  ;;  %v3833_v17 = vpop.f32.mrf.mxu0  ;;  %v1990_v47 = vadd.f32 %v7925_v13, %v7918_v61  ;;  %v4219_v4 = vld [vmem:[#allocation6 + $0x138] sm:$0xff] }
 0x2c6   : > { %4484 = vmatpush.msra.mxu2 %v4226_v63  ;;  %4504 = vmatpush.msra.mxu3 %v4242_v36  ;;  %v4235_v23 = vld [vmem:[#allocation6 + $0x1b8] sm:$0xff]  ;;  %v2163_v63 = vmax.f32 %v1962_v3, 0.0  ;;  %v4258_v36 = vld [vmem:[#allocation6 + $0x270] sm:$0xff] }
 0x2c7   : > { %4452 = vmatpush.msra.mxu0 %v4186_v5  ;;  %4472 = vmatpush.msra.mxu1 %v4202_v6  ;;  %v4274_v5 = vld [vmem:[#allocation6 + $0x2f0] sm:$0xff]  ;;  %v7926_v6 = vld [vmem:[#allocation119_spill] sm:$0xff] }
 0x2c8   : > { %4485 = vmatpush.msra.mxu2 %v4225_v19  ;;  %4505 = vmatpush.msra.mxu3 %v4241_v33  ;;  %v2208_v19 = vmul.f32 %v7926_v6, %v2162_v48  ;;  %v4218_v33 = vld [vmem:[#allocation6 + $0x130] sm:$0xff]  ;;  %v4255_v10 = vld [vmem:[#allocation6 + $0x258] sm:$0xff] }
 0x2c9   : > { %4453 = vmatpush.msra.mxu0 %v4185_v14  ;;  %4473 = vmatpush.msra.mxu1 %v4201_v0  ;;  %v4234_v14 = vld [vmem:[#allocation6 + $0x1b0] sm:$0xff]  ;;  %v2166_v0 = vmax.f32 %v2004_v42, 0.0  ;;  %v4231_v48 = vld [vmem:[#allocation6 + $0x198] sm:$0xff]  ;;  %v7930_v42 = vld [vmem:[#allocation120_spill] sm:$0xff] }
 0x2ca   : > { %4486 = vmatpush.msra.mxu2 %v4224_v41  ;;  %4506 = vmatpush.msra.mxu3 %v4240_v53  ;;  %v3156_v41 = vmul.f32 %v6791_v55, %v3110_v40  ;;  %v3157_v53 = vmul.f32 %v6791_v55, %v3111_v49  ;;  %v2224_v32 = vrot.slane %v2208_v19, 4  ;;  %v2952_v40 = vadd.f32 %v7930_v42, %v6771_v9  ;;  %v4254_v49 = vld [vmem:[#allocation6 + $0x250] sm:$0xff] }
 0x2cb   : > { %4454 = vmatpush.msra.mxu0 %v4184_v25  ;;  %4474 = vmatpush.msra.mxu1 %v4200_v45  ;;  %v4257_v25 = vld [vmem:[#allocation6 + $0x268] sm:$0xff]  ;;  %v4266_v42 = vld [vmem:[#allocation6 + $0x2b0] sm:$0xff] }
 0x2cc   : > { %4487 = vmatpush.msra.mxu2 %v4223_v46  ;;  %4507 = vmatpush.msra.mxu3 %v4239_v24  ;;  %v4273_v45 = vld [vmem:[#allocation6 + $0x2e8] sm:$0xff]  ;;  %v2164_v46 = vmax.f32 %v1976_v8, 0.0  ;;  %v2165_v24 = vmax.f32 %v1990_v47, 0.0  ;;  %v3178_v17 = vrot.slane %v3157_v53, 4  ;;  %v2225_v28 = vadd.f32 %v2224_v32, %v2208_v19  ;;  %v7931_v8 = vld [vmem:[#allocation110_spill] sm:$0xff] }
 0x2cd   : > { %4455 = vmatpush.msra.mxu0 %v4183_v50  ;;  %4475 = vmatpush.msra.mxu1 %v4199_v60  ;;  %v4217_v50 = vld [vmem:[#allocation6 + $0x128] sm:$0xff]  ;;  %v7192_v13 = vadd.f32 %v7157_v29, %v7931_v8  ;;  %v7196_v47 = vadd.f32 %v7159_v22, %v7931_v8 }
 0x2ce   : > { %4488 = vmatpush.msra.mxu2 %v4222_v18  ;;  %4508 = vmatpush.msra.mxu3 %v4238_v58  ;;  %v4233_v60 = vld [vmem:[#allocation6 + $0x1a8] sm:$0xff]  ;;  %v2209_v18 = vmul.f32 %v7926_v6, %v2163_v63  ;;  %v2210_v3 = vmul.f32 %v7926_v6, %v2164_v46 }
 0x2cf   : > { %4456 = vmatpush.msra.mxu0 %v4182_v43  ;;  %4476 = vmatpush.msra.mxu1 %v4198_v7  ;;  %v7927_v58 = vld [vmem:[#allocation112_spill] sm:$0xff]  ;;  %v2938_v43 = vadd.f32 %v7928_v38, %v6771_v9  ;;  %v4030_v38 = vmax.f32 %v7192_v13, 0.0 }
 0x2d0   : > { %4489 = vmatpush.msra.mxu2 %v4221_v51  ;;  %4509 = vmatpush.msra.mxu3 %v4237_v54  ;;  %v2924_v16 = vadd.f32 %v7927_v58, %v6771_v9  ;;  %v4256_v7 = vld [vmem:[#allocation6 + $0x260] sm:$0xff]  ;;  %v4253_v19 = vld [vmem:[#allocation6 + $0x248] sm:$0xff] }
 0x2d1   : > { %4457 = vmatpush.msra.mxu0 %v4181_v21  ;;  %4477 = vmatpush.msra.mxu1 %v4197_v35  ;;  %v4216_v51 = vld [vmem:[#allocation6 + $0x120] sm:$0xff]  ;;  %v2212_v21 = vmul.f32 %v7926_v6, %v2166_v0  ;;  %v3172_v35 = vrot.slane %v3156_v41, 4  ;;  %v3113_v57 = vmax.f32 %v2938_v43, 0.0  ;;  %v4269_v0 = vld [vmem:[#allocation6 + $0x2c8] sm:$0xff] }
 0x2d2   : > { %4490 = vmatpush.msra.mxu2 %v4220_v34  ;;  %4510 = vmatpush.msra.mxu3 %v4236_v15  ;;  %v4232_v54 = vld [vmem:[#allocation6 + $0x1a0] sm:$0xff]  ;;  %v2211_v34 = vmul.f32 %v7926_v6, %v2165_v24  ;;  %v4215_v15 = vld [vmem:[#allocation6 + $0x118] sm:$0xff]  ;;  %v4213_v29 = vld [vmem:[#allocation6 + $0x108] sm:$0xff] }
 0x2d3   : > { %4458 = vmatpush.msra.mxu0 %v4180_v39  ;;  %4478 = vmatpush.msra.mxu1 %v4196_v1  ;;  %v2230_v39 = vrot.slane %v2209_v18, 4  ;;  %v3112_v1 = vmax.f32 %v2924_v16, 0.0  ;;  %v2248_v63 = vrot.slane %v2212_v21, 4  ;;  %v4229_v46 = vld [vmem:[#allocation6 + $0x188] sm:$0xff]  ;;  %v2226_v16 = vrot.slane %v2225_v28, 2  ;;  %v4212_v43 = vld [vmem:[#allocation6 + $0x100] sm:$0xff] }
 0x2d4   : > { %4491 = vmatpush.msra.mxu2 %v4219_v4  ;;  %4511 = vmatpush.msra.mxu3 %v4235_v23  ;;  %v4214_v4 = vld [vmem:[#allocation6 + $0x110] sm:$0xff] }
 0x2d5   : > { %4523 = vmatpush.msrb.mxu0 %v4259_v37  ;;  %4543 = vmatpush.msrb.mxu1 %v4275_v11  ;;  %v4270_v37 = vld [vmem:[#allocation6 + $0x2d0] sm:$0xff]  ;;  %v2167_v11 = vmax.f32 %v2018_v30, 0.0  ;;  %v7200_v22 = vadd.f32 %v2230_v39, %v2209_v18  ;;  %v7203_v24 = vmul.f32 %v6791_v55, %v3112_v1  ;;  %v4031_v18 = vmax.f32 %v7196_v47, 0.0 }
 0x2d6   : > { %4492 = vmatpush.msra.mxu2 %v4218_v33  ;;  %4512 = vmatpush.msra.mxu3 %v4234_v14  ;;  %v4230_v23 = vld [vmem:[#allocation6 + $0x190] sm:$0xff]  ;;  %v7932_v33 = vld [vmem:[#allocation131_spill] sm:$0xff] }
 0x2d7   : > { %4524 = vmatpush.msrb.mxu0 %v4258_v36  ;;  %4544 = vmatpush.msrb.mxu1 %v4274_v5  ;;  %v3173_v36 = vadd.f32 %v3172_v35, %v3156_v41  ;;  %v3179_v5 = vadd.f32 %v3178_v17, %v3157_v53  ;;  %v2966_v14 = vadd.f32 %v7932_v33, %v6771_v9  ;;  %v3114_v53 = vmax.f32 %v2952_v40, 0.0  ;;  %v4267_v35 = vld [vmem:[#allocation6 + $0x2b8] sm:$0xff]  ;;  %v4290_v40 = vld [vmem:[#allocation6 + $0x370] sm:$0xff]  ;;  %v4265_v33 = vld [vmem:[#allocation6 + $0x2a8] sm:$0xff] }
 0x2d8   : > { %4493 = vmatpush.msra.mxu2 %v4217_v50  ;;  %4513 = vmatpush.msra.mxu3 %v4233_v60  ;;  %v7206_v41 = vmul.f32 %v6791_v55, %v3113_v57  ;;  %v4252_v50 = vld [vmem:[#allocation6 + $0x240] sm:$0xff]  ;;  %v7209_v58 = vmul.f32 %v7926_v6, %v2167_v11  ;;  %v4250_v57 = vld [vmem:[#allocation6 + $0x230] sm:$0xff] }
 0x2d9   : > { %4525 = vmatpush.msrb.mxu0 %v4257_v25  ;;  %4545 = vmatpush.msrb.mxu1 %v4273_v45  ;;  %v2236_v25 = vrot.slane %v2210_v3, 4  ;;  %v2242_v45 = vrot.slane %v2211_v34, 4  ;;  %v4268_v60 = vld [vmem:[#allocation6 + $0x2c0] sm:$0xff]  ;;  %v3174_v52 = vrot.slane %v3173_v36, 2  ;;  %v3180_v30 = vrot.slane %v3179_v5, 2 }
 0x2da   : > { %4494 = vmatpush.msra.mxu2 %v4216_v51  ;;  %4514 = vmatpush.msra.mxu3 %v4232_v54  ;;  %v3115_v32 = vmax.f32 %v2966_v14, 0.0  ;;  %v7215_v51 = vpop.permute.xlu1 %4049  ;;  %v4251_v54 = vld [vmem:[#allocation6 + $0x238] sm:$0xff]  ;;  %v3190_v39 = vrot.slane %v7206_v41, 4  ;;  %v7221_v1 = vmul.f32 %v6791_v55, %v3114_v53  ;;  %v4248_v53 = vld [vmem:[#allocation6 + $0x220] sm:$0xff] }
 0x2db   : > { %4526 = vmatpush.msrb.mxu0 %v4256_v7  ;;  %4546 = vmatpush.msrb.mxu1 %v4272_v62  ;;  %v4228_v7 = vld [vmem:[#allocation6 + $0x180] sm:$0xff]  ;;  %v7213_v62 = vadd.f32 %v2248_v63, %v2212_v21  ;;  %v2237_v17 = vadd.f32 %v2236_v25, %v2210_v3  ;;  %v3184_v21 = vrot.slane %v7203_v24, 4  ;;  %v2254_v3 = vrot.slane %v7209_v58, 4  ;;  %v4249_v63 = vld [vmem:[#allocation6 + $0x228] sm:$0xff] }
 0x2dc   : > { %4495 = vmatpush.msra.mxu2 %v4215_v15  ;;  %4515 = vmatpush.msra.mxu3 %v4231_v48  ;;  %v4307_v15 = vld [vmem:[#allocation6 + $0x3f8] sm:$0xff]  ;;  %v2232_v48 = vrot.slane %v7200_v22, 2  ;;  %v4053_v11 = vmul.f32 %v7215_v51, %v4031_v18  ;;  %v3175_v47 = vadd.f32 %v3174_v52, %v3173_v36 }
 0x2dd   : > { %4527 = vmatpush.msrb.mxu0 %v4255_v10  ;;  %4547 = vmatpush.msrb.mxu1 %v4271_v44  ;;  %v2243_v10 = vadd.f32 %v2242_v45, %v2211_v34  ;;  %v4291_v44 = vld [vmem:[#allocation6 + $0x378] sm:$0xff]  ;;  %v7224_v34 = vadd.f32 %v2226_v16, %v2225_v28  ;;  %v2250_v13 = vrot.slane %v7213_v62, 2  ;;  %v2238_v28 = vrot.slane %v2237_v17, 2 }
 0x2de   : > { %4496 = vmatpush.msra.mxu2 %v4214_v4  ;;  %4516 = vmatpush.msra.mxu3 %v4230_v23  ;;  %v3181_v4 = vadd.f32 %v3180_v30, %v3179_v5  ;;  %v3161_v23 = vmul.f32 %v6791_v55, %v3115_v32  ;;  %v4074_v45 = vrot.slane %v4053_v11, 4  ;;  %v7234_v36 = vadd.f32 %v3184_v21, %v7203_v24  ;;  %v4247_v30 = vld [vmem:[#allocation6 + $0x218] sm:$0xff] }
 0x2df   : > { %4528 = vmatpush.msrb.mxu0 %v4254_v49  ;;  %4548 = vmatpush.msrb.mxu1 %v4270_v37  ;;  %v4306_v49 = vld [vmem:[#allocation6 + $0x3f0] sm:$0xff]  ;;  %v4052_v37 = vmul.f32 %v7215_v51, %v4030_v38  ;;  %v2244_v14 = vrot.slane %v2243_v10, 2  ;;  %v7237_v5 = vadd.f32 %v3190_v39, %v7206_v41  ;;  %v2228_v16 = vrot.slane %v7224_v34, 1  ;;  %v4304_v38 = vld [vmem:[#allocation6 + $0x3e0] sm:$0xff]  ;;  %v4263_v32 = vld [vmem:[#allocation6 + $0x298] sm:$0xff] }
 0x2e0   : > { %4497 = vmatpush.msra.mxu2 %v4213_v29  ;;  %4517 = vmatpush.msra.mxu3 %v4229_v46  ;;  %v7231_v29 = vadd.f32 %v2232_v48, %v7200_v22  ;;  %v3196_v46 = vrot.slane %v7221_v1, 4  ;;  %v4288_v22 = vld [vmem:[#allocation6 + $0x360] sm:$0xff]  ;;  %v4075_v18 = vadd.f32 %v4074_v45, %v4053_v11  ;;  %v7245_v41 = vadd.f32 %v2250_v13, %v7213_v62 }
 0x2e1   : > { %4529 = vmatpush.msrb.mxu0 %v4253_v19  ;;  %4549 = vmatpush.msrb.mxu1 %v4269_v0  ;;  %v4289_v19 = vld [vmem:[#allocation6 + $0x368] sm:$0xff]  ;;  %v4068_v25 = vrot.slane %v4052_v37, 4  ;;  %v3202_v52 = vrot.slane %v3161_v23, 4  ;;  %v3186_v21 = vrot.slane %v7234_v36, 2  ;;  %v3192_v39 = vrot.slane %v7237_v5, 2 }
 0x2e2   : > { %4498 = vmatpush.msra.mxu2 %v4212_v43  ;;  %4518 = vmatpush.msra.mxu3 %v4228_v7  ;;  %v4305_v0 = vld [vmem:[#allocation6 + $0x3e8] sm:$0xff]  ;;  %v3176_v43 = vrot.slane %v3175_v47, 1  ;;  %v3182_v7 = vrot.slane %v3181_v4, 1  ;;  %v4076_v48 = vrot.slane %v4075_v18, 2  ;;  %v2234_v62 = vrot.slane %v7231_v29, 1 }
 0x2e3   : > { %4530 = vmatpush.msrb.mxu0 %v4252_v50  ;;  %4550 = vmatpush.msrb.mxu1 %v4268_v60  ;;  %v4264_v50 = vld [vmem:[#allocation6 + $0x2a0] sm:$0xff]  ;;  %v7241_v60 = vadd.f32 %v2254_v3, %v7209_v58  ;;  %v4069_v24 = vadd.f32 %v4068_v25, %v4052_v37  ;;  %v7247_v58 = vadd.f32 %v2238_v28, %v2237_v17  ;;  %v4246_v17 = vld [vmem:[#allocation6 + $0x210] sm:$0xff]  ;;  %v4301_v25 = vld [vmem:[#allocation6 + $0x3c8] sm:$0xff] }
 0x2e4   : > { %4563 = vmatpush.msrb.mxu2 %v4291_v44  ;;  %4583 = vmatpush.msrb.mxu3 %v4307_v15  ;;  %v4303_v44 = vld [vmem:[#allocation6 + $0x3d8] sm:$0xff]  ;;  %v4286_v3 = vld [vmem:[#allocation6 + $0x350] sm:$0xff]  ;;  %v4077_v37 = vadd.f32 %v4076_v48, %v4075_v18  ;;  %v3177_v11 = vadd.f32 %v3176_v43, %v3175_v47  ;;  %v3183_v13 = vadd.f32 %v3182_v7, %v3181_v4  ;;  %v4300_v7 = vld [vmem:[#allocation6 + $0x3c0] sm:$0xff] }
 0x2e5   : > { %4531 = vmatpush.msrb.mxu0 %v4251_v54  ;;  %4551 = vmatpush.msrb.mxu1 %v4267_v35  ;;  %v7249_v54 = vadd.f32 %v2244_v14, %v2243_v10  ;;  %v4287_v35 = vld [vmem:[#allocation6 + $0x358] sm:$0xff]  ;;  %v4070_v15 = vrot.slane %v4069_v24, 2  ;;  %v2229_v10 = vadd.f32 %v2228_v16, %v7224_v34  ;;  %v4261_v14 = vld [vmem:[#allocation6 + $0x288] sm:$0xff]  ;;  %v2235_v47 = vadd.f32 %v2234_v62, %v7231_v29  ;;  %v4244_v16 = vld [vmem:[#allocation6 + $0x200] sm:$0xff] }
 0x2e6   : > { %4564 = vmatpush.msrb.mxu2 %v4290_v40  ;;  %4584 = vmatpush.msrb.mxu3 %v4306_v49  ;;  %v4302_v40 = vld [vmem:[#allocation6 + $0x3d0] sm:$0xff]  ;;  %v7260_v4 = vadd.f32 %v3186_v21, %v7234_v36  ;;  %v4284_v29 = vld [vmem:[#allocation6 + $0x340] sm:$0xff]  ;;  %v2256_v62 = vrot.slane %v7241_v60, 2 }
 0x2e7   : > { %4532 = vmatpush.msrb.mxu0 %v4250_v57  ;;  %4552 = vmatpush.msrb.mxu1 %v4266_v42  ;;  %v3197_v57 = vadd.f32 %v3196_v46, %v7221_v1  ;;  %v4262_v42 = vld [vmem:[#allocation6 + $0x290] sm:$0xff]  ;;  %v4071_v49 = vadd.f32 %v4070_v15, %v4069_v24  ;;  %v3870_v28 = vpop.f32.mrf.mxu3  ;;  %v4245_v1 = vld [vmem:[#allocation6 + $0x208] sm:$0xff]  ;;  %v4078_v46 = vrot.slane %v4077_v37, 1  ;;  %v3268_v36 = vadd.f32 %v3177_v11, %v2229_v10  ;;  %v4339_v10 = vld [vmem:[#allocation6 + $0x4f8] sm:$0xff] }
 0x2e8   : > { %4565 = vmatpush.msrb.mxu2 %v4289_v19  ;;  %4585 = vmatpush.msrb.mxu3 %v4305_v0  ;;  %v3871_v34 = vadd.f32 %v3870_v28, %v7931_v8  ;;  %v4285_v0 = vld [vmem:[#allocation6 + $0x348] sm:$0xff]  ;;  %v4283_v11 = vld [vmem:[#allocation6 + $0x338] sm:$0xff]  ;;  %v3188_v28 = vrot.slane %v7260_v4, 1 }
 0x2e9   : > { %4533 = vmatpush.msrb.mxu0 %v4249_v63  ;;  %4553 = vmatpush.msrb.mxu1 %v4265_v33  ;;  %v3203_v63 = vadd.f32 %v3202_v52, %v3161_v23  ;;  %v3857_v33 = vpop.f32.mrf.mxu2  ;;  %v4072_v45 = vrot.slane %v4071_v49, 1  ;;  %v7263_v23 = vadd.f32 %v3192_v39, %v7237_v5  ;;  %v3269_v52 = vadd.f32 %v3183_v13, %v2235_v47  ;;  %v3896_v5 = vpop.f32.mrf.mxu1  ;;  %v4299_v13 = vld [vmem:[#allocation6 + $0x3b8] sm:$0xff] }
 0x2ea   : > { %4566 = vmatpush.msrb.mxu2 %v4288_v22  ;;  %4586 = vmatpush.msrb.mxu3 %v4304_v38  ;;  %v3858_v19 = vadd.f32 %v3857_v33, %v7931_v8  ;;  %v4260_v22 = vld [vmem:[#allocation6 + $0x280] sm:$0xff]  ;;  %v4033_v18 = vmax.f32 %v3871_v34, 0.0  ;;  %v2252_v33 = vrot.slane %v7245_v41, 1 }
 0x2eb   : > { %4534 = vmatpush.msrb.mxu0 %v4248_v53  ;;  %4554 = vmatpush.msrb.mxu1 %v4264_v50  ;;  %v3198_v53 = vrot.slane %v3197_v57, 2  ;;  %v3883_v50 = vpop.f32.mrf.mxu0  ;;  %v4073_v43 = vadd.f32 %v4072_v45, %v4071_v49 }
 0x2ec   : > { %4567 = vmatpush.msrb.mxu2 %v4287_v35  ;;  %4587 = vmatpush.msrb.mxu3 %v4303_v44  ;;  %v3884_v38 = vadd.f32 %v3883_v50, %v7931_v8  ;;  %v4032_v24 = vmax.f32 %v3858_v19, 0.0  ;;  %v3897_v44 = vadd.f32 %v3896_v5, %v7931_v8  ;;  %v4055_v48 = vmul.f32 %v7215_v51, %v4033_v18  ;;  %v4338_v19 = vld [vmem:[#allocation6 + $0x4f0] sm:$0xff]  ;;  %v4321_v18 = vld [vmem:[#allocation6 + $0x468] sm:$0xff] }
 0x2ed   : > { %4535 = vmatpush.msrb.mxu0 %v4247_v30  ;;  %4555 = vmatpush.msrb.mxu1 %v4263_v32  ;;  %v3204_v30 = vrot.slane %v3203_v63, 2  ;;  %v4079_v32 = vadd.f32 %v4078_v46, %v4077_v37  ;;  %v7270_v21 = vadd.f32 %v3198_v53, %v3197_v57  ;;  %v4164_v39 = vadd.f32 %v4073_v43, %v3268_v36  ;;  %v4282_v53 = vld [vmem:[#allocation6 + $0x330] sm:$0xff]  ;;  %v4337_v43 = vld [vmem:[#allocation6 + $0x4e8] sm:$0xff] }
 0x2ee   : > { %4568 = vmatpush.msrb.mxu2 %v4286_v3  ;;  %4588 = vmatpush.msrb.mxu3 %v4302_v40  ;;  %v4034_v35 = vmax.f32 %v3884_v38, 0.0  ;;  %v4054_v15 = vmul.f32 %v7215_v51, %v4032_v24  ;;  %v4035_v40 = vmax.f32 %v3897_v44, 0.0  ;;  %v4086_v37 = vrot.slane %v4055_v48, 4  ;;  %v4298_v50 = vld [vmem:[#allocation6 + $0x3b0] sm:$0xff]  ;;  %v4297_v5 = vld [vmem:[#allocation6 + $0x3a8] sm:$0xff] }
 0x2ef   : > { %4536 = vmatpush.msrb.mxu0 %v4246_v17  ;;  %4556 = vmatpush.msrb.mxu1 %v4262_v42  ;;  %v4165_v17 = vadd.f32 %v4079_v32, %v3269_v52  ;;  %v4323_v42 = vld [vmem:[#allocation6 + $0x478] sm:$0xff]  ;;  %v3194_v57 = vrot.slane %v7263_v23, 1  ;;  %v3200_v38 = vrot.slane %v7270_v21, 1  ;;  %v3189_v32 = vadd.f32 %v3188_v28, %v7260_v4 }
 0x2f0   : > { %4569 = vmatpush.msrb.mxu2 %v4285_v0  ;;  %4589 = vmatpush.msrb.mxu3 %v4301_v25  ;;  %v4056_v3 = vmul.f32 %v7215_v51, %v4034_v35  ;;  %v4080_v49 = vrot.slane %v4054_v15, 4  ;;  %v3872_v0 = vpop.f32.mrf.mxu3  ;;  %v4057_v45 = vmul.f32 %v7215_v51, %v4035_v40  ;;  %v4087_v47 = vadd.f32 %v4086_v37, %v4055_v48  ;;  %v4320_v48 = vld [vmem:[#allocation6 + $0x460] sm:$0xff]  ;;  %v4319_v37 = vld [vmem:[#allocation6 + $0x458] sm:$0xff] }
 0x2f1   : > { %4537 = vmatpush.msrb.mxu0 %v4245_v1  ;;  %4557 = vmatpush.msrb.mxu1 %v4261_v14  ;;  %v7276_v1 = vadd.f32 %v3204_v30, %v3203_v63  ;;  %v4322_v14 = vld [vmem:[#allocation6 + $0x470] sm:$0xff]  ;;  %v3859_v34 = vpop.f32.mrf.mxu2  ;;  %v2240_v63 = vrot.slane %v7247_v58, 1  ;;  %v4281_v30 = vld [vmem:[#allocation6 + $0x328] sm:$0xff]  ;;  %v3195_v35 = vadd.f32 %v3194_v57, %v7263_v23  ;;  %v4296_v40 = vld [vmem:[#allocation6 + $0x3a0] sm:$0xff] }
 0x2f2   : > { %4570 = vmatpush.msrb.mxu2 %v4284_v29  ;;  %4590 = vmatpush.msrb.mxu3 %v4300_v7  ;;  %v4092_v25 = vrot.slane %v4056_v3, 4  ;;  %v4081_v46 = vadd.f32 %v4080_v49, %v4054_v15  ;;  %v4098_v7 = vrot.slane %v4057_v45, 4  ;;  %v4088_v52 = vrot.slane %v4087_v47, 2  ;;  %v3898_v15 = vpop.f32.mrf.mxu1 }
 0x2f3   : > { %4538 = vmatpush.msrb.mxu0 %v4244_v16  ;;  %4558 = vmatpush.msrb.mxu1 %v4260_v22  ;;  %v2257_v16 = vadd.f32 %v2256_v62, %v7241_v60  ;;  %v2246_v22 = vrot.slane %v7249_v54, 1  ;;  %v3885_v24 = vpop.f32.mrf.mxu0  ;;  %v2253_v60 = vadd.f32 %v2252_v33, %v7245_v41  ;;  %v3206_v44 = vrot.slane %v7276_v1, 1  ;;  %v4336_v62 = vld [vmem:[#allocation6 + $0x4e0] sm:$0xff] }
 0x2f4   : > { %4459 = vmatmul.f32.vlgmr.msra.gmra.mxu0 %v4164_v39  ;;  %4479 = vmatmul.f32.vlgmr.msra.gmra.mxu1 %v4165_v17  ;;  %v4093_v29 = vadd.f32 %v4092_v25, %v4056_v3  ;;  %v4082_v36 = vrot.slane %v4081_v46, 2  ;;  %v4099_v17 = vadd.f32 %v4098_v7, %v4057_v45  ;;  %v4280_v3 = vld [vmem:[#allocation6 + $0x320] sm:$0xff]  ;;  %v2241_v4 = vadd.f32 %v2240_v63, %v7247_v58  ;;  %v4318_v58 = vld [vmem:[#allocation6 + $0x450] sm:$0xff] }
 0x2f5   : > { %4603 = vmatpush.msra.mxu0 %v4323_v42  ;;  %4623 = vmatpush.msra.mxu1 %v4339_v10  ;;  %v4089_v10 = vadd.f32 %v4088_v52, %v4087_v47  ;;  %v2258_v41 = vrot.slane %v2257_v16, 1  ;;  %v2247_v23 = vadd.f32 %v2246_v22, %v7249_v54  ;;  %v3201_v49 = vadd.f32 %v3200_v38, %v7270_v21  ;;  %v4334_v54 = vld [vmem:[#allocation6 + $0x4d0] sm:$0xff] }
 0x2f6   : > { %4571 = vmatpush.msrb.mxu2 %v4283_v11  ;;  %4591 = vmatpush.msrb.mxu3 %v4299_v13  ;;  %v4094_v39 = vrot.slane %v4093_v29, 2  ;;  %v4083_v42 = vadd.f32 %v4082_v36, %v4081_v46  ;;  %v4335_v11 = vld [vmem:[#allocation6 + $0x4d8] sm:$0xff]  ;;  %v4100_v33 = vrot.slane %v4099_v17, 2  ;;  %v3207_v34 = vadd.f32 %v3206_v44, %v7276_v1  ;;  %v7933_v1 = vld [vmem:[#allocation25_spill] sm:$0xff] }
 0x2f7   : > { %4604 = vmatpush.msra.mxu0 %v4322_v14  ;;  %4624 = vmatpush.msra.mxu1 %v4338_v19  ;;  %v4090_v57 = vrot.slane %v4089_v10, 1  ;;  %v3270_v14 = vadd.f32 %v3189_v32, %v2241_v4  ;;  %v3271_v19 = vadd.f32 %v3195_v35, %v2247_v23  ;;  %v2259_v46 = vadd.f32 %v2258_v41, %v2257_v16  ;;  %v7935_v16 = vld [vmem:[#allocation30_spill] sm:$0xff]  ;;  %v4277_v41 = vld [vmem:[#allocation6 + $0x308] sm:$0xff] }
 0x2f8   : > { %4572 = vmatpush.msrb.mxu2 %v4282_v53  ;;  %4592 = vmatpush.msrb.mxu3 %v4298_v50  ;;  %v4095_v13 = vadd.f32 %v4094_v39, %v4093_v29  ;;  %v4084_v28 = vrot.slane %v4083_v42, 1  ;;  %v4101_v21 = vadd.f32 %v4100_v33, %v4099_v17  ;;  %v3272_v47 = vadd.f32 %v3201_v49, %v2253_v60  ;;  %v7934_v29 = vld [vmem:[#allocation24_spill] sm:$0xff] }
 0x2f9   : > { %4605 = vmatpush.msra.mxu0 %v4321_v18  ;;  %4625 = vmatpush.msra.mxu1 %v4337_v43  ;;  %v4091_v45 = vadd.f32 %v4090_v57, %v4089_v10  ;;  %v2980_v38 = vadd.f32 %v7933_v1, %v6771_v9  ;;  %v3273_v24 = vadd.f32 %v3207_v34, %v2259_v46  ;;  %v4317_v39 = vld [vmem:[#allocation6 + $0x448] sm:$0xff]  ;;  %v4278_v10 = vld [vmem:[#allocation6 + $0x310] sm:$0xff] }
 0x2fa   : > { %4573 = vmatpush.msrb.mxu2 %v4281_v30  ;;  %4593 = vmatpush.msrb.mxu3 %v4297_v5  ;;  %v4096_v0 = vrot.slane %v4095_v13, 1  ;;  %v4085_v25 = vadd.f32 %v4084_v28, %v4083_v42  ;;  %v4102_v50 = vrot.slane %v4101_v21, 1  ;;  %v2032_v7 = vadd.f32 %v7934_v29, %v7918_v61  ;;  %v7936_v30 = vld [vmem:[#allocation130_spill] sm:$0xff]  ;;  %v4293_v49 = vld [vmem:[#allocation6 + $0x388] sm:$0xff] }
 0x2fb   : > { %4606 = vmatpush.msra.mxu0 %v4320_v48  ;;  %4626 = vmatpush.msra.mxu1 %v4336_v62  ;;  %v4167_v22 = vadd.f32 %v4091_v45, %v3271_v19  ;;  %v2994_v36 = vadd.f32 %v7935_v16, %v6771_v9  ;;  %v2046_v5 = vadd.f32 %v7936_v30, %v7918_v61  ;;  %v3116_v60 = vmax.f32 %v2980_v38, 0.0  ;;  %v4279_v48 = vld [vmem:[#allocation6 + $0x318] sm:$0xff]  ;;  %v4333_v9 = vld [vmem:[#allocation6 + $0x4c8] sm:$0xff]  ;;  %v4316_v61 = vld [vmem:[#allocation6 + $0x440] sm:$0xff] }
 0x2fc   : > { %4574 = vmatpush.msrb.mxu2 %v4280_v3  ;;  %4594 = vmatpush.msrb.mxu3 %v4296_v40  ;;  %v4097_v53 = vadd.f32 %v4096_v0, %v4095_v13  ;;  %v4166_v63 = vadd.f32 %v4085_v25, %v3270_v14  ;;  %v4103_v43 = vadd.f32 %v4102_v50, %v4101_v21  ;;  %v2168_v32 = vmax.f32 %v2032_v7, 0.0  ;;  %v4295_v62 = vld [vmem:[#allocation6 + $0x398] sm:$0xff]  ;;  %v4294_v3 = vld [vmem:[#allocation6 + $0x390] sm:$0xff]  ;;  %v4332_v40 = vld [vmem:[#allocation6 + $0x4c0] sm:$0xff] }
 0x2fd   : > { %4607 = vmatpush.msra.mxu0 %v4319_v37  ;;  %4627 = vmatpush.msra.mxu1 %v4335_v11  ;;  %v3117_v35 = vmax.f32 %v2994_v36, 0.0  ;;  %v2169_v44 = vmax.f32 %v2046_v5, 0.0  ;;  %v3162_v15 = vmul.f32 %v6791_v55, %v3116_v60  ;;  %v4315_v37 = vld [vmem:[#allocation6 + $0x438] sm:$0xff]  ;;  %v4292_v13 = vld [vmem:[#allocation6 + $0x380] sm:$0xff]  ;;  %v4314_v57 = vld [vmem:[#allocation6 + $0x430] sm:$0xff] }
 0x2fe   : > { %v4168_v18 = vadd.f32 %v4097_v53, %v3272_v47  ;;  %4499 = vmatmul.f32.vlgmr.msra.gmra.mxu2 %v4166_v63  ;;  %4519 = vmatmul.f32.vlgmr.msra.gmra.mxu3 %v4167_v22  ;;  %v4169_v52 = vadd.f32 %v4103_v43, %v3273_v24  ;;  %v2214_v17 = vmul.f32 %v7926_v6, %v2168_v32  ;;  %v4331_v11 = vld [vmem:[#allocation6 + $0x4b8] sm:$0xff]  ;;  %v4330_v14 = vld [vmem:[#allocation6 + $0x4b0] sm:$0xff]  ;;  %v4329_v0 = vld [vmem:[#allocation6 + $0x4a8] sm:$0xff] }
 0x2ff   : > { %4608 = vmatpush.msra.mxu0 %v4318_v58  ;;  %4628 = vmatpush.msra.mxu1 %v4334_v54  ;;  %v3163_v42 = vmul.f32 %v6791_v55, %v3117_v35  ;;  %v2215_v4 = vmul.f32 %v7926_v6, %v2169_v44  ;;  %v3208_v23 = vrot.slane %v3162_v15, 4  ;;  %v4276_v55 = vld [vmem:[#allocation6 + $0x300] sm:$0xff]  ;;  %v4355_v19 = vld [vmem:[#allocation6 + $0x578] sm:$0xff]  ;;  %v4313_v54 = vld [vmem:[#allocation6 + $0x428] sm:$0xff] }
 0x300   : > { %4539 = vmatmul.f32.vlgmr.msrb.gmra.mxu0 %v4168_v18  ;;  %4559 = vmatmul.f32.vlgmr.msrb.gmra.mxu1 %v4169_v52  ;;  %v2260_v33 = vrot.slane %v2214_v17, 4  ;;  %v4371_v6 = vld [vmem:[#allocation6 + $0x5f8] sm:$0xff]  ;;  %v4354_v21 = vld [vmem:[#allocation6 + $0x570] sm:$0xff]  ;;  %v4312_v50 = vld [vmem:[#allocation6 + $0x420] sm:$0xff] }
 0x301   : > { %4575 = vmatpush.msrb.mxu2 %v4279_v48  ;;  %4595 = vmatpush.msrb.mxu3 %v4295_v62  ;;  %v3214_v28 = vrot.slane %v3163_v42, 4  ;;  %v2266_v34 = vrot.slane %v2215_v4, 4  ;;  %v3209_v58 = vadd.f32 %v3208_v23, %v3162_v15  ;;  %v4370_v25 = vld [vmem:[#allocation6 + $0x5f0] sm:$0xff]  ;;  %v4328_v63 = vld [vmem:[#allocation6 + $0x4a0] sm:$0xff]  ;;  %v4353_v38 = vld [vmem:[#allocation6 + $0x568] sm:$0xff] }
 0x302   : > { %4609 = vmatpush.msra.mxu0 %v4317_v39  ;;  %4629 = vmatpush.msra.mxu1 %v4333_v9  ;;  %v2261_v45 = vadd.f32 %v2260_v33, %v2214_v17  ;;  %v4369_v24 = vld [vmem:[#allocation6 + $0x5e8] sm:$0xff]  ;;  %v4311_v29 = vld [vmem:[#allocation6 + $0x418] sm:$0xff]  ;;  %v4352_v52 = vld [vmem:[#allocation6 + $0x560] sm:$0xff] }
 0x303   : > { %4576 = vmatpush.msrb.mxu2 %v4278_v10  ;;  %4596 = vmatpush.msrb.mxu3 %v4294_v3  ;;  %v3215_v46 = vadd.f32 %v3214_v28, %v3163_v42  ;;  %v2267_v18 = vadd.f32 %v2266_v34, %v2215_v4  ;;  %v3210_v43 = vrot.slane %v3209_v58, 2  ;;  %v4327_v36 = vld [vmem:[#allocation6 + $0x498] sm:$0xff]  ;;  %v4368_v35 = vld [vmem:[#allocation6 + $0x5e0] sm:$0xff]  ;;  %v4310_v44 = vld [vmem:[#allocation6 + $0x410] sm:$0xff] }
 0x304   : > { %4610 = vmatpush.msra.mxu0 %v4316_v61  ;;  %4630 = vmatpush.msra.mxu1 %v4332_v40  ;;  %v2262_v30 = vrot.slane %v2261_v45, 2  ;;  %v4326_v17 = vld [vmem:[#allocation6 + $0x490] sm:$0xff]  ;;  %v4351_v42 = vld [vmem:[#allocation6 + $0x558] sm:$0xff] }
 0x305   : > { %4577 = vmatpush.msrb.mxu2 %v4277_v41  ;;  %4597 = vmatpush.msrb.mxu3 %v4293_v49  ;;  %v3216_v5 = vrot.slane %v3215_v46, 2  ;;  %v2268_v9 = vrot.slane %v2267_v18, 2  ;;  %v3211_v10 = vadd.f32 %v3210_v43, %v3209_v58  ;;  %v4367_v3 = vld [vmem:[#allocation6 + $0x5d8] sm:$0xff] }
 0x306   : > { %4611 = vmatpush.msra.mxu0 %v4315_v37  ;;  %4631 = vmatpush.msra.mxu1 %v4331_v11  ;;  %v2263_v23 = vadd.f32 %v2262_v30, %v2261_v45 }
 0x307   : > { %4578 = vmatpush.msrb.mxu2 %v4276_v55  ;;  %4598 = vmatpush.msrb.mxu3 %v4292_v13  ;;  %v3217_v49 = vadd.f32 %v3216_v5, %v3215_v46  ;;  %v4366_v5 = vld [vmem:[#allocation6 + $0x5d0] sm:$0xff] }
 0x308   : > { %4612 = vmatpush.msra.mxu0 %v4314_v57  ;;  %4632 = vmatpush.msra.mxu1 %v4330_v14  ;;  %v2269_v57 = vadd.f32 %v2268_v9, %v2267_v18  ;;  %v3212_v14 = vrot.slane %v3211_v10, 1  ;;  %v4403_v9 = vld [vmem:[#allocation6 + $0x6f8] sm:$0xff] }
 0x309   : > { %4643 = vmatpush.msra.mxu2 %v4355_v19  ;;  %4663 = vmatpush.msra.mxu3 %v4371_v6 }
 0x30a   : > { %4613 = vmatpush.msra.mxu0 %v4313_v54  ;;  %4633 = vmatpush.msra.mxu1 %v4329_v0  ;;  %v2264_v54 = vrot.slane %v2263_v23, 1  ;;  %v3218_v0 = vrot.slane %v3217_v49, 1 }
 0x30b   : > { %4644 = vmatpush.msra.mxu2 %v4354_v21  ;;  %4664 = vmatpush.msra.mxu3 %v4370_v25 }
 0x30c   : > { %4614 = vmatpush.msra.mxu0 %v4312_v50  ;;  %4634 = vmatpush.msra.mxu1 %v4328_v63  ;;  %v2270_v50 = vrot.slane %v2269_v57, 1  ;;  %v3213_v63 = vadd.f32 %v3212_v14, %v3211_v10  ;;  %v2265_v18 = vadd.f32 %v2264_v54, %v2263_v23  ;;  %v3219_v43 = vadd.f32 %v3218_v0, %v3217_v49  ;;  %v4348_v10 = vld [vmem:[#allocation6 + $0x540] sm:$0xff]  ;;  %v4402_v49 = vld [vmem:[#allocation6 + $0x6f0] sm:$0xff] }
 0x30d   : > { %4645 = vmatpush.msra.mxu2 %v4353_v38  ;;  %4665 = vmatpush.msra.mxu3 %v4369_v24  ;;  %v4346_v14 = vld [vmem:[#allocation6 + $0x530] sm:$0xff] }
 0x30e   : > { %4615 = vmatpush.msra.mxu0 %v4311_v29  ;;  %4635 = vmatpush.msra.mxu1 %v4327_v36  ;;  %v4309_v29 = vld [vmem:[#allocation6 + $0x408] sm:$0xff] }
 0x30f   : > { %4646 = vmatpush.msra.mxu2 %v4352_v52  ;;  %4666 = vmatpush.msra.mxu3 %v4368_v35  ;;  %v2271_v35 = vadd.f32 %v2270_v50, %v2269_v57  ;;  %v4401_v57 = vld [vmem:[#allocation6 + $0x6e8] sm:$0xff]  ;;  %v4360_v50 = vld [vmem:[#allocation6 + $0x5a0] sm:$0xff] }
 0x310   : > { %4616 = vmatpush.msra.mxu0 %v4310_v44  ;;  %4636 = vmatpush.msra.mxu1 %v4326_v17  ;;  %v3274_v44 = vadd.f32 %v3213_v63, %v2265_v18  ;;  %v4382_v63 = vld [vmem:[#allocation6 + $0x650] sm:$0xff] }
 0x311   : > { %4647 = vmatpush.msra.mxu2 %v4351_v42  ;;  %4667 = vmatpush.msra.mxu3 %v4367_v3  ;;  %v3275_v3 = vadd.f32 %v3219_v43, %v2271_v35 }
 0x312   : > { %v3909_v47 = vpop.f32.mrf.mxu2  ;;  %v3922_v53 = vpop.f32.mrf.mxu3  ;;  %4617 = vmatpush.msra.mxu0 %v4309_v29  ;;  %v4359_v29 = vld [vmem:[#allocation6 + $0x598] sm:$0xff] }
 0x313   : > { %v3910_v22 = vadd.f32 %v3909_v47, %v7931_v8  ;;  %v3923_v1 = vadd.f32 %v3922_v53, %v7931_v8  ;;  %4668 = vmatpush.msra.mxu3 %v4366_v5 }
 0x315   : > { %v4036_v7 = vmax.f32 %v3910_v22, 0.0  ;;  %v4037_v16 = vmax.f32 %v3923_v1, 0.0 }
 0x316   : > { %v3935_v60 = vpop.f32.mrf.mxu0  ;;  %v3948_v32 = vpop.f32.mrf.mxu1 }
 0x317   : > { %v3936_v15 = vadd.f32 %v3935_v60, %v7931_v8  ;;  %v3949_v48 = vadd.f32 %v3948_v32, %v7931_v8  ;;  %v4058_v62 = vmul.f32 %v7215_v51, %v4036_v7  ;;  %v4059_v39 = vmul.f32 %v7215_v51, %v4037_v16  ;;  %v4325_v7 = vld [vmem:[#allocation6 + $0x488] sm:$0xff]  ;;  %v4350_v16 = vld [vmem:[#allocation6 + $0x550] sm:$0xff]  ;;  %v4308_v60 = vld [vmem:[#allocation6 + $0x400] sm:$0xff] }
 0x318   : > { %v4324_v32 = vld [vmem:[#allocation6 + $0x480] sm:$0xff]  ;;  %4637 = vmatpush.msra.mxu1 %v4325_v7  ;;  %4648 = vmatpush.msra.mxu2 %v4350_v16  ;;  %v4381_v7 = vld [vmem:[#allocation6 + $0x648] sm:$0xff] }
 0x319   : > { %v4038_v61 = vmax.f32 %v3936_v15, 0.0  ;;  %v4039_v40 = vmax.f32 %v3949_v48, 0.0  ;;  %v4104_v41 = vrot.slane %v4058_v62, 4  ;;  %v4110_v4 = vrot.slane %v4059_v39, 4  ;;  %v4349_v48 = vld [vmem:[#allocation6 + $0x548] sm:$0xff]  ;;  %4618 = vmatpush.msra.mxu0 %v4308_v60 }
 0x31a   : > { %v3911_v37 = vpop.f32.mrf.mxu2  ;;  %v3924_v11 = vpop.f32.mrf.mxu3  ;;  %4638 = vmatpush.msra.mxu1 %v4324_v32  ;;  %4649 = vmatpush.msra.mxu2 %v4349_v48  ;;  %v4358_v32 = vld [vmem:[#allocation6 + $0x590] sm:$0xff] }
 0x31b   : > { %v4060_v55 = vmul.f32 %v7215_v51, %v4038_v61  ;;  %v4061_v13 = vmul.f32 %v7215_v51, %v4039_v40  ;;  %v4105_v33 = vadd.f32 %v4104_v41, %v4058_v62  ;;  %v4111_v28 = vadd.f32 %v4110_v4, %v4059_v39  ;;  %v4365_v62 = vld [vmem:[#allocation6 + $0x5c8] sm:$0xff]  ;;  %v4387_v39 = vld [vmem:[#allocation6 + $0x678] sm:$0xff]  ;;  %v4364_v40 = vld [vmem:[#allocation6 + $0x5c0] sm:$0xff] }
 0x31c   : > { %v4386_v41 = vld [vmem:[#allocation6 + $0x670] sm:$0xff]  ;;  %4669 = vmatpush.msra.mxu3 %v4365_v62  ;;  %4683 = vmatpush.msrb.mxu0 %v4387_v39 }
 0x31d   : > { %v4116_v19 = vrot.slane %v4060_v55, 4  ;;  %v4122_v6 = vrot.slane %v4061_v13, 4  ;;  %v4106_v34 = vrot.slane %v4105_v33, 2  ;;  %v4112_v58 = vrot.slane %v4111_v28, 2  ;;  %4703 = vmatpush.msrb.mxu1 %v4403_v9  ;;  %4650 = vmatpush.msra.mxu2 %v4348_v10 }
 0x31e   : > { %v3937_v21 = vpop.f32.mrf.mxu0  ;;  %v3950_v25 = vpop.f32.mrf.mxu1  ;;  %4670 = vmatpush.msra.mxu3 %v4364_v40  ;;  %4684 = vmatpush.msrb.mxu0 %v4386_v41  ;;  %v4380_v40 = vld [vmem:[#allocation6 + $0x640] sm:$0xff] }
 0x31f   : > { %v4117_v45 = vadd.f32 %v4116_v19, %v4060_v55  ;;  %v4123_v46 = vadd.f32 %v4122_v6, %v4061_v13  ;;  %v4107_v47 = vadd.f32 %v4106_v34, %v4105_v33  ;;  %v4113_v53 = vadd.f32 %v4112_v58, %v4111_v28  ;;  %v4347_v13 = vld [vmem:[#allocation6 + $0x538] sm:$0xff]  ;;  %4704 = vmatpush.msrb.mxu1 %v4402_v49  ;;  %v4385_v28 = vld [vmem:[#allocation6 + $0x668] sm:$0xff]  ;;  %v4362_v19 = vld [vmem:[#allocation6 + $0x5b0] sm:$0xff] }
 0x320   : > { %v4363_v33 = vld [vmem:[#allocation6 + $0x5b8] sm:$0xff]  ;;  %4651 = vmatpush.msra.mxu2 %v4347_v13  ;;  %v4384_v6 = vld [vmem:[#allocation6 + $0x660] sm:$0xff]  ;;  %4685 = vmatpush.msrb.mxu0 %v4385_v28  ;;  %v4345_v34 = vld [vmem:[#allocation6 + $0x528] sm:$0xff] }
 0x321   : > { %v4118_v22 = vrot.slane %v4117_v45, 2  ;;  %v4124_v1 = vrot.slane %v4123_v46, 2  ;;  %v4108_v38 = vrot.slane %v4107_v47, 1  ;;  %v4114_v24 = vrot.slane %v4113_v53, 1  ;;  %4671 = vmatpush.msra.mxu3 %v4363_v33  ;;  %4705 = vmatpush.msrb.mxu1 %v4401_v57  ;;  %v4383_v58 = vld [vmem:[#allocation6 + $0x658] sm:$0xff]  ;;  %v4344_v25 = vld [vmem:[#allocation6 + $0x520] sm:$0xff] }
 0x322   : > { %4652 = vmatpush.msra.mxu2 %v4346_v14  ;;  %4686 = vmatpush.msrb.mxu0 %v4384_v6  ;;  %v4399_v21 = vld [vmem:[#allocation6 + $0x6d8] sm:$0xff]  ;;  %v4396_v41 = vld [vmem:[#allocation6 + $0x6c0] sm:$0xff]  ;;  %v4378_v14 = vld [vmem:[#allocation6 + $0x630] sm:$0xff] }
 0x323   : > { %v4119_v36 = vadd.f32 %v4118_v22, %v4117_v45  ;;  %v4125_v52 = vadd.f32 %v4124_v1, %v4123_v46  ;;  %v4109_v30 = vadd.f32 %v4108_v38, %v4107_v47  ;;  %v4115_v15 = vadd.f32 %v4114_v24, %v4113_v53  ;;  %4672 = vmatpush.msra.mxu3 %v4362_v19  ;;  %v4398_v38 = vld [vmem:[#allocation6 + $0x6d0] sm:$0xff]  ;;  %v4343_v24 = vld [vmem:[#allocation6 + $0x518] sm:$0xff]  ;;  %v4340_v28 = vld [vmem:[#allocation6 + $0x500] sm:$0xff] }
 0x324   : > { %4653 = vmatpush.msra.mxu2 %v4345_v34  ;;  %4687 = vmatpush.msrb.mxu0 %v4383_v58  ;;  %v4356_v57 = vld [vmem:[#allocation6 + $0x580] sm:$0xff]  ;;  %v4419_v34 = vld [vmem:[#allocation6 + $0x778] sm:$0xff]  ;;  %v4377_v58 = vld [vmem:[#allocation6 + $0x628] sm:$0xff] }
 0x325   : > { %v4120_v17 = vrot.slane %v4119_v36, 1  ;;  %v4126_v42 = vrot.slane %v4125_v52, 1  ;;  %v4170_v61 = vadd.f32 %v4109_v30, %v3274_v44  ;;  %v4171_v37 = vadd.f32 %v4115_v15, %v3275_v3  ;;  %v4342_v30 = vld [vmem:[#allocation6 + $0x510] sm:$0xff] }
 0x326   : > { %4654 = vmatpush.msra.mxu2 %v4344_v25  ;;  %4688 = vmatpush.msrb.mxu0 %v4382_v63 }
 0x327   : > { %v4121_v4 = vadd.f32 %v4120_v17, %v4119_v36  ;;  %v4127_v23 = vadd.f32 %v4126_v42, %v4125_v52  ;;  %4579 = vmatmul.f32.vlgmr.msrb.gmra.mxu2 %v4170_v61  ;;  %4599 = vmatmul.f32.vlgmr.msrb.gmra.mxu3 %v4171_v37  ;;  %v4397_v52 = vld [vmem:[#allocation6 + $0x6c8] sm:$0xff] }
 0x328   : > { %4655 = vmatpush.msra.mxu2 %v4343_v24  ;;  %4689 = vmatpush.msrb.mxu0 %v4381_v7  ;;  %v4357_v37 = vld [vmem:[#allocation6 + $0x588] sm:$0xff]  ;;  %v4375_v24 = vld [vmem:[#allocation6 + $0x618] sm:$0xff] }
 0x329   : > { %v4172_v11 = vadd.f32 %v4121_v4, %v6843_v27  ;;  %v4173_v55 = vadd.f32 %v4127_v23, %v6846_v12  ;;  %v4400_v27 = vld [vmem:[#allocation6 + $0x6e0] sm:$0xff]  ;;  %v4361_v12 = vld [vmem:[#allocation6 + $0x5a8] sm:$0xff] }
 0x32a   : > { %4706 = vmatpush.msrb.mxu1 %v4400_v27  ;;  %4673 = vmatpush.msra.mxu3 %v4361_v12  ;;  %v4341_v4 = vld [vmem:[#allocation6 + $0x508] sm:$0xff]  ;;  %v4394_v27 = vld [vmem:[#allocation6 + $0x6b0] sm:$0xff]  ;;  %v4435_v12 = vld [vmem:[#allocation6 + $0x7f8] sm:$0xff] }
 0x32b   : > { %4619 = vmatmul.f32.vlgmr.msra.gmra.mxu0 %v4172_v11  ;;  %4639 = vmatmul.f32.vlgmr.msra.gmra.mxu1 %v4173_v55  ;;  %v4379_v11 = vld [vmem:[#allocation6 + $0x638] sm:$0xff] }
 0x32c   : > { %4707 = vmatpush.msrb.mxu1 %v4399_v21  ;;  %4674 = vmatpush.msra.mxu3 %v4360_v50  ;;  %v4395_v55 = vld [vmem:[#allocation6 + $0x6b8] sm:$0xff]  ;;  %v4392_v50 = vld [vmem:[#allocation6 + $0x6a0] sm:$0xff] }
 0x32d   : > { %4656 = vmatpush.msra.mxu2 %v4342_v30  ;;  %4690 = vmatpush.msrb.mxu0 %v4380_v40 }
 0x32e   : > { %4708 = vmatpush.msrb.mxu1 %v4398_v38  ;;  %4675 = vmatpush.msra.mxu3 %v4359_v29  ;;  %v4433_v38 = vld [vmem:[#allocation6 + $0x7e8] sm:$0xff] }
 0x32f   : > { %v3987_v54 = vpop.f32.mrf.mxu0  ;;  %v4000_v0 = vpop.f32.mrf.mxu1  ;;  %4657 = vmatpush.msra.mxu2 %v4341_v4  ;;  %4691 = vmatpush.msrb.mxu0 %v4379_v11  ;;  %v4413_v4 = vld [vmem:[#allocation6 + $0x748] sm:$0xff] }
 0x330   : > { %v3988_v45 = vadd.f32 %v3987_v54, %v7931_v8  ;;  %v4001_v46 = vadd.f32 %v4000_v0, %v7931_v8  ;;  %v3961_v47 = vpop.f32.mrf.mxu2  ;;  %v3974_v53 = vpop.f32.mrf.mxu3  ;;  %4709 = vmatpush.msrb.mxu1 %v4397_v52  ;;  %4676 = vmatpush.msra.mxu3 %v4358_v32  ;;  %v4393_v54 = vld [vmem:[#allocation6 + $0x6a8] sm:$0xff]  ;;  %v4390_v32 = vld [vmem:[#allocation6 + $0x690] sm:$0xff] }
 0x331   : > { %v3962_v22 = vadd.f32 %v3961_v47, %v7931_v8  ;;  %v3975_v1 = vadd.f32 %v3974_v53, %v7931_v8  ;;  %4658 = vmatpush.msra.mxu2 %v4340_v28  ;;  %4692 = vmatpush.msrb.mxu0 %v4378_v14  ;;  %v4376_v53 = vld [vmem:[#allocation6 + $0x620] sm:$0xff] }
 0x332   : > { %v4042_v18 = vmax.f32 %v3988_v45, 0.0  ;;  %v4043_v43 = vmax.f32 %v4001_v46, 0.0  ;;  %4710 = vmatpush.msrb.mxu1 %v4396_v41  ;;  %4677 = vmatpush.msra.mxu3 %v4357_v37  ;;  %v4418_v45 = vld [vmem:[#allocation6 + $0x770] sm:$0xff] }
 0x333   : > { %v4040_v16 = vmax.f32 %v3962_v22, 0.0  ;;  %v4041_v36 = vmax.f32 %v3975_v1, 0.0  ;;  %v4434_v46 = vld [vmem:[#allocation6 + $0x7f0] sm:$0xff]  ;;  %4723 = vmatpush.msrb.mxu2 %v4419_v34  ;;  %4693 = vmatpush.msrb.mxu0 %v4377_v58  ;;  %v4417_v1 = vld [vmem:[#allocation6 + $0x768] sm:$0xff] }
 0x334   : > { %v4064_v5 = vmul.f32 %v7215_v51, %v4042_v18  ;;  %v4065_v60 = vmul.f32 %v7215_v51, %v4043_v43  ;;  %4711 = vmatpush.msrb.mxu1 %v4395_v55  ;;  %4678 = vmatpush.msra.mxu3 %v4356_v57  ;;  %v4391_v18 = vld [vmem:[#allocation6 + $0x698] sm:$0xff]  ;;  %v4412_v55 = vld [vmem:[#allocation6 + $0x740] sm:$0xff]  ;;  %v4409_v58 = vld [vmem:[#allocation6 + $0x728] sm:$0xff] }
 0x335   : > { %v4062_v35 = vmul.f32 %v7215_v51, %v4040_v16  ;;  %v4063_v44 = vmul.f32 %v7215_v51, %v4041_v36  ;;  %4724 = vmatpush.msrb.mxu2 %v4418_v45  ;;  %4694 = vmatpush.msrb.mxu0 %v4376_v53  ;;  %v4416_v16 = vld [vmem:[#allocation6 + $0x760] sm:$0xff]  ;;  %v4411_v57 = vld [vmem:[#allocation6 + $0x738] sm:$0xff] }
 0x336   : > { %v4140_v15 = vrot.slane %v4064_v5, 4  ;;  %v4146_v48 = vrot.slane %v4065_v60, 4  ;;  %4712 = vmatpush.msrb.mxu1 %v4394_v27  ;;  %4743 = vmatpush.msrb.mxu3 %v4435_v12  ;;  %v4432_v36 = vld [vmem:[#allocation6 + $0x7e0] sm:$0xff]  ;;  %v4410_v27 = vld [vmem:[#allocation6 + $0x730] sm:$0xff]  ;;  %v4407_v53 = vld [vmem:[#allocation6 + $0x718] sm:$0xff] }
 0x337   : > { %v4128_v62 = vrot.slane %v4062_v35, 4  ;;  %v4134_v39 = vrot.slane %v4063_v44, 4  ;;  %v3989_v17 = vpop.f32.mrf.mxu0  ;;  %v4002_v42 = vpop.f32.mrf.mxu1  ;;  %4725 = vmatpush.msrb.mxu2 %v4417_v1  ;;  %4695 = vmatpush.msrb.mxu0 %v4375_v24  ;;  %v4424_v45 = vld [vmem:[#allocation6 + $0x7a0] sm:$0xff]  ;;  %v4405_v24 = vld [vmem:[#allocation6 + $0x708] sm:$0xff] }
 0x338   : > { %v4141_v9 = vadd.f32 %v4140_v15, %v4064_v5  ;;  %v4147_v10 = vadd.f32 %v4146_v48, %v4065_v60  ;;  %v3963_v3 = vpop.f32.mrf.mxu2  ;;  %v3976_v61 = vpop.f32.mrf.mxu3  ;;  %4713 = vmatpush.msrb.mxu1 %v4393_v54  ;;  %4744 = vmatpush.msrb.mxu3 %v4434_v46  ;;  %v4374_v60 = vld [vmem:[#allocation6 + $0x610] sm:$0xff]  ;;  %v4389_v17 = vld [vmem:[#allocation6 + $0x688] sm:$0xff] }
 0x339   : > { %v4129_v23 = vadd.f32 %v4128_v62, %v4062_v35  ;;  %v4135_v49 = vadd.f32 %v4134_v39, %v4063_v44  ;;  %4726 = vmatpush.msrb.mxu2 %v4416_v16  ;;  %v4415_v35 = vld [vmem:[#allocation6 + $0x758] sm:$0xff]  ;;  %v4373_v39 = vld [vmem:[#allocation6 + $0x608] sm:$0xff]  ;;  %4696 = vmatpush.msrb.mxu0 %v4374_v60  ;;  %v4372_v3 = vld [vmem:[#allocation6 + $0x600] sm:$0xff] }
 0x33a   : > { %v4142_v13 = vrot.slane %v4141_v9, 2  ;;  %v4148_v33 = vrot.slane %v4147_v10, 2  ;;  %4714 = vmatpush.msrb.mxu1 %v4392_v50  ;;  %4745 = vmatpush.msrb.mxu3 %v4433_v38  ;;  %v4431_v44 = vld [vmem:[#allocation6 + $0x7d8] sm:$0xff]  ;;  %v4388_v61 = vld [vmem:[#allocation6 + $0x680] sm:$0xff]  ;;  %v4425_v54 = vld [vmem:[#allocation6 + $0x7a8] sm:$0xff] }
 0x33b   : > { %v4130_v19 = vrot.slane %v4129_v23, 2  ;;  %v4136_v6 = vrot.slane %v4135_v49, 2  ;;  %4727 = vmatpush.msrb.mxu2 %v4415_v35  ;;  %4697 = vmatpush.msrb.mxu0 %v4373_v39  ;;  %v4423_v50 = vld [vmem:[#allocation6 + $0x798] sm:$0xff] }
 0x33c   : > { %v4143_v0 = vadd.f32 %v4142_v13, %v4141_v9  ;;  %v4149_v47 = vadd.f32 %v4148_v33, %v4147_v10  ;;  %4715 = vmatpush.msrb.mxu1 %v4391_v18  ;;  %4746 = vmatpush.msrb.mxu3 %v4432_v36  ;;  %v4414_v9 = vld [vmem:[#allocation6 + $0x750] sm:$0xff]  ;;  %v4428_v13 = vld [vmem:[#allocation6 + $0x7c0] sm:$0xff]  ;;  %v4421_v18 = vld [vmem:[#allocation6 + $0x788] sm:$0xff]  ;;  %v4440_v36 = vpop.permute.xlu2 %4439 }
 0x33d   : > { %v4131_v21 = vadd.f32 %v4130_v19, %v4129_v23  ;;  %v4137_v25 = vadd.f32 %v4136_v6, %v4135_v49  ;;  %v4430_v10 = vld [vmem:[#allocation6 + $0x7d0] sm:$0xff]  ;;  %v4429_v23 = vld [vmem:[#allocation6 + $0x7c8] sm:$0xff]  ;;  %4728 = vmatpush.msrb.mxu2 %v4414_v9  ;;  %4698 = vmatpush.msrb.mxu0 %v4372_v3 }
 0x33e   : > { %v4144_v43 = vrot.slane %v4143_v0, 1  ;;  %v4150_v52 = vrot.slane %v4149_v47, 1  ;;  %4716 = vmatpush.msrb.mxu1 %v4390_v32  ;;  %4747 = vmatpush.msrb.mxu3 %v4431_v44 }
 0x33f   : > { %v4132_v63 = vrot.slane %v4131_v21, 1  ;;  %v4138_v22 = vrot.slane %v4137_v25, 1  ;;  %4729 = vmatpush.msrb.mxu2 %v4413_v4 }
 0x340   : > { %v4145_v15 = vadd.f32 %v4144_v43, %v4143_v0  ;;  %v4151_v42 = vadd.f32 %v4150_v52, %v4149_v47  ;;  %4717 = vmatpush.msrb.mxu1 %v4389_v17  ;;  %4748 = vmatpush.msrb.mxu3 %v4430_v10  ;;  %v4404_v43 = vld [vmem:[#allocation6 + $0x700] sm:$0xff] }
 0x341   : > { %v4133_v29 = vadd.f32 %v4132_v63, %v4131_v21  ;;  %v4139_v7 = vadd.f32 %v4138_v22, %v4137_v25  ;;  %4730 = vmatpush.msrb.mxu2 %v4412_v55  ;;  %v4408_v25 = vld [vmem:[#allocation6 + $0x720] sm:$0xff]  ;;  %v4406_v63 = vld [vmem:[#allocation6 + $0x710] sm:$0xff] }
 0x342   : > { %v4176_v49 = vadd.f32 %v4145_v15, %v6969_v2  ;;  %4718 = vmatpush.msrb.mxu1 %v4388_v61  ;;  %4749 = vmatpush.msrb.mxu3 %v4429_v23  ;;  %v4427_v2 = vld [vmem:[#allocation6 + $0x7b8] sm:$0xff]  ;;  %v4422_v22 = vld [vmem:[#allocation6 + $0x790] sm:$0xff] }
 0x343   : > { %v4174_v30 = vadd.f32 %v4133_v29, %v6916_v26  ;;  %v4175_v5 = vadd.f32 %v4139_v7, %v6923_v56  ;;  %4731 = vmatpush.msrb.mxu2 %v4411_v57  ;;  %v4420_v29 = vld [vmem:[#allocation6 + $0x780] sm:$0xff] }
 0x344   : > { %4699 = vmatmul.f32.vlgmr.msrb.gmra.mxu0 %v4176_v49  ;;  %4750 = vmatpush.msrb.mxu3 %v4428_v13 }
 0x345   : > { %4659 = vmatmul.f32.vlgmr.msra.gmra.mxu2 %v4174_v30  ;;  %4679 = vmatmul.f32.vlgmr.msra.gmra.mxu3 %v4175_v5  ;;  %v4442_v30 = vperm.slane %v4440_v36, 0 }
 0x346   : > { %v4013_v48 = vpop.f32.mrf.mxu2  ;;  %v4026_v62 = vpop.f32.mrf.mxu3  ;;  %4751 = vmatpush.msrb.mxu3 %v4427_v2  ;;  %4732 = vmatpush.msrb.mxu2 %v4410_v27 }
 0x347   : > { %v4014_v26 = vadd.f32 %v4013_v48, %v7931_v8  ;;  %v4027_v56 = vadd.f32 %v4026_v62, %v7931_v8  ;;  %v4177_v8 = vadd.f32 %v4151_v42, %v6972_v20 }
 0x348   : > { %4733 = vmatpush.msrb.mxu2 %v4409_v58 }
 0x349   : > { %v4044_v40 = vmax.f32 %v4014_v26, 0.0  ;;  %v4045_v41 = vmax.f32 %v4027_v56, 0.0  ;;  %4719 = vmatmul.f32.vlgmr.msrb.gmra.mxu1 %v4177_v8 }
 0x34a   : > { %4734 = vmatpush.msrb.mxu2 %v4408_v25 }
 0x34b   : > { %v4066_v37 = vmul.f32 %v7215_v51, %v4044_v40  ;;  %v4067_v11 = vmul.f32 %v7215_v51, %v4045_v41  ;;  %v4426_v51 = vld [vmem:[#allocation6 + $0x7b0] sm:$0xff] }
 0x34c   : > { %4752 = vmatpush.msrb.mxu3 %v4426_v51  ;;  %4735 = vmatpush.msrb.mxu2 %v4407_v53 }
 0x34d   : > { %v4152_v33 = vrot.slane %v4066_v37, 4  ;;  %v4158_v28 = vrot.slane %v4067_v11, 4 }
 0x34e   : > { %v4015_v14 = vpop.f32.mrf.mxu2  ;;  %v4028_v19 = vpop.f32.mrf.mxu3  ;;  %4753 = vmatpush.msrb.mxu3 %v4425_v54  ;;  %4736 = vmatpush.msrb.mxu2 %v4406_v63 }
 0x34f   : > { %v4153_v20 = vadd.f32 %v4152_v33, %v4066_v37  ;;  %v4159_v6 = vadd.f32 %v4158_v28, %v4067_v11 }
 0x350   : > { %4754 = vmatpush.msrb.mxu3 %v4424_v45  ;;  %4737 = vmatpush.msrb.mxu2 %v4405_v24 }
 0x351   : > { %v4154_v34 = vrot.slane %v4153_v20, 2  ;;  %v4160_v12 = vrot.slane %v4159_v6, 2 }
 0x352   : > { %4755 = vmatpush.msrb.mxu3 %v4423_v50  ;;  %4738 = vmatpush.msrb.mxu2 %v4404_v43 }
 0x353   : > { %v4155_v0 = vadd.f32 %v4154_v34, %v4153_v20  ;;  %v4161_v21 = vadd.f32 %v4160_v12, %v4159_v6 }
 0x354   : > { %4756 = vmatpush.msrb.mxu3 %v4422_v22 }
 0x355   : > { %v4156_v46 = vrot.slane %v4155_v0, 1  ;;  %v4162_v47 = vrot.slane %v4161_v21, 1 }
 0x356   : > { %4757 = vmatpush.msrb.mxu3 %v4421_v18 }
 0x357   : > { %v4157_v1 = vadd.f32 %v4156_v46, %v4155_v0  ;;  %v4163_v38 = vadd.f32 %v4162_v47, %v4161_v21 }
 0x358   : > { %4758 = vmatpush.msrb.mxu3 %v4420_v29 }
 0x359   : > { %v4178_v7 = vadd.f32 %v4157_v1, %v7009_v31  ;;  %v4179_v16 = vadd.f32 %v4163_v38, %v7012_v59 }
 0x35b   : > { %4739 = vmatmul.f32.vlgmr.msrb.gmra.mxu2 %v4178_v7  ;;  %4759 = vmatmul.f32.vlgmr.msrb.gmra.mxu3 %v4179_v16 }
 0x371   : > { %v4460_v52 = vpop.f32.mrf.mxu0  ;;  %v4480_v60 = vpop.f32.mrf.mxu1 }
 0x372   : > { %v4461_v5 = vadd.f32 %v4460_v52, %v4442_v30 }
 0x374   : > { %v4481_v35 = vadd.f32 %v4480_v60, %v4461_v5 }
 0x37d   : > { %v4540_v62 = vpop.f32.mrf.mxu0  ;;  %v4560_v17 = vpop.f32.mrf.mxu1 }
 0x381   : > { %v4500_v32 = vpop.f32.mrf.mxu2  ;;  %v4520_v15 = vpop.f32.mrf.mxu3 }
 0x382   : > { %v4501_v44 = vadd.f32 %v4500_v32, %v4481_v35 }
 0x384   : > { %v4521_v48 = vadd.f32 %v4520_v15, %v4501_v44 }
 0x386   : > { %v4541_v39 = vadd.f32 %v4540_v62, %v4521_v48 }
 0x388   : > { %v4561_v59 = vadd.f32 %v4560_v17, %v4541_v39 }
 0x3a8   : > { %v4620_v9 = vpop.f32.mrf.mxu0  ;;  %v4640_v3 = vpop.f32.mrf.mxu1 }
 0x3aa   : > { %v4580_v31 = vpop.f32.mrf.mxu2  ;;  %v4600_v26 = vpop.f32.mrf.mxu3 }
 0x3ab   : > { %v4581_v42 = vadd.f32 %v4580_v31, %v4561_v59 }
 0x3ad   : > { %v4601_v56 = vadd.f32 %v4600_v26, %v4581_v42 }
 0x3af   : > { %v4621_v10 = vadd.f32 %v4620_v9, %v4601_v56 }
 0x3b1   : > { %v4641_v40 = vadd.f32 %v4640_v3, %v4621_v10 }
 0x3c1   : > { %v4700_v23 = vpop.f32.mrf.mxu0 }
 0x3c6   : > { %v4720_v37 = vpop.f32.mrf.mxu1 }
 0x3c8   : > { %v4660_v61 = vpop.f32.mrf.mxu2  ;;  %v4680_v4 = vpop.f32.mrf.mxu3 }
 0x3c9   : > { %v4661_v41 = vadd.f32 %v4660_v61, %v4641_v40 }
 0x3cb   : > { %v4681_v49 = vadd.f32 %v4680_v4, %v4661_v41 }
 0x3cd   : > { %v4701_v8 = vadd.f32 %v4700_v23, %v4681_v49 }
 0x3cf   : > { %v4721_v11 = vadd.f32 %v4720_v37, %v4701_v8 }
 0x3de   : > { %v4740_v55 = vpop.f32.mrf.mxu2  ;;  %v4760_v33 = vpop.f32.mrf.mxu3 }
 0x3df   : > { %v4741_v13 = vadd.f32 %v4740_v55, %v4721_v11 }
 0x3e1   : > { %v4761_v28 = vadd.f32 %v4760_v33, %v4741_v13 }
 0x3e3   : > { %4763 = vst [vmem:[%s449_s30] sm:$0x1] %v4761_v28 }
 0x3e4   : > { %5088 = shalt.err (!%p5085_p9)
}
 0x3e5   : > { %4938 = dma.vmem_to_hbm [thread:$0]  (%p5265_p13), %s4776_s18, 16, %s4778_s21, %s4765_s22  }
 0x3e6 PF: > { %s4789_s19 = sand.u32 1, %s5119_s23   ;;  %p7938_p10 = scmp.ge.s32.totalorder %s5131_s26, 2 }
 0x3e7   : > { %s4790_s14 = scalar_lea.sflag [#allocation5], %s4789_s19 }
 0x3e8   : > { %p4949_p11 = pnand %p7938_p10, %p5270_p4 }
 0x3ea   : > { %p4950_p0 = pneg %p4949_p11 }
 0x3ec   : > { %5114 = dma.done.wait (%p4950_p0), %s4790_s14, 16  }
 0x3ed   : > { %5116 = vsyncadd (%p4950_p0), %s4790_s14, 4294967280  ;;  %s7939_s26 = sld [smem:[#allocation13_spill]]  ;;  %s7942_s23 = smov %s5123_s24 }
 0x3ee   : > { %s7940_s25 = sld [smem:[#allocation12_spill]] }
 0x3ef   : > { %s7941_s15 = sld [smem:[#allocation14_spill]] }
 0x3f3   : > { %p28_p2 = scmp.ge.s32.totalorder %s7939_s26, 4  }
 0x3f4   : > { %s7943_s24 = smov %s7940_s25 }
 0x3f5   : > { %s7944_s25 = smov %s7941_s15  ;;  %30 = sbr.rel (!%p28_p2) target bundleno = 9 (0x9), region = 117 }
 0x3fa   :  { %4795 = vsyncpa [#allocation4], 1 }
 0x3fb   :  { %4797 = vsyncpa [#allocation4 + $0x1], 1 }
 0x3fc   :  { %4798 = vsyncpa [#allocation7], 1 }
 0x3fd   :  { %4799 = vsyncpa [#allocation5], 1 }
 0x3fe   :  { %4801 = vsyncpa [#allocation5 + $0x1], 1 }

</bundles_post_ra>
